<compile_context>
chip_gen: v7x
topology: tpu7x:2x2x1
jax: 0.10.0
libtpu: 0.0.40
codegen_flags: <defaults>
</compile_context>

<pallas_src>
import functools

import jax
import jax.numpy as jnp
from jax import lax
from jax.experimental import pallas as pl
from jax.experimental.pallas import tpu as pltpu


def _round_up(x, m):
    return (x + m - 1) // m * m


def _vmem_capacity_bytes():
    """Physical per-core VMEM; conservative default if the query fails."""
    try:
        return int(pltpu.get_tpu_info().vmem_capacity_bytes)
    except Exception:
        return 64 * 1024 * 1024


# ----------------------------------------------------------------------------
# Kernel 1: hoisted input projection + LSTM recurrence -> h_last (per batch
# tile).  Grid: (batch_tiles,), "parallel".
# ----------------------------------------------------------------------------
def lstm_kernel(x_ref, wih_ref, whh_ref, b_ref, h_out_ref, gx_scr, *, unroll):
    # x_ref   : (S, Bb, Ep)    bf16  time-major inputs for this batch tile
    # wih_ref : (Ep, 4*Hp)     bf16  gate order i,f,g,o (each Hp lanes)
    # whh_ref : (Hp, 4*Hp)     bf16
    # b_ref   : (1, 4*Hp)      f32   bias_ih + bias_hh (gate-padded)
    # h_out   : (Bb, Hp)       f32   last hidden state
    # gx_scr  : (S, Bb, 4*Hp)  bf16  hoisted input projection (+bias)
    S, Bb, Ep = x_ref.shape
    Hp = whh_ref.shape[0]

    # Hoisted input projection: one well-shaped (S*Bb, Ep) x (Ep, 4Hp) MXU
    # matmul instead of S tiny pushes inside the serial loop.  Stored bf16
    # (precision loss limited to the gate pre-activations).
    x2d = x_ref[...].reshape(S * Bb, Ep)
    gx = jnp.dot(x2d, wih_ref[...], preferred_element_type=jnp.float32)
    gx = gx.reshape(S, Bb, 4 * Hp) + b_ref[...]
    gx_scr[...] = gx.astype(jnp.bfloat16)

    # Per-gate recurrent weights: static, 128-lane-aligned ref slices.
    w_gate = [whh_ref[:, k * Hp:(k + 1) * Hp] for k in range(4)]

    def step(t, carry):
        h, c = carry                               # f32 (Bb, Hp)
        h_b = h.astype(jnp.bfloat16)
        gx_t = gx_scr[t]                           # bf16 (Bb, 4*Hp)

        def gate(k):
            # Per-gate matmul: gate k's sigmoid/tanh (EUP) can start while
            # gate k+1's MXU result is still draining.
            return (gx_t[:, k * Hp:(k + 1) * Hp].astype(jnp.float32)
                    + jnp.dot(h_b, w_gate[k],
                              preferred_element_type=jnp.float32))

        i = jax.nn.sigmoid(gate(0))
        f = jax.nn.sigmoid(gate(1))
        g = jnp.tanh(gate(2))
        o = jax.nn.sigmoid(gate(3))
        c_new = f * c + i * g                      # all state math stays f32
        h_new = o * jnp.tanh(c_new)
        return h_new, c_new

    h0 = jnp.zeros((Bb, Hp), jnp.float32)
    c0 = jnp.zeros((Bb, Hp), jnp.float32)
    h_last, _ = lax.fori_loop(0, S, step, (h0, c0), unroll=unroll)
    h_out_ref[...] = h_last


# ----------------------------------------------------------------------------
# Kernel 2: final Linear.  Grid: (vocab_tiles, batch_tiles), both "parallel";
# vocab is the OUTER axis so each w_fc tile streams from HBM exactly once.
# ----------------------------------------------------------------------------
def fc_kernel(h_ref, wfc_ref, bfc_ref, out_ref):
    # h_ref   : (Bb, Hp)  f32
    # wfc_ref : (Hp, Vb)  bf16
    # bfc_ref : (1, Vb)   f32
    # out_ref : (Bb, Vb)  f32
    out_ref[...] = (jnp.dot(h_ref[...].astype(jnp.bfloat16), wfc_ref[...],
                            preferred_element_type=jnp.float32)
                    + bfc_ref[...])


# ----------------------------------------------------------------------------
# Parameter container (PyTorch-shaped weights)
# ----------------------------------------------------------------------------
def init_params(key, embed_size, hidden_size, vocab_size):
    ks = jax.random.split(key, 7)
    scale = 0.1
    return {
        # nn.Embedding(vocab_size, embed_size)
        "embed": scale * jax.random.normal(ks[0], (vocab_size, embed_size),
                                           jnp.float32),
        # nn.LSTM(embed_size, hidden_size): PyTorch shapes (4H,E),(4H,H),(4H,)
        "w_ih": scale * jax.random.normal(ks[1], (4 * hidden_size, embed_size),
                                          jnp.float32),
        "w_hh": scale * jax.random.normal(ks[2], (4 * hidden_size, hidden_size),
                                          jnp.float32),
        "b_ih": scale * jax.random.normal(ks[3], (4 * hidden_size,),
                                          jnp.float32),
        "b_hh": scale * jax.random.normal(ks[4], (4 * hidden_size,),
                                          jnp.float32),
        # nn.Linear(hidden_size, vocab_size): weight (V,H), bias (V,)
        "w_fc": scale * jax.random.normal(ks[5], (vocab_size, hidden_size),
                                          jnp.float32),
        "b_fc": scale * jax.random.normal(ks[6], (vocab_size,), jnp.float32),
    }


# ----------------------------------------------------------------------------
# Forward wrapper: embedding gather / concat / padding (glue) + pallas_calls.
# ----------------------------------------------------------------------------
def captioning_forward(params, features, captions, *,
                       block_b=None, block_v=None):
    """features: (B, E) f32, captions: (B, T) int32 -> logits (B, V) f32."""
    B, E = features.shape
    V, H = params["w_fc"].shape
    T = captions.shape[1]
    S = T + 1

    # --- per-generation budgets --------------------------------------------
    vmem_cap = _vmem_capacity_bytes()
    vmem_limit = int(vmem_cap * 0.75)           # headroom for compiler scratch
    big_vmem = vmem_cap >= 96 * 1024 * 1024     # v5e/v6e (128 MiB) vs v7x (64)
    if block_b is None:
        block_b = 256 if big_vmem else 128
    if block_v is None:
        block_v = 2048 if big_vmem else 1024

    # --- glue: embedding gather + concat (plain JAX; layout plumbing only) ---
    embeddings = jnp.take(params["embed"], captions, axis=0)          # (B,T,E)
    inputs = jnp.concatenate(
        [features[:, None, :].astype(jnp.float32), embeddings], axis=1)

    # --- pad to TPU-friendly sizes (zero padding is numerically exact) ------
    Ep = _round_up(E, 128)
    Hp = _round_up(H, 128)
    Bb = min(_round_up(B, 8), block_b)          # batch tile (sublane-aligned)
    Bp = _round_up(B, Bb)
    Vb = min(_round_up(V, 128), block_v)        # vocab tile (lane-dense)
    Vp = _round_up(V, Vb)

    x = jnp.transpose(inputs, (1, 0, 2))                              # (S,B,E)
    x = jnp.pad(x, ((0, 0), (0, Bp - B), (0, Ep - E))).astype(jnp.bfloat16)

    def pad_gate_mat(w_t, rows, rows_p):
        # w_t: (rows, 4H), gate-major columns (i,f,g,o).  Pad each gate's H
        # block to Hp lanes and the contraction rows to rows_p.
        w4 = w_t.reshape(rows, 4, H)
        w4 = jnp.pad(w4, ((0, rows_p - rows), (0, 0), (0, Hp - H)))
        return w4.reshape(rows_p, 4 * Hp)

    w_ih_t = pad_gate_mat(params["w_ih"].T, E, Ep).astype(jnp.bfloat16)
    w_hh_t = pad_gate_mat(params["w_hh"].T, H, Hp).astype(jnp.bfloat16)
    bias = (params["b_ih"] + params["b_hh"]).reshape(4, H)
    bias = jnp.pad(bias, ((0, 0), (0, Hp - H))).reshape(1, 4 * Hp)
    bias = bias.astype(jnp.float32)
    w_fc_t = jnp.pad(params["w_fc"].T,
                     ((0, Hp - H), (0, Vp - V))).astype(jnp.bfloat16)
    b_fc = jnp.pad(params["b_fc"], (0, Vp - V)).reshape(1, Vp)
    b_fc = b_fc.astype(jnp.float32)

    nb = Bp // Bb
    nv = Vp // Vb
    unroll = True if S <= 16 else 4             # cap unroll for long captions

    # ---- kernel 1: LSTM recurrence -> h_last (Bp, Hp) ----------------------
    def weight_spec(shape, index_map, single_buffer):
        if single_buffer:
            # Grid-invariant block: single-buffer to halve its VMEM footprint.
            return pl.BlockSpec(shape, index_map, pipeline_mode=pl.Buffered(1))
        return pl.BlockSpec(shape, index_map)

    def run_lstm(single_buffer):
        grid_spec = pltpu.PrefetchScalarGridSpec(
            num_scalar_prefetch=0,
            grid=(nb,),
            in_specs=[
                pl.BlockSpec((S, Bb, Ep), lambda b: (0, b, 0)),            # x
                weight_spec((Ep, 4 * Hp), lambda b: (0, 0), single_buffer),
                weight_spec((Hp, 4 * Hp), lambda b: (0, 0), single_buffer),
                weight_spec((1, 4 * Hp), lambda b: (0, 0), single_buffer),
            ],
            out_specs=pl.BlockSpec((Bb, Hp), lambda b: (b, 0)),
            scratch_shapes=[pltpu.VMEM((S, Bb, 4 * Hp), jnp.bfloat16)],
        )
        lstm_cost = pl.CostEstimate(
            flops=(2 * S * Bp * Ep * 4 * Hp        # hoisted input projection
                   + 2 * S * Bp * Hp * 4 * Hp),    # recurrent matmuls
            transcendentals=5 * S * Bp * Hp,
            bytes_accessed=(x.size * 2 + w_ih_t.size * 2 + w_hh_t.size * 2
                            + bias.size * 4 + Bp * Hp * 4))
        return pl.pallas_call(
            functools.partial(lstm_kernel, unroll=unroll),
            out_shape=jax.ShapeDtypeStruct((Bp, Hp), jnp.float32),
            grid_spec=grid_spec,
            compiler_params=pltpu.CompilerParams(
                dimension_semantics=("parallel",),
                vmem_limit_bytes=vmem_limit),
            cost_estimate=lstm_cost,
        )(x, w_ih_t, w_hh_t, bias)

    try:
        h_last = run_lstm(single_buffer=True)
    except Exception:
        # Fallback if this JAX build rejects pipeline_mode=pl.Buffered(1).
        h_last = run_lstm(single_buffer=False)

    # ---- kernel 2: final Linear (vocab-outer so w_fc streams exactly once) --
    fc_grid_spec = pltpu.PrefetchScalarGridSpec(
        num_scalar_prefetch=0,
        grid=(nv, nb),
        in_specs=[
            pl.BlockSpec((Bb, Hp), lambda v, b: (b, 0)),   # h_last tile (small)
            pl.BlockSpec((Hp, Vb), lambda v, b: (0, v)),   # w_fc: once per v
            pl.BlockSpec((1, Vb), lambda v, b: (0, v)),    # b_fc tile
        ],
        out_specs=pl.BlockSpec((Bb, Vb), lambda v, b: (b, v)),
    )
    fc_cost = pl.CostEstimate(
        flops=2 * Bp * Hp * Vp,
        transcendentals=0,
        bytes_accessed=(nv * Bp * Hp * 4           # h re-streamed per v tile
                        + w_fc_t.size * 2          # fc weight streamed once
                        + b_fc.size * 4 + Bp * Vp * 4))
    out = pl.pallas_call(
        fc_kernel,
        out_shape=jax.ShapeDtypeStruct((Bp, Vp), jnp.float32),
        grid_spec=fc_grid_spec,
        compiler_params=pltpu.CompilerParams(
            dimension_semantics=("parallel", "parallel"),
            vmem_limit_bytes=vmem_limit),
        cost_estimate=fc_cost,
    )(h_last, w_fc_t, b_fc)

    return out[:B, :V]


# ----------------------------------------------------------------------------
# Pure-JAX f32 reference (PyTorch semantics) for a sanity check.
# ----------------------------------------------------------------------------
def captioning_forward_ref(params, features, captions):
    H = params["w_hh"].shape[1]
    embeddings = jnp.take(params["embed"], captions, axis=0)
    inputs = jnp.concatenate([features[:, None, :], embeddings], axis=1)
    B = inputs.shape[0]
    w_ih_t = params["w_ih"].T
    w_hh_t = params["w_hh"].T
    bias = params["b_ih"] + params["b_hh"]

    def step(carry, x_t):
        h, c = carry
        gates = x_t @ w_ih_t + h @ w_hh_t + bias
        i = jax.nn.sigmoid(gates[:, 0 * H:1 * H])
        f = jax.nn.sigmoid(gates[:, 1 * H:2 * H])
        g = jnp.tanh(gates[:, 2 * H:3 * H])
        o = jax.nn.sigmoid(gates[:, 3 * H:4 * H])
        c = f * c + i * g
        h = o * jnp.tanh(c)
        return (h, c), None

    h0 = jnp.zeros((B, H), jnp.float32)
    c0 = jnp.zeros((B, H), jnp.float32)
    (h_last, _), _ = lax.scan(step, (h0, c0),
                              jnp.transpose(inputs, (1, 0, 2)))
    return h_last @ params["w_fc"].T + params["b_fc"]


if __name__ == "__main__":
    # Small shapes consistent with the module's forward pass.
    embed_size, hidden_size, vocab_size = 32, 32, 128
    batch, seq_len = 2, 8

    key = jax.random.PRNGKey(0)
    k_param, k_feat, k_cap = jax.random.split(key, 3)

    params = init_params(k_param, embed_size, hidden_size, vocab_size)
    features = jax.random.normal(k_feat, (batch, embed_size), jnp.float32)
    captions = jax.random.randint(k_cap, (batch, seq_len), 0, vocab_size,
                                  dtype=jnp.int32)

    out = captioning_forward(params, features, captions)
    out = jax.block_until_ready(out)

    ref = jax.block_until_ready(
        captioning_forward_ref(params, features, captions))
    assert out.shape == (batch, vocab_size)
    # bf16 matmul inputs + bf16-stored gate pre-activations with f32
    # accumulation / state math -> allow bf16-level tolerance.
    assert jnp.allclose(out, ref, atol=3e-2, rtol=3e-2), "mismatch vs reference"

    print("KERNEL_OK")
</pallas_src>

<mosaic_0001>
module attributes {stable_mosaic.version = 11 : i64} {
  func.func @lstm_kernel(%arg0: i32, %arg1: memref<9x8x128xbf16, #tpu.memory_space<vmem>>, %arg2: memref<128x512xbf16, #tpu.memory_space<vmem>>, %arg3: memref<128x512xbf16, #tpu.memory_space<vmem>>, %arg4: memref<1x512xf32, #tpu.memory_space<vmem>>, %arg5: memref<8x128xf32, #tpu.memory_space<vmem>>, %arg6: memref<9x8x512xbf16, #tpu.memory_space<vmem>>) attributes {dimension_semantics = [#tpu.dimension_semantics<parallel>], iteration_bounds = array<i64: 1>, scalar_prefetch = 0 : i64, scratch_operands = 1 : i64, tpu.core_type = #tpu.core_type<tc>, window_params = [{transform_indices = @transform_0, window_bounds = array<i64: 9, 8, 128>}, {pipeline_mode = #tpu.pipeline_mode<synchronous>, transform_indices = @transform_1, window_bounds = array<i64: 128, 512>}, {pipeline_mode = #tpu.pipeline_mode<synchronous>, transform_indices = @transform_2, window_bounds = array<i64: 128, 512>}, {pipeline_mode = #tpu.pipeline_mode<synchronous>, transform_indices = @transform_3, window_bounds = array<i64: 1, 512>}, {transform_indices = @transform_4, window_bounds = array<i64: 8, 128>}]} {
    %c0 = arith.constant 0 : index
    %c0_0 = arith.constant 0 : index
    %c0_1 = arith.constant 0 : index
    %0 = vector.load %arg1[%c0, %c0_0, %c0_1] : memref<9x8x128xbf16, #tpu.memory_space<vmem>>, vector<9x8x128xbf16>
    %1 = vector.shape_cast %0 : vector<9x8x128xbf16> to vector<72x128xbf16>
    %c0_2 = arith.constant 0 : index
    %c0_3 = arith.constant 0 : index
    %2 = vector.load %arg2[%c0_2, %c0_3] : memref<128x512xbf16, #tpu.memory_space<vmem>>, vector<128x512xbf16>
    %cst = arith.constant dense<0.000000e+00> : vector<72x512xf32>
    %3 = tpu.matmul %1, %2, %cst {dimension_numbers = #tpu.dot_dimension_numbers<[1], [0], [0], [1], [0, 0, 1, 1], [], []>} : vector<72x128xbf16>, vector<128x512xbf16>, vector<72x512xf32> -> vector<72x512xf32>
    %4 = vector.shape_cast %3 : vector<72x512xf32> to vector<9x8x512xf32>
    %c0_4 = arith.constant 0 : index
    %c0_5 = arith.constant 0 : index
    %5 = vector.load %arg4[%c0_4, %c0_5] : memref<1x512xf32, #tpu.memory_space<vmem>>, vector<1x512xf32>
    %6 = vector.shape_cast %5 : vector<1x512xf32> to vector<1x1x512xf32>
    %7 = vector.broadcast %6 : vector<1x1x512xf32> to vector<9x8x512xf32>
    %8 = arith.addf %4, %7 : vector<9x8x512xf32>
    %9 = arith.truncf %8 : vector<9x8x512xf32> to vector<9x8x512xbf16>
    %c0_6 = arith.constant 0 : index
    %c0_7 = arith.constant 0 : index
    %c0_8 = arith.constant 0 : index
    %10 = vector.load %arg6[%c0_6, %c0_7, %c0_8] : memref<9x8x512xbf16, #tpu.memory_space<vmem>>, vector<9x8x512xbf16>
    tpu.vector_store %arg6[%c0_6, %c0_7, %c0_8], %9 {strides = array<i32>} : memref<9x8x512xbf16, #tpu.memory_space<vmem>>, vector<9x8x512xbf16>,
    %c0_9 = arith.constant 0 : index
    %c0_10 = arith.constant 0 : index
    %11 = vector.load %arg3[%c0_9, %c0_10] : memref<128x512xbf16, #tpu.memory_space<vmem>>, vector<128x128xbf16>
    %c0_11 = arith.constant 0 : index
    %c128 = arith.constant 128 : index
    %12 = vector.load %arg3[%c0_11, %c128] : memref<128x512xbf16, #tpu.memory_space<vmem>>, vector<128x128xbf16>
    %c0_12 = arith.constant 0 : index
    %c256 = arith.constant 256 : index
    %13 = vector.load %arg3[%c0_12, %c256] : memref<128x512xbf16, #tpu.memory_space<vmem>>, vector<128x128xbf16>
    %c0_13 = arith.constant 0 : index
    %c384 = arith.constant 384 : index
    %14 = vector.load %arg3[%c0_13, %c384] : memref<128x512xbf16, #tpu.memory_space<vmem>>, vector<128x128xbf16>
    %cst_14 = arith.constant 0.000000e+00 : f32
    %15 = vector.broadcast %cst_14 : f32 to vector<8x128xf32>
    %cst_15 = arith.constant 0.000000e+00 : f32
    %16 = vector.broadcast %cst_15 : f32 to vector<8x128xf32>
    %c0_i32 = arith.constant 0 : i32
    %17 = arith.truncf %15 : vector<8x128xf32> to vector<8x128xbf16>
    %18 = arith.index_cast %c0_i32 : i32 to index
    %c0_16 = arith.constant 0 : index
    %c0_17 = arith.constant 0 : index
    %19 = vector.load %arg6[%18, %c0_16, %c0_17] : memref<9x8x512xbf16, #tpu.memory_space<vmem>>, vector<1x8x512xbf16>
    %20 = vector.shape_cast %19 : vector<1x8x512xbf16> to vector<8x512xbf16>
    %21 = vector.extract_strided_slice %20 {offsets = [0, 0], sizes = [8, 128], strides = [1, 1]} : vector<8x512xbf16> to vector<8x128xbf16>
    %22 = arith.extf %21 : vector<8x128xbf16> to vector<8x128xf32>
    %cst_18 = arith.constant dense<0.000000e+00> : vector<8x128xf32>
    %23 = tpu.matmul %17, %11, %cst_18 {dimension_numbers = #tpu.dot_dimension_numbers<[1], [0], [0], [1], [0, 0, 1, 1], [], []>} : vector<8x128xbf16>, vector<128x128xbf16>, vector<8x128xf32> -> vector<8x128xf32>
    %24 = arith.addf %22, %23 : vector<8x128xf32>
    %25 = arith.negf %24 : vector<8x128xf32>
    %26 = math.exp %25 : vector<8x128xf32>
    %cst_19 = arith.constant 1.000000e+00 : f32
    %27 = vector.broadcast %cst_19 : f32 to vector<8x128xf32>
    %28 = arith.addf %27, %26 : vector<8x128xf32>
    %29 = arith.divf %27, %28 : vector<8x128xf32>
    %30 = vector.extract_strided_slice %20 {offsets = [0, 128], sizes = [8, 128], strides = [1, 1]} : vector<8x512xbf16> to vector<8x128xbf16>
    %31 = arith.extf %30 : vector<8x128xbf16> to vector<8x128xf32>
    %cst_20 = arith.constant dense<0.000000e+00> : vector<8x128xf32>
    %32 = tpu.matmul %17, %12, %cst_20 {dimension_numbers = #tpu.dot_dimension_numbers<[1], [0], [0], [1], [0, 0, 1, 1], [], []>} : vector<8x128xbf16>, vector<128x128xbf16>, vector<8x128xf32> -> vector<8x128xf32>
    %33 = arith.addf %31, %32 : vector<8x128xf32>
    %34 = arith.negf %33 : vector<8x128xf32>
    %35 = math.exp %34 : vector<8x128xf32>
    %cst_21 = arith.constant 1.000000e+00 : f32
    %36 = vector.broadcast %cst_21 : f32 to vector<8x128xf32>
    %37 = arith.addf %36, %35 : vector<8x128xf32>
    %38 = arith.divf %36, %37 : vector<8x128xf32>
    %39 = vector.extract_strided_slice %20 {offsets = [0, 256], sizes = [8, 128], strides = [1, 1]} : vector<8x512xbf16> to vector<8x128xbf16>
    %40 = arith.extf %39 : vector<8x128xbf16> to vector<8x128xf32>
    %cst_22 = arith.constant dense<0.000000e+00> : vector<8x128xf32>
    %41 = tpu.matmul %17, %13, %cst_22 {dimension_numbers = #tpu.dot_dimension_numbers<[1], [0], [0], [1], [0, 0, 1, 1], [], []>} : vector<8x128xbf16>, vector<128x128xbf16>, vector<8x128xf32> -> vector<8x128xf32>
    %42 = arith.addf %40, %41 : vector<8x128xf32>
    %43 = math.tanh %42 : vector<8x128xf32>
    %44 = vector.extract_strided_slice %20 {offsets = [0, 384], sizes = [8, 128], strides = [1, 1]} : vector<8x512xbf16> to vector<8x128xbf16>
    %45 = arith.extf %44 : vector<8x128xbf16> to vector<8x128xf32>
    %cst_23 = arith.constant dense<0.000000e+00> : vector<8x128xf32>
    %46 = tpu.matmul %17, %14, %cst_23 {dimension_numbers = #tpu.dot_dimension_numbers<[1], [0], [0], [1], [0, 0, 1, 1], [], []>} : vector<8x128xbf16>, vector<128x128xbf16>, vector<8x128xf32> -> vector<8x128xf32>
    %47 = arith.addf %45, %46 : vector<8x128xf32>
    %48 = arith.negf %47 : vector<8x128xf32>
    %49 = math.exp %48 : vector<8x128xf32>
    %cst_24 = arith.constant 1.000000e+00 : f32
    %50 = vector.broadcast %cst_24 : f32 to vector<8x128xf32>
    %51 = arith.addf %50, %49 : vector<8x128xf32>
    %52 = arith.divf %50, %51 : vector<8x128xf32>
    %53 = arith.mulf %38, %16 : vector<8x128xf32>
    %54 = arith.mulf %29, %43 : vector<8x128xf32>
    %55 = arith.addf %53, %54 : vector<8x128xf32>
    %56 = math.tanh %55 : vector<8x128xf32>
    %57 = arith.mulf %52, %56 : vector<8x128xf32>
    %c1_i32 = arith.constant 1 : i32
    %58 = arith.truncf %57 : vector<8x128xf32> to vector<8x128xbf16>
    %59 = arith.index_cast %c1_i32 : i32 to index
    %c0_25 = arith.constant 0 : index
    %c0_26 = arith.constant 0 : index
    %60 = vector.load %arg6[%59, %c0_25, %c0_26] : memref<9x8x512xbf16, #tpu.memory_space<vmem>>, vector<1x8x512xbf16>
    %61 = vector.shape_cast %60 : vector<1x8x512xbf16> to vector<8x512xbf16>
    %62 = vector.extract_strided_slice %61 {offsets = [0, 0], sizes = [8, 128], strides = [1, 1]} : vector<8x512xbf16> to vector<8x128xbf16>
    %63 = arith.extf %62 : vector<8x128xbf16> to vector<8x128xf32>
    %cst_27 = arith.constant dense<0.000000e+00> : vector<8x128xf32>
    %64 = tpu.matmul %58, %11, %cst_27 {dimension_numbers = #tpu.dot_dimension_numbers<[1], [0], [0], [1], [0, 0, 1, 1], [], []>} : vector<8x128xbf16>, vector<128x128xbf16>, vector<8x128xf32> -> vector<8x128xf32>
    %65 = arith.addf %63, %64 : vector<8x128xf32>
    %66 = arith.negf %65 : vector<8x128xf32>
    %67 = math.exp %66 : vector<8x128xf32>
    %cst_28 = arith.constant 1.000000e+00 : f32
    %68 = vector.broadcast %cst_28 : f32 to vector<8x128xf32>
    %69 = arith.addf %68, %67 : vector<8x128xf32>
    %70 = arith.divf %68, %69 : vector<8x128xf32>
    %71 = vector.extract_strided_slice %61 {offsets = [0, 128], sizes = [8, 128], strides = [1, 1]} : vector<8x512xbf16> to vector<8x128xbf16>
    %72 = arith.extf %71 : vector<8x128xbf16> to vector<8x128xf32>
    %cst_29 = arith.constant dense<0.000000e+00> : vector<8x128xf32>
    %73 = tpu.matmul %58, %12, %cst_29 {dimension_numbers = #tpu.dot_dimension_numbers<[1], [0], [0], [1], [0, 0, 1, 1], [], []>} : vector<8x128xbf16>, vector<128x128xbf16>, vector<8x128xf32> -> vector<8x128xf32>
    %74 = arith.addf %72, %73 : vector<8x128xf32>
    %75 = arith.negf %74 : vector<8x128xf32>
    %76 = math.exp %75 : vector<8x128xf32>
    %cst_30 = arith.constant 1.000000e+00 : f32
    %77 = vector.broadcast %cst_30 : f32 to vector<8x128xf32>
    %78 = arith.addf %77, %76 : vector<8x128xf32>
    %79 = arith.divf %77, %78 : vector<8x128xf32>
    %80 = vector.extract_strided_slice %61 {offsets = [0, 256], sizes = [8, 128], strides = [1, 1]} : vector<8x512xbf16> to vector<8x128xbf16>
    %81 = arith.extf %80 : vector<8x128xbf16> to vector<8x128xf32>
    %cst_31 = arith.constant dense<0.000000e+00> : vector<8x128xf32>
    %82 = tpu.matmul %58, %13, %cst_31 {dimension_numbers = #tpu.dot_dimension_numbers<[1], [0], [0], [1], [0, 0, 1, 1], [], []>} : vector<8x128xbf16>, vector<128x128xbf16>, vector<8x128xf32> -> vector<8x128xf32>
    %83 = arith.addf %81, %82 : vector<8x128xf32>
    %84 = math.tanh %83 : vector<8x128xf32>
    %85 = vector.extract_strided_slice %61 {offsets = [0, 384], sizes = [8, 128], strides = [1, 1]} : vector<8x512xbf16> to vector<8x128xbf16>
    %86 = arith.extf %85 : vector<8x128xbf16> to vector<8x128xf32>
    %cst_32 = arith.constant dense<0.000000e+00> : vector<8x128xf32>
    %87 = tpu.matmul %58, %14, %cst_32 {dimension_numbers = #tpu.dot_dimension_numbers<[1], [0], [0], [1], [0, 0, 1, 1], [], []>} : vector<8x128xbf16>, vector<128x128xbf16>, vector<8x128xf32> -> vector<8x128xf32>
    %88 = arith.addf %86, %87 : vector<8x128xf32>
    %89 = arith.negf %88 : vector<8x128xf32>
    %90 = math.exp %89 : vector<8x128xf32>
    %cst_33 = arith.constant 1.000000e+00 : f32
    %91 = vector.broadcast %cst_33 : f32 to vector<8x128xf32>
    %92 = arith.addf %91, %90 : vector<8x128xf32>
    %93 = arith.divf %91, %92 : vector<8x128xf32>
    %94 = arith.mulf %79, %55 : vector<8x128xf32>
    %95 = arith.mulf %70, %84 : vector<8x128xf32>
    %96 = arith.addf %94, %95 : vector<8x128xf32>
    %97 = math.tanh %96 : vector<8x128xf32>
    %98 = arith.mulf %93, %97 : vector<8x128xf32>
    %c2_i32 = arith.constant 2 : i32
    %99 = arith.truncf %98 : vector<8x128xf32> to vector<8x128xbf16>
    %100 = arith.index_cast %c2_i32 : i32 to index
    %c0_34 = arith.constant 0 : index
    %c0_35 = arith.constant 0 : index
    %101 = vector.load %arg6[%100, %c0_34, %c0_35] : memref<9x8x512xbf16, #tpu.memory_space<vmem>>, vector<1x8x512xbf16>
    %102 = vector.shape_cast %101 : vector<1x8x512xbf16> to vector<8x512xbf16>
    %103 = vector.extract_strided_slice %102 {offsets = [0, 0], sizes = [8, 128], strides = [1, 1]} : vector<8x512xbf16> to vector<8x128xbf16>
    %104 = arith.extf %103 : vector<8x128xbf16> to vector<8x128xf32>
    %cst_36 = arith.constant dense<0.000000e+00> : vector<8x128xf32>
    %105 = tpu.matmul %99, %11, %cst_36 {dimension_numbers = #tpu.dot_dimension_numbers<[1], [0], [0], [1], [0, 0, 1, 1], [], []>} : vector<8x128xbf16>, vector<128x128xbf16>, vector<8x128xf32> -> vector<8x128xf32>
    %106 = arith.addf %104, %105 : vector<8x128xf32>
    %107 = arith.negf %106 : vector<8x128xf32>
    %108 = math.exp %107 : vector<8x128xf32>
    %cst_37 = arith.constant 1.000000e+00 : f32
    %109 = vector.broadcast %cst_37 : f32 to vector<8x128xf32>
    %110 = arith.addf %109, %108 : vector<8x128xf32>
    %111 = arith.divf %109, %110 : vector<8x128xf32>
    %112 = vector.extract_strided_slice %102 {offsets = [0, 128], sizes = [8, 128], strides = [1, 1]} : vector<8x512xbf16> to vector<8x128xbf16>
    %113 = arith.extf %112 : vector<8x128xbf16> to vector<8x128xf32>
    %cst_38 = arith.constant dense<0.000000e+00> : vector<8x128xf32>
    %114 = tpu.matmul %99, %12, %cst_38 {dimension_numbers = #tpu.dot_dimension_numbers<[1], [0], [0], [1], [0, 0, 1, 1], [], []>} : vector<8x128xbf16>, vector<128x128xbf16>, vector<8x128xf32> -> vector<8x128xf32>
    %115 = arith.addf %113, %114 : vector<8x128xf32>
    %116 = arith.negf %115 : vector<8x128xf32>
    %117 = math.exp %116 : vector<8x128xf32>
    %cst_39 = arith.constant 1.000000e+00 : f32
    %118 = vector.broadcast %cst_39 : f32 to vector<8x128xf32>
    %119 = arith.addf %118, %117 : vector<8x128xf32>
    %120 = arith.divf %118, %119 : vector<8x128xf32>
    %121 = vector.extract_strided_slice %102 {offsets = [0, 256], sizes = [8, 128], strides = [1, 1]} : vector<8x512xbf16> to vector<8x128xbf16>
    %122 = arith.extf %121 : vector<8x128xbf16> to vector<8x128xf32>
    %cst_40 = arith.constant dense<0.000000e+00> : vector<8x128xf32>
    %123 = tpu.matmul %99, %13, %cst_40 {dimension_numbers = #tpu.dot_dimension_numbers<[1], [0], [0], [1], [0, 0, 1, 1], [], []>} : vector<8x128xbf16>, vector<128x128xbf16>, vector<8x128xf32> -> vector<8x128xf32>
    %124 = arith.addf %122, %123 : vector<8x128xf32>
    %125 = math.tanh %124 : vector<8x128xf32>
    %126 = vector.extract_strided_slice %102 {offsets = [0, 384], sizes = [8, 128], strides = [1, 1]} : vector<8x512xbf16> to vector<8x128xbf16>
    %127 = arith.extf %126 : vector<8x128xbf16> to vector<8x128xf32>
    %cst_41 = arith.constant dense<0.000000e+00> : vector<8x128xf32>
    %128 = tpu.matmul %99, %14, %cst_41 {dimension_numbers = #tpu.dot_dimension_numbers<[1], [0], [0], [1], [0, 0, 1, 1], [], []>} : vector<8x128xbf16>, vector<128x128xbf16>, vector<8x128xf32> -> vector<8x128xf32>
    %129 = arith.addf %127, %128 : vector<8x128xf32>
    %130 = arith.negf %129 : vector<8x128xf32>
    %131 = math.exp %130 : vector<8x128xf32>
    %cst_42 = arith.constant 1.000000e+00 : f32
    %132 = vector.broadcast %cst_42 : f32 to vector<8x128xf32>
    %133 = arith.addf %132, %131 : vector<8x128xf32>
    %134 = arith.divf %132, %133 : vector<8x128xf32>
    %135 = arith.mulf %120, %96 : vector<8x128xf32>
    %136 = arith.mulf %111, %125 : vector<8x128xf32>
    %137 = arith.addf %135, %136 : vector<8x128xf32>
    %138 = math.tanh %137 : vector<8x128xf32>
    %139 = arith.mulf %134, %138 : vector<8x128xf32>
    %c3_i32 = arith.constant 3 : i32
    %140 = arith.truncf %139 : vector<8x128xf32> to vector<8x128xbf16>
    %141 = arith.index_cast %c3_i32 : i32 to index
    %c0_43 = arith.constant 0 : index
    %c0_44 = arith.constant 0 : index
    %142 = vector.load %arg6[%141, %c0_43, %c0_44] : memref<9x8x512xbf16, #tpu.memory_space<vmem>>, vector<1x8x512xbf16>
    %143 = vector.shape_cast %142 : vector<1x8x512xbf16> to vector<8x512xbf16>
    %144 = vector.extract_strided_slice %143 {offsets = [0, 0], sizes = [8, 128], strides = [1, 1]} : vector<8x512xbf16> to vector<8x128xbf16>
    %145 = arith.extf %144 : vector<8x128xbf16> to vector<8x128xf32>
    %cst_45 = arith.constant dense<0.000000e+00> : vector<8x128xf32>
    %146 = tpu.matmul %140, %11, %cst_45 {dimension_numbers = #tpu.dot_dimension_numbers<[1], [0], [0], [1], [0, 0, 1, 1], [], []>} : vector<8x128xbf16>, vector<128x128xbf16>, vector<8x128xf32> -> vector<8x128xf32>
    %147 = arith.addf %145, %146 : vector<8x128xf32>
    %148 = arith.negf %147 : vector<8x128xf32>
    %149 = math.exp %148 : vector<8x128xf32>
    %cst_46 = arith.constant 1.000000e+00 : f32
    %150 = vector.broadcast %cst_46 : f32 to vector<8x128xf32>
    %151 = arith.addf %150, %149 : vector<8x128xf32>
    %152 = arith.divf %150, %151 : vector<8x128xf32>
    %153 = vector.extract_strided_slice %143 {offsets = [0, 128], sizes = [8, 128], strides = [1, 1]} : vector<8x512xbf16> to vector<8x128xbf16>
    %154 = arith.extf %153 : vector<8x128xbf16> to vector<8x128xf32>
    %cst_47 = arith.constant dense<0.000000e+00> : vector<8x128xf32>
    %155 = tpu.matmul %140, %12, %cst_47 {dimension_numbers = #tpu.dot_dimension_numbers<[1], [0], [0], [1], [0, 0, 1, 1], [], []>} : vector<8x128xbf16>, vector<128x128xbf16>, vector<8x128xf32> -> vector<8x128xf32>
    %156 = arith.addf %154, %155 : vector<8x128xf32>
    %157 = arith.negf %156 : vector<8x128xf32>
    %158 = math.exp %157 : vector<8x128xf32>
    %cst_48 = arith.constant 1.000000e+00 : f32
    %159 = vector.broadcast %cst_48 : f32 to vector<8x128xf32>
    %160 = arith.addf %159, %158 : vector<8x128xf32>
    %161 = arith.divf %159, %160 : vector<8x128xf32>
    %162 = vector.extract_strided_slice %143 {offsets = [0, 256], sizes = [8, 128], strides = [1, 1]} : vector<8x512xbf16> to vector<8x128xbf16>
    %163 = arith.extf %162 : vector<8x128xbf16> to vector<8x128xf32>
    %cst_49 = arith.constant dense<0.000000e+00> : vector<8x128xf32>
    %164 = tpu.matmul %140, %13, %cst_49 {dimension_numbers = #tpu.dot_dimension_numbers<[1], [0], [0], [1], [0, 0, 1, 1], [], []>} : vector<8x128xbf16>, vector<128x128xbf16>, vector<8x128xf32> -> vector<8x128xf32>
    %165 = arith.addf %163, %164 : vector<8x128xf32>
    %166 = math.tanh %165 : vector<8x128xf32>
    %167 = vector.extract_strided_slice %143 {offsets = [0, 384], sizes = [8, 128], strides = [1, 1]} : vector<8x512xbf16> to vector<8x128xbf16>
    %168 = arith.extf %167 : vector<8x128xbf16> to vector<8x128xf32>
    %cst_50 = arith.constant dense<0.000000e+00> : vector<8x128xf32>
    %169 = tpu.matmul %140, %14, %cst_50 {dimension_numbers = #tpu.dot_dimension_numbers<[1], [0], [0], [1], [0, 0, 1, 1], [], []>} : vector<8x128xbf16>, vector<128x128xbf16>, vector<8x128xf32> -> vector<8x128xf32>
    %170 = arith.addf %168, %169 : vector<8x128xf32>
    %171 = arith.negf %170 : vector<8x128xf32>
    %172 = math.exp %171 : vector<8x128xf32>
    %cst_51 = arith.constant 1.000000e+00 : f32
    %173 = vector.broadcast %cst_51 : f32 to vector<8x128xf32>
    %174 = arith.addf %173, %172 : vector<8x128xf32>
    %175 = arith.divf %173, %174 : vector<8x128xf32>
    %176 = arith.mulf %161, %137 : vector<8x128xf32>
    %177 = arith.mulf %152, %166 : vector<8x128xf32>
    %178 = arith.addf %176, %177 : vector<8x128xf32>
    %179 = math.tanh %178 : vector<8x128xf32>
    %180 = arith.mulf %175, %179 : vector<8x128xf32>
    %c4_i32 = arith.constant 4 : i32
    %181 = arith.truncf %180 : vector<8x128xf32> to vector<8x128xbf16>
    %182 = arith.index_cast %c4_i32 : i32 to index
    %c0_52 = arith.constant 0 : index
    %c0_53 = arith.constant 0 : index
    %183 = vector.load %arg6[%182, %c0_52, %c0_53] : memref<9x8x512xbf16, #tpu.memory_space<vmem>>, vector<1x8x512xbf16>
    %184 = vector.shape_cast %183 : vector<1x8x512xbf16> to vector<8x512xbf16>
    %185 = vector.extract_strided_slice %184 {offsets = [0, 0], sizes = [8, 128], strides = [1, 1]} : vector<8x512xbf16> to vector<8x128xbf16>
    %186 = arith.extf %185 : vector<8x128xbf16> to vector<8x128xf32>
    %cst_54 = arith.constant dense<0.000000e+00> : vector<8x128xf32>
    %187 = tpu.matmul %181, %11, %cst_54 {dimension_numbers = #tpu.dot_dimension_numbers<[1], [0], [0], [1], [0, 0, 1, 1], [], []>} : vector<8x128xbf16>, vector<128x128xbf16>, vector<8x128xf32> -> vector<8x128xf32>
    %188 = arith.addf %186, %187 : vector<8x128xf32>
    %189 = arith.negf %188 : vector<8x128xf32>
    %190 = math.exp %189 : vector<8x128xf32>
    %cst_55 = arith.constant 1.000000e+00 : f32
    %191 = vector.broadcast %cst_55 : f32 to vector<8x128xf32>
    %192 = arith.addf %191, %190 : vector<8x128xf32>
    %193 = arith.divf %191, %192 : vector<8x128xf32>
    %194 = vector.extract_strided_slice %184 {offsets = [0, 128], sizes = [8, 128], strides = [1, 1]} : vector<8x512xbf16> to vector<8x128xbf16>
    %195 = arith.extf %194 : vector<8x128xbf16> to vector<8x128xf32>
    %cst_56 = arith.constant dense<0.000000e+00> : vector<8x128xf32>
    %196 = tpu.matmul %181, %12, %cst_56 {dimension_numbers = #tpu.dot_dimension_numbers<[1], [0], [0], [1], [0, 0, 1, 1], [], []>} : vector<8x128xbf16>, vector<128x128xbf16>, vector<8x128xf32> -> vector<8x128xf32>
    %197 = arith.addf %195, %196 : vector<8x128xf32>
    %198 = arith.negf %197 : vector<8x128xf32>
    %199 = math.exp %198 : vector<8x128xf32>
    %cst_57 = arith.constant 1.000000e+00 : f32
    %200 = vector.broadcast %cst_57 : f32 to vector<8x128xf32>
    %201 = arith.addf %200, %199 : vector<8x128xf32>
    %202 = arith.divf %200, %201 : vector<8x128xf32>
    %203 = vector.extract_strided_slice %184 {offsets = [0, 256], sizes = [8, 128], strides = [1, 1]} : vector<8x512xbf16> to vector<8x128xbf16>
    %204 = arith.extf %203 : vector<8x128xbf16> to vector<8x128xf32>
    %cst_58 = arith.constant dense<0.000000e+00> : vector<8x128xf32>
    %205 = tpu.matmul %181, %13, %cst_58 {dimension_numbers = #tpu.dot_dimension_numbers<[1], [0], [0], [1], [0, 0, 1, 1], [], []>} : vector<8x128xbf16>, vector<128x128xbf16>, vector<8x128xf32> -> vector<8x128xf32>
    %206 = arith.addf %204, %205 : vector<8x128xf32>
    %207 = math.tanh %206 : vector<8x128xf32>
    %208 = vector.extract_strided_slice %184 {offsets = [0, 384], sizes = [8, 128], strides = [1, 1]} : vector<8x512xbf16> to vector<8x128xbf16>
    %209 = arith.extf %208 : vector<8x128xbf16> to vector<8x128xf32>
    %cst_59 = arith.constant dense<0.000000e+00> : vector<8x128xf32>
    %210 = tpu.matmul %181, %14, %cst_59 {dimension_numbers = #tpu.dot_dimension_numbers<[1], [0], [0], [1], [0, 0, 1, 1], [], []>} : vector<8x128xbf16>, vector<128x128xbf16>, vector<8x128xf32> -> vector<8x128xf32>
    %211 = arith.addf %209, %210 : vector<8x128xf32>
    %212 = arith.negf %211 : vector<8x128xf32>
    %213 = math.exp %212 : vector<8x128xf32>
    %cst_60 = arith.constant 1.000000e+00 : f32
    %214 = vector.broadcast %cst_60 : f32 to vector<8x128xf32>
    %215 = arith.addf %214, %213 : vector<8x128xf32>
    %216 = arith.divf %214, %215 : vector<8x128xf32>
    %217 = arith.mulf %202, %178 : vector<8x128xf32>
    %218 = arith.mulf %193, %207 : vector<8x128xf32>
    %219 = arith.addf %217, %218 : vector<8x128xf32>
    %220 = math.tanh %219 : vector<8x128xf32>
    %221 = arith.mulf %216, %220 : vector<8x128xf32>
    %c5_i32 = arith.constant 5 : i32
    %222 = arith.truncf %221 : vector<8x128xf32> to vector<8x128xbf16>
    %223 = arith.index_cast %c5_i32 : i32 to index
    %c0_61 = arith.constant 0 : index
    %c0_62 = arith.constant 0 : index
    %224 = vector.load %arg6[%223, %c0_61, %c0_62] : memref<9x8x512xbf16, #tpu.memory_space<vmem>>, vector<1x8x512xbf16>
    %225 = vector.shape_cast %224 : vector<1x8x512xbf16> to vector<8x512xbf16>
    %226 = vector.extract_strided_slice %225 {offsets = [0, 0], sizes = [8, 128], strides = [1, 1]} : vector<8x512xbf16> to vector<8x128xbf16>
    %227 = arith.extf %226 : vector<8x128xbf16> to vector<8x128xf32>
    %cst_63 = arith.constant dense<0.000000e+00> : vector<8x128xf32>
    %228 = tpu.matmul %222, %11, %cst_63 {dimension_numbers = #tpu.dot_dimension_numbers<[1], [0], [0], [1], [0, 0, 1, 1], [], []>} : vector<8x128xbf16>, vector<128x128xbf16>, vector<8x128xf32> -> vector<8x128xf32>
    %229 = arith.addf %227, %228 : vector<8x128xf32>
    %230 = arith.negf %229 : vector<8x128xf32>
    %231 = math.exp %230 : vector<8x128xf32>
    %cst_64 = arith.constant 1.000000e+00 : f32
    %232 = vector.broadcast %cst_64 : f32 to vector<8x128xf32>
    %233 = arith.addf %232, %231 : vector<8x128xf32>
    %234 = arith.divf %232, %233 : vector<8x128xf32>
    %235 = vector.extract_strided_slice %225 {offsets = [0, 128], sizes = [8, 128], strides = [1, 1]} : vector<8x512xbf16> to vector<8x128xbf16>
    %236 = arith.extf %235 : vector<8x128xbf16> to vector<8x128xf32>
    %cst_65 = arith.constant dense<0.000000e+00> : vector<8x128xf32>
    %237 = tpu.matmul %222, %12, %cst_65 {dimension_numbers = #tpu.dot_dimension_numbers<[1], [0], [0], [1], [0, 0, 1, 1], [], []>} : vector<8x128xbf16>, vector<128x128xbf16>, vector<8x128xf32> -> vector<8x128xf32>
    %238 = arith.addf %236, %237 : vector<8x128xf32>
    %239 = arith.negf %238 : vector<8x128xf32>
    %240 = math.exp %239 : vector<8x128xf32>
    %cst_66 = arith.constant 1.000000e+00 : f32
    %241 = vector.broadcast %cst_66 : f32 to vector<8x128xf32>
    %242 = arith.addf %241, %240 : vector<8x128xf32>
    %243 = arith.divf %241, %242 : vector<8x128xf32>
    %244 = vector.extract_strided_slice %225 {offsets = [0, 256], sizes = [8, 128], strides = [1, 1]} : vector<8x512xbf16> to vector<8x128xbf16>
    %245 = arith.extf %244 : vector<8x128xbf16> to vector<8x128xf32>
    %cst_67 = arith.constant dense<0.000000e+00> : vector<8x128xf32>
    %246 = tpu.matmul %222, %13, %cst_67 {dimension_numbers = #tpu.dot_dimension_numbers<[1], [0], [0], [1], [0, 0, 1, 1], [], []>} : vector<8x128xbf16>, vector<128x128xbf16>, vector<8x128xf32> -> vector<8x128xf32>
    %247 = arith.addf %245, %246 : vector<8x128xf32>
    %248 = math.tanh %247 : vector<8x128xf32>
    %249 = vector.extract_strided_slice %225 {offsets = [0, 384], sizes = [8, 128], strides = [1, 1]} : vector<8x512xbf16> to vector<8x128xbf16>
    %250 = arith.extf %249 : vector<8x128xbf16> to vector<8x128xf32>
    %cst_68 = arith.constant dense<0.000000e+00> : vector<8x128xf32>
    %251 = tpu.matmul %222, %14, %cst_68 {dimension_numbers = #tpu.dot_dimension_numbers<[1], [0], [0], [1], [0, 0, 1, 1], [], []>} : vector<8x128xbf16>, vector<128x128xbf16>, vector<8x128xf32> -> vector<8x128xf32>
    %252 = arith.addf %250, %251 : vector<8x128xf32>
    %253 = arith.negf %252 : vector<8x128xf32>
    %254 = math.exp %253 : vector<8x128xf32>
    %cst_69 = arith.constant 1.000000e+00 : f32
    %255 = vector.broadcast %cst_69 : f32 to vector<8x128xf32>
    %256 = arith.addf %255, %254 : vector<8x128xf32>
    %257 = arith.divf %255, %256 : vector<8x128xf32>
    %258 = arith.mulf %243, %219 : vector<8x128xf32>
    %259 = arith.mulf %234, %248 : vector<8x128xf32>
    %260 = arith.addf %258, %259 : vector<8x128xf32>
    %261 = math.tanh %260 : vector<8x128xf32>
    %262 = arith.mulf %257, %261 : vector<8x128xf32>
    %c6_i32 = arith.constant 6 : i32
    %263 = arith.truncf %262 : vector<8x128xf32> to vector<8x128xbf16>
    %264 = arith.index_cast %c6_i32 : i32 to index
    %c0_70 = arith.constant 0 : index
    %c0_71 = arith.constant 0 : index
    %265 = vector.load %arg6[%264, %c0_70, %c0_71] : memref<9x8x512xbf16, #tpu.memory_space<vmem>>, vector<1x8x512xbf16>
    %266 = vector.shape_cast %265 : vector<1x8x512xbf16> to vector<8x512xbf16>
    %267 = vector.extract_strided_slice %266 {offsets = [0, 0], sizes = [8, 128], strides = [1, 1]} : vector<8x512xbf16> to vector<8x128xbf16>
    %268 = arith.extf %267 : vector<8x128xbf16> to vector<8x128xf32>
    %cst_72 = arith.constant dense<0.000000e+00> : vector<8x128xf32>
    %269 = tpu.matmul %263, %11, %cst_72 {dimension_numbers = #tpu.dot_dimension_numbers<[1], [0], [0], [1], [0, 0, 1, 1], [], []>} : vector<8x128xbf16>, vector<128x128xbf16>, vector<8x128xf32> -> vector<8x128xf32>
    %270 = arith.addf %268, %269 : vector<8x128xf32>
    %271 = arith.negf %270 : vector<8x128xf32>
    %272 = math.exp %271 : vector<8x128xf32>
    %cst_73 = arith.constant 1.000000e+00 : f32
    %273 = vector.broadcast %cst_73 : f32 to vector<8x128xf32>
    %274 = arith.addf %273, %272 : vector<8x128xf32>
    %275 = arith.divf %273, %274 : vector<8x128xf32>
    %276 = vector.extract_strided_slice %266 {offsets = [0, 128], sizes = [8, 128], strides = [1, 1]} : vector<8x512xbf16> to vector<8x128xbf16>
    %277 = arith.extf %276 : vector<8x128xbf16> to vector<8x128xf32>
    %cst_74 = arith.constant dense<0.000000e+00> : vector<8x128xf32>
    %278 = tpu.matmul %263, %12, %cst_74 {dimension_numbers = #tpu.dot_dimension_numbers<[1], [0], [0], [1], [0, 0, 1, 1], [], []>} : vector<8x128xbf16>, vector<128x128xbf16>, vector<8x128xf32> -> vector<8x128xf32>
    %279 = arith.addf %277, %278 : vector<8x128xf32>
    %280 = arith.negf %279 : vector<8x128xf32>
    %281 = math.exp %280 : vector<8x128xf32>
    %cst_75 = arith.constant 1.000000e+00 : f32
    %282 = vector.broadcast %cst_75 : f32 to vector<8x128xf32>
    %283 = arith.addf %282, %281 : vector<8x128xf32>
    %284 = arith.divf %282, %283 : vector<8x128xf32>
    %285 = vector.extract_strided_slice %266 {offsets = [0, 256], sizes = [8, 128], strides = [1, 1]} : vector<8x512xbf16> to vector<8x128xbf16>
    %286 = arith.extf %285 : vector<8x128xbf16> to vector<8x128xf32>
    %cst_76 = arith.constant dense<0.000000e+00> : vector<8x128xf32>
    %287 = tpu.matmul %263, %13, %cst_76 {dimension_numbers = #tpu.dot_dimension_numbers<[1], [0], [0], [1], [0, 0, 1, 1], [], []>} : vector<8x128xbf16>, vector<128x128xbf16>, vector<8x128xf32> -> vector<8x128xf32>
    %288 = arith.addf %286, %287 : vector<8x128xf32>
    %289 = math.tanh %288 : vector<8x128xf32>
    %290 = vector.extract_strided_slice %266 {offsets = [0, 384], sizes = [8, 128], strides = [1, 1]} : vector<8x512xbf16> to vector<8x128xbf16>
    %291 = arith.extf %290 : vector<8x128xbf16> to vector<8x128xf32>
    %cst_77 = arith.constant dense<0.000000e+00> : vector<8x128xf32>
    %292 = tpu.matmul %263, %14, %cst_77 {dimension_numbers = #tpu.dot_dimension_numbers<[1], [0], [0], [1], [0, 0, 1, 1], [], []>} : vector<8x128xbf16>, vector<128x128xbf16>, vector<8x128xf32> -> vector<8x128xf32>
    %293 = arith.addf %291, %292 : vector<8x128xf32>
    %294 = arith.negf %293 : vector<8x128xf32>
    %295 = math.exp %294 : vector<8x128xf32>
    %cst_78 = arith.constant 1.000000e+00 : f32
    %296 = vector.broadcast %cst_78 : f32 to vector<8x128xf32>
    %297 = arith.addf %296, %295 : vector<8x128xf32>
    %298 = arith.divf %296, %297 : vector<8x128xf32>
    %299 = arith.mulf %284, %260 : vector<8x128xf32>
    %300 = arith.mulf %275, %289 : vector<8x128xf32>
    %301 = arith.addf %299, %300 : vector<8x128xf32>
    %302 = math.tanh %301 : vector<8x128xf32>
    %303 = arith.mulf %298, %302 : vector<8x128xf32>
    %c7_i32 = arith.constant 7 : i32
    %304 = arith.truncf %303 : vector<8x128xf32> to vector<8x128xbf16>
    %305 = arith.index_cast %c7_i32 : i32 to index
    %c0_79 = arith.constant 0 : index
    %c0_80 = arith.constant 0 : index
    %306 = vector.load %arg6[%305, %c0_79, %c0_80] : memref<9x8x512xbf16, #tpu.memory_space<vmem>>, vector<1x8x512xbf16>
    %307 = vector.shape_cast %306 : vector<1x8x512xbf16> to vector<8x512xbf16>
    %308 = vector.extract_strided_slice %307 {offsets = [0, 0], sizes = [8, 128], strides = [1, 1]} : vector<8x512xbf16> to vector<8x128xbf16>
    %309 = arith.extf %308 : vector<8x128xbf16> to vector<8x128xf32>
    %cst_81 = arith.constant dense<0.000000e+00> : vector<8x128xf32>
    %310 = tpu.matmul %304, %11, %cst_81 {dimension_numbers = #tpu.dot_dimension_numbers<[1], [0], [0], [1], [0, 0, 1, 1], [], []>} : vector<8x128xbf16>, vector<128x128xbf16>, vector<8x128xf32> -> vector<8x128xf32>
    %311 = arith.addf %309, %310 : vector<8x128xf32>
    %312 = arith.negf %311 : vector<8x128xf32>
    %313 = math.exp %312 : vector<8x128xf32>
    %cst_82 = arith.constant 1.000000e+00 : f32
    %314 = vector.broadcast %cst_82 : f32 to vector<8x128xf32>
    %315 = arith.addf %314, %313 : vector<8x128xf32>
    %316 = arith.divf %314, %315 : vector<8x128xf32>
    %317 = vector.extract_strided_slice %307 {offsets = [0, 128], sizes = [8, 128], strides = [1, 1]} : vector<8x512xbf16> to vector<8x128xbf16>
    %318 = arith.extf %317 : vector<8x128xbf16> to vector<8x128xf32>
    %cst_83 = arith.constant dense<0.000000e+00> : vector<8x128xf32>
    %319 = tpu.matmul %304, %12, %cst_83 {dimension_numbers = #tpu.dot_dimension_numbers<[1], [0], [0], [1], [0, 0, 1, 1], [], []>} : vector<8x128xbf16>, vector<128x128xbf16>, vector<8x128xf32> -> vector<8x128xf32>
    %320 = arith.addf %318, %319 : vector<8x128xf32>
    %321 = arith.negf %320 : vector<8x128xf32>
    %322 = math.exp %321 : vector<8x128xf32>
    %cst_84 = arith.constant 1.000000e+00 : f32
    %323 = vector.broadcast %cst_84 : f32 to vector<8x128xf32>
    %324 = arith.addf %323, %322 : vector<8x128xf32>
    %325 = arith.divf %323, %324 : vector<8x128xf32>
    %326 = vector.extract_strided_slice %307 {offsets = [0, 256], sizes = [8, 128], strides = [1, 1]} : vector<8x512xbf16> to vector<8x128xbf16>
    %327 = arith.extf %326 : vector<8x128xbf16> to vector<8x128xf32>
    %cst_85 = arith.constant dense<0.000000e+00> : vector<8x128xf32>
    %328 = tpu.matmul %304, %13, %cst_85 {dimension_numbers = #tpu.dot_dimension_numbers<[1], [0], [0], [1], [0, 0, 1, 1], [], []>} : vector<8x128xbf16>, vector<128x128xbf16>, vector<8x128xf32> -> vector<8x128xf32>
    %329 = arith.addf %327, %328 : vector<8x128xf32>
    %330 = math.tanh %329 : vector<8x128xf32>
    %331 = vector.extract_strided_slice %307 {offsets = [0, 384], sizes = [8, 128], strides = [1, 1]} : vector<8x512xbf16> to vector<8x128xbf16>
    %332 = arith.extf %331 : vector<8x128xbf16> to vector<8x128xf32>
    %cst_86 = arith.constant dense<0.000000e+00> : vector<8x128xf32>
    %333 = tpu.matmul %304, %14, %cst_86 {dimension_numbers = #tpu.dot_dimension_numbers<[1], [0], [0], [1], [0, 0, 1, 1], [], []>} : vector<8x128xbf16>, vector<128x128xbf16>, vector<8x128xf32> -> vector<8x128xf32>
    %334 = arith.addf %332, %333 : vector<8x128xf32>
    %335 = arith.negf %334 : vector<8x128xf32>
    %336 = math.exp %335 : vector<8x128xf32>
    %cst_87 = arith.constant 1.000000e+00 : f32
    %337 = vector.broadcast %cst_87 : f32 to vector<8x128xf32>
    %338 = arith.addf %337, %336 : vector<8x128xf32>
    %339 = arith.divf %337, %338 : vector<8x128xf32>
    %340 = arith.mulf %325, %301 : vector<8x128xf32>
    %341 = arith.mulf %316, %330 : vector<8x128xf32>
    %342 = arith.addf %340, %341 : vector<8x128xf32>
    %343 = math.tanh %342 : vector<8x128xf32>
    %344 = arith.mulf %339, %343 : vector<8x128xf32>
    %c8_i32 = arith.constant 8 : i32
    %345 = arith.truncf %344 : vector<8x128xf32> to vector<8x128xbf16>
    %346 = arith.index_cast %c8_i32 : i32 to index
    %c0_88 = arith.constant 0 : index
    %c0_89 = arith.constant 0 : index
    %347 = vector.load %arg6[%346, %c0_88, %c0_89] : memref<9x8x512xbf16, #tpu.memory_space<vmem>>, vector<1x8x512xbf16>
    %348 = vector.shape_cast %347 : vector<1x8x512xbf16> to vector<8x512xbf16>
    %349 = vector.extract_strided_slice %348 {offsets = [0, 0], sizes = [8, 128], strides = [1, 1]} : vector<8x512xbf16> to vector<8x128xbf16>
    %350 = arith.extf %349 : vector<8x128xbf16> to vector<8x128xf32>
    %cst_90 = arith.constant dense<0.000000e+00> : vector<8x128xf32>
    %351 = tpu.matmul %345, %11, %cst_90 {dimension_numbers = #tpu.dot_dimension_numbers<[1], [0], [0], [1], [0, 0, 1, 1], [], []>} : vector<8x128xbf16>, vector<128x128xbf16>, vector<8x128xf32> -> vector<8x128xf32>
    %352 = arith.addf %350, %351 : vector<8x128xf32>
    %353 = arith.negf %352 : vector<8x128xf32>
    %354 = math.exp %353 : vector<8x128xf32>
    %cst_91 = arith.constant 1.000000e+00 : f32
    %355 = vector.broadcast %cst_91 : f32 to vector<8x128xf32>
    %356 = arith.addf %355, %354 : vector<8x128xf32>
    %357 = arith.divf %355, %356 : vector<8x128xf32>
    %358 = vector.extract_strided_slice %348 {offsets = [0, 128], sizes = [8, 128], strides = [1, 1]} : vector<8x512xbf16> to vector<8x128xbf16>
    %359 = arith.extf %358 : vector<8x128xbf16> to vector<8x128xf32>
    %cst_92 = arith.constant dense<0.000000e+00> : vector<8x128xf32>
    %360 = tpu.matmul %345, %12, %cst_92 {dimension_numbers = #tpu.dot_dimension_numbers<[1], [0], [0], [1], [0, 0, 1, 1], [], []>} : vector<8x128xbf16>, vector<128x128xbf16>, vector<8x128xf32> -> vector<8x128xf32>
    %361 = arith.addf %359, %360 : vector<8x128xf32>
    %362 = arith.negf %361 : vector<8x128xf32>
    %363 = math.exp %362 : vector<8x128xf32>
    %cst_93 = arith.constant 1.000000e+00 : f32
    %364 = vector.broadcast %cst_93 : f32 to vector<8x128xf32>
    %365 = arith.addf %364, %363 : vector<8x128xf32>
    %366 = arith.divf %364, %365 : vector<8x128xf32>
    %367 = vector.extract_strided_slice %348 {offsets = [0, 256], sizes = [8, 128], strides = [1, 1]} : vector<8x512xbf16> to vector<8x128xbf16>
    %368 = arith.extf %367 : vector<8x128xbf16> to vector<8x128xf32>
    %cst_94 = arith.constant dense<0.000000e+00> : vector<8x128xf32>
    %369 = tpu.matmul %345, %13, %cst_94 {dimension_numbers = #tpu.dot_dimension_numbers<[1], [0], [0], [1], [0, 0, 1, 1], [], []>} : vector<8x128xbf16>, vector<128x128xbf16>, vector<8x128xf32> -> vector<8x128xf32>
    %370 = arith.addf %368, %369 : vector<8x128xf32>
    %371 = math.tanh %370 : vector<8x128xf32>
    %372 = vector.extract_strided_slice %348 {offsets = [0, 384], sizes = [8, 128], strides = [1, 1]} : vector<8x512xbf16> to vector<8x128xbf16>
    %373 = arith.extf %372 : vector<8x128xbf16> to vector<8x128xf32>
    %cst_95 = arith.constant dense<0.000000e+00> : vector<8x128xf32>
    %374 = tpu.matmul %345, %14, %cst_95 {dimension_numbers = #tpu.dot_dimension_numbers<[1], [0], [0], [1], [0, 0, 1, 1], [], []>} : vector<8x128xbf16>, vector<128x128xbf16>, vector<8x128xf32> -> vector<8x128xf32>
    %375 = arith.addf %373, %374 : vector<8x128xf32>
    %376 = arith.negf %375 : vector<8x128xf32>
    %377 = math.exp %376 : vector<8x128xf32>
    %cst_96 = arith.constant 1.000000e+00 : f32
    %378 = vector.broadcast %cst_96 : f32 to vector<8x128xf32>
    %379 = arith.addf %378, %377 : vector<8x128xf32>
    %380 = arith.divf %378, %379 : vector<8x128xf32>
    %381 = arith.mulf %366, %342 : vector<8x128xf32>
    %382 = arith.mulf %357, %371 : vector<8x128xf32>
    %383 = arith.addf %381, %382 : vector<8x128xf32>
    %384 = math.tanh %383 : vector<8x128xf32>
    %385 = arith.mulf %380, %384 : vector<8x128xf32>
    %c9_i32 = arith.constant 9 : i32
    %c0_97 = arith.constant 0 : index
    %c0_98 = arith.constant 0 : index
    %386 = vector.load %arg5[%c0_97, %c0_98] : memref<8x128xf32, #tpu.memory_space<vmem>>, vector<8x128xf32>
    tpu.vector_store %arg5[%c0_97, %c0_98], %385 {strides = array<i32>} : memref<8x128xf32, #tpu.memory_space<vmem>>, vector<8x128xf32>,
    return
  }
  func.func @transform_0(%arg0: i32) -> (i32, i32, i32) {
    %c0_i32 = arith.constant 0 : i32
    %c0_i32_0 = arith.constant 0 : i32
    %c0_i32_1 = arith.constant 0 : i32
    return %c0_i32, %arg0, %c0_i32_0 : i32, i32, i32
  }
  func.func @transform_1(%arg0: i32) -> (i32, i32) {
    %c0_i32 = arith.constant 0 : i32
    %c0_i32_0 = arith.constant 0 : i32
    %c0_i32_1 = arith.constant 0 : i32
    return %c0_i32, %c0_i32_0 : i32, i32
  }
  func.func @transform_2(%arg0: i32) -> (i32, i32) {
    %c0_i32 = arith.constant 0 : i32
    %c0_i32_0 = arith.constant 0 : i32
    %c0_i32_1 = arith.constant 0 : i32
    return %c0_i32, %c0_i32_0 : i32, i32
  }
  func.func @transform_3(%arg0: i32) -> (i32, i32) {
    %c0_i32 = arith.constant 0 : i32
    %c0_i32_0 = arith.constant 0 : i32
    %c0_i32_1 = arith.constant 0 : i32
    return %c0_i32, %c0_i32_0 : i32, i32
  }
  func.func @transform_4(%arg0: i32) -> (i32, i32) {
    %c0_i32 = arith.constant 0 : i32
    %c0_i32_0 = arith.constant 0 : i32
    return %arg0, %c0_i32 : i32, i32
  }
}

module attributes {stable_mosaic.version = 11 : i64} {
  func.func @lstm_kernel(%arg0: i32, %arg1: memref<9x8x128xbf16, #tpu.memory_space<vmem>>, %arg2: memref<128x512xbf16, #tpu.memory_space<vmem>>, %arg3: memref<128x512xbf16, #tpu.memory_space<vmem>>, %arg4: memref<1x512xf32, #tpu.memory_space<vmem>>, %arg5: memref<8x128xf32, #tpu.memory_space<vmem>>, %arg6: memref<9x8x512xbf16, #tpu.memory_space<vmem>>) attributes {dimension_semantics = [#tpu.dimension_semantics<parallel>], iteration_bounds = array<i64: 1>, scalar_prefetch = 0 : i64, scratch_operands = 1 : i64, tpu.core_type = #tpu.core_type<tc>, window_params = [{transform_indices = @transform_0, window_bounds = array<i64: 9, 8, 128>}, {pipeline_mode = #tpu.pipeline_mode<synchronous>, transform_indices = @transform_1, window_bounds = array<i64: 128, 512>}, {pipeline_mode = #tpu.pipeline_mode<synchronous>, transform_indices = @transform_2, window_bounds = array<i64: 128, 512>}, {pipeline_mode = #tpu.pipeline_mode<synchronous>, transform_indices = @transform_3, window_bounds = array<i64: 1, 512>}, {transform_indices = @transform_4, window_bounds = array<i64: 8, 128>}]} {
    %c0 = arith.constant 0 : index
    %c0_0 = arith.constant 0 : index
    %c0_1 = arith.constant 0 : index
    %0 = vector.load %arg1[%c0, %c0_0, %c0_1] : memref<9x8x128xbf16, #tpu.memory_space<vmem>>, vector<9x8x128xbf16>
    %1 = vector.shape_cast %0 : vector<9x8x128xbf16> to vector<72x128xbf16>
    %c0_2 = arith.constant 0 : index
    %c0_3 = arith.constant 0 : index
    %2 = vector.load %arg2[%c0_2, %c0_3] : memref<128x512xbf16, #tpu.memory_space<vmem>>, vector<128x512xbf16>
    %cst = arith.constant dense<0.000000e+00> : vector<72x512xf32>
    %3 = tpu.matmul %1, %2, %cst {dimension_numbers = #tpu.dot_dimension_numbers<[1], [0], [0], [1], [0, 0, 1, 1], [], []>} : vector<72x128xbf16>, vector<128x512xbf16>, vector<72x512xf32> -> vector<72x512xf32>
    %4 = vector.shape_cast %3 : vector<72x512xf32> to vector<9x8x512xf32>
    %c0_4 = arith.constant 0 : index
    %c0_5 = arith.constant 0 : index
    %5 = vector.load %arg4[%c0_4, %c0_5] : memref<1x512xf32, #tpu.memory_space<vmem>>, vector<1x512xf32>
    %6 = vector.shape_cast %5 : vector<1x512xf32> to vector<1x1x512xf32>
    %7 = vector.broadcast %6 : vector<1x1x512xf32> to vector<9x8x512xf32>
    %8 = arith.addf %4, %7 : vector<9x8x512xf32>
    %9 = arith.truncf %8 : vector<9x8x512xf32> to vector<9x8x512xbf16>
    %c0_6 = arith.constant 0 : index
    %c0_7 = arith.constant 0 : index
    %c0_8 = arith.constant 0 : index
    %10 = vector.load %arg6[%c0_6, %c0_7, %c0_8] : memref<9x8x512xbf16, #tpu.memory_space<vmem>>, vector<9x8x512xbf16>
    tpu.vector_store %arg6[%c0_6, %c0_7, %c0_8], %9 {strides = array<i32>} : memref<9x8x512xbf16, #tpu.memory_space<vmem>>, vector<9x8x512xbf16>,
    %c0_9 = arith.constant 0 : index
    %c0_10 = arith.constant 0 : index
    %11 = vector.load %arg3[%c0_9, %c0_10] : memref<128x512xbf16, #tpu.memory_space<vmem>>, vector<128x128xbf16>
    %c0_11 = arith.constant 0 : index
    %c128 = arith.constant 128 : index
    %12 = vector.load %arg3[%c0_11, %c128] : memref<128x512xbf16, #tpu.memory_space<vmem>>, vector<128x128xbf16>
    %c0_12 = arith.constant 0 : index
    %c256 = arith.constant 256 : index
    %13 = vector.load %arg3[%c0_12, %c256] : memref<128x512xbf16, #tpu.memory_space<vmem>>, vector<128x128xbf16>
    %c0_13 = arith.constant 0 : index
    %c384 = arith.constant 384 : index
    %14 = vector.load %arg3[%c0_13, %c384] : memref<128x512xbf16, #tpu.memory_space<vmem>>, vector<128x128xbf16>
    %cst_14 = arith.constant 0.000000e+00 : f32
    %15 = vector.broadcast %cst_14 : f32 to vector<8x128xf32>
    %cst_15 = arith.constant 0.000000e+00 : f32
    %16 = vector.broadcast %cst_15 : f32 to vector<8x128xf32>
    %c0_i32 = arith.constant 0 : i32
    %17 = arith.truncf %15 : vector<8x128xf32> to vector<8x128xbf16>
    %18 = arith.index_cast %c0_i32 : i32 to index
    %c0_16 = arith.constant 0 : index
    %c0_17 = arith.constant 0 : index
    %19 = vector.load %arg6[%18, %c0_16, %c0_17] : memref<9x8x512xbf16, #tpu.memory_space<vmem>>, vector<1x8x512xbf16>
    %20 = vector.shape_cast %19 : vector<1x8x512xbf16> to vector<8x512xbf16>
    %21 = vector.extract_strided_slice %20 {offsets = [0, 0], sizes = [8, 128], strides = [1, 1]} : vector<8x512xbf16> to vector<8x128xbf16>
    %22 = arith.extf %21 : vector<8x128xbf16> to vector<8x128xf32>
    %cst_18 = arith.constant dense<0.000000e+00> : vector<8x128xf32>
    %23 = tpu.matmul %17, %11, %cst_18 {dimension_numbers = #tpu.dot_dimension_numbers<[1], [0], [0], [1], [0, 0, 1, 1], [], []>} : vector<8x128xbf16>, vector<128x128xbf16>, vector<8x128xf32> -> vector<8x128xf32>
    %24 = arith.addf %22, %23 : vector<8x128xf32>
    %25 = arith.negf %24 : vector<8x128xf32>
    %26 = math.exp %25 : vector<8x128xf32>
    %cst_19 = arith.constant 1.000000e+00 : f32
    %27 = vector.broadcast %cst_19 : f32 to vector<8x128xf32>
    %28 = arith.addf %27, %26 : vector<8x128xf32>
    %29 = arith.divf %27, %28 : vector<8x128xf32>
    %30 = vector.extract_strided_slice %20 {offsets = [0, 128], sizes = [8, 128], strides = [1, 1]} : vector<8x512xbf16> to vector<8x128xbf16>
    %31 = arith.extf %30 : vector<8x128xbf16> to vector<8x128xf32>
    %cst_20 = arith.constant dense<0.000000e+00> : vector<8x128xf32>
    %32 = tpu.matmul %17, %12, %cst_20 {dimension_numbers = #tpu.dot_dimension_numbers<[1], [0], [0], [1], [0, 0, 1, 1], [], []>} : vector<8x128xbf16>, vector<128x128xbf16>, vector<8x128xf32> -> vector<8x128xf32>
    %33 = arith.addf %31, %32 : vector<8x128xf32>
    %34 = arith.negf %33 : vector<8x128xf32>
    %35 = math.exp %34 : vector<8x128xf32>
    %cst_21 = arith.constant 1.000000e+00 : f32
    %36 = vector.broadcast %cst_21 : f32 to vector<8x128xf32>
    %37 = arith.addf %36, %35 : vector<8x128xf32>
    %38 = arith.divf %36, %37 : vector<8x128xf32>
    %39 = vector.extract_strided_slice %20 {offsets = [0, 256], sizes = [8, 128], strides = [1, 1]} : vector<8x512xbf16> to vector<8x128xbf16>
    %40 = arith.extf %39 : vector<8x128xbf16> to vector<8x128xf32>
    %cst_22 = arith.constant dense<0.000000e+00> : vector<8x128xf32>
    %41 = tpu.matmul %17, %13, %cst_22 {dimension_numbers = #tpu.dot_dimension_numbers<[1], [0], [0], [1], [0, 0, 1, 1], [], []>} : vector<8x128xbf16>, vector<128x128xbf16>, vector<8x128xf32> -> vector<8x128xf32>
    %42 = arith.addf %40, %41 : vector<8x128xf32>
    %43 = math.tanh %42 : vector<8x128xf32>
    %44 = vector.extract_strided_slice %20 {offsets = [0, 384], sizes = [8, 128], strides = [1, 1]} : vector<8x512xbf16> to vector<8x128xbf16>
    %45 = arith.extf %44 : vector<8x128xbf16> to vector<8x128xf32>
    %cst_23 = arith.constant dense<0.000000e+00> : vector<8x128xf32>
    %46 = tpu.matmul %17, %14, %cst_23 {dimension_numbers = #tpu.dot_dimension_numbers<[1], [0], [0], [1], [0, 0, 1, 1], [], []>} : vector<8x128xbf16>, vector<128x128xbf16>, vector<8x128xf32> -> vector<8x128xf32>
    %47 = arith.addf %45, %46 : vector<8x128xf32>
    %48 = arith.negf %47 : vector<8x128xf32>
    %49 = math.exp %48 : vector<8x128xf32>
    %cst_24 = arith.constant 1.000000e+00 : f32
    %50 = vector.broadcast %cst_24 : f32 to vector<8x128xf32>
    %51 = arith.addf %50, %49 : vector<8x128xf32>
    %52 = arith.divf %50, %51 : vector<8x128xf32>
    %53 = arith.mulf %38, %16 : vector<8x128xf32>
    %54 = arith.mulf %29, %43 : vector<8x128xf32>
    %55 = arith.addf %53, %54 : vector<8x128xf32>
    %56 = math.tanh %55 : vector<8x128xf32>
    %57 = arith.mulf %52, %56 : vector<8x128xf32>
    %c1_i32 = arith.constant 1 : i32
    %58 = arith.truncf %57 : vector<8x128xf32> to vector<8x128xbf16>
    %59 = arith.index_cast %c1_i32 : i32 to index
    %c0_25 = arith.constant 0 : index
    %c0_26 = arith.constant 0 : index
    %60 = vector.load %arg6[%59, %c0_25, %c0_26] : memref<9x8x512xbf16, #tpu.memory_space<vmem>>, vector<1x8x512xbf16>
    %61 = vector.shape_cast %60 : vector<1x8x512xbf16> to vector<8x512xbf16>
    %62 = vector.extract_strided_slice %61 {offsets = [0, 0], sizes = [8, 128], strides = [1, 1]} : vector<8x512xbf16> to vector<8x128xbf16>
    %63 = arith.extf %62 : vector<8x128xbf16> to vector<8x128xf32>
    %cst_27 = arith.constant dense<0.000000e+00> : vector<8x128xf32>
    %64 = tpu.matmul %58, %11, %cst_27 {dimension_numbers = #tpu.dot_dimension_numbers<[1], [0], [0], [1], [0, 0, 1, 1], [], []>} : vector<8x128xbf16>, vector<128x128xbf16>, vector<8x128xf32> -> vector<8x128xf32>
    %65 = arith.addf %63, %64 : vector<8x128xf32>
    %66 = arith.negf %65 : vector<8x128xf32>
    %67 = math.exp %66 : vector<8x128xf32>
    %cst_28 = arith.constant 1.000000e+00 : f32
    %68 = vector.broadcast %cst_28 : f32 to vector<8x128xf32>
    %69 = arith.addf %68, %67 : vector<8x128xf32>
    %70 = arith.divf %68, %69 : vector<8x128xf32>
    %71 = vector.extract_strided_slice %61 {offsets = [0, 128], sizes = [8, 128], strides = [1, 1]} : vector<8x512xbf16> to vector<8x128xbf16>
    %72 = arith.extf %71 : vector<8x128xbf16> to vector<8x128xf32>
    %cst_29 = arith.constant dense<0.000000e+00> : vector<8x128xf32>
    %73 = tpu.matmul %58, %12, %cst_29 {dimension_numbers = #tpu.dot_dimension_numbers<[1], [0], [0], [1], [0, 0, 1, 1], [], []>} : vector<8x128xbf16>, vector<128x128xbf16>, vector<8x128xf32> -> vector<8x128xf32>
    %74 = arith.addf %72, %73 : vector<8x128xf32>
    %75 = arith.negf %74 : vector<8x128xf32>
    %76 = math.exp %75 : vector<8x128xf32>
    %cst_30 = arith.constant 1.000000e+00 : f32
    %77 = vector.broadcast %cst_30 : f32 to vector<8x128xf32>
    %78 = arith.addf %77, %76 : vector<8x128xf32>
    %79 = arith.divf %77, %78 : vector<8x128xf32>
    %80 = vector.extract_strided_slice %61 {offsets = [0, 256], sizes = [8, 128], strides = [1, 1]} : vector<8x512xbf16> to vector<8x128xbf16>
    %81 = arith.extf %80 : vector<8x128xbf16> to vector<8x128xf32>
    %cst_31 = arith.constant dense<0.000000e+00> : vector<8x128xf32>
    %82 = tpu.matmul %58, %13, %cst_31 {dimension_numbers = #tpu.dot_dimension_numbers<[1], [0], [0], [1], [0, 0, 1, 1], [], []>} : vector<8x128xbf16>, vector<128x128xbf16>, vector<8x128xf32> -> vector<8x128xf32>
    %83 = arith.addf %81, %82 : vector<8x128xf32>
    %84 = math.tanh %83 : vector<8x128xf32>
    %85 = vector.extract_strided_slice %61 {offsets = [0, 384], sizes = [8, 128], strides = [1, 1]} : vector<8x512xbf16> to vector<8x128xbf16>
    %86 = arith.extf %85 : vector<8x128xbf16> to vector<8x128xf32>
    %cst_32 = arith.constant dense<0.000000e+00> : vector<8x128xf32>
    %87 = tpu.matmul %58, %14, %cst_32 {dimension_numbers = #tpu.dot_dimension_numbers<[1], [0], [0], [1], [0, 0, 1, 1], [], []>} : vector<8x128xbf16>, vector<128x128xbf16>, vector<8x128xf32> -> vector<8x128xf32>
    %88 = arith.addf %86, %87 : vector<8x128xf32>
    %89 = arith.negf %88 : vector<8x128xf32>
    %90 = math.exp %89 : vector<8x128xf32>
    %cst_33 = arith.constant 1.000000e+00 : f32
    %91 = vector.broadcast %cst_33 : f32 to vector<8x128xf32>
    %92 = arith.addf %91, %90 : vector<8x128xf32>
    %93 = arith.divf %91, %92 : vector<8x128xf32>
    %94 = arith.mulf %79, %55 : vector<8x128xf32>
    %95 = arith.mulf %70, %84 : vector<8x128xf32>
    %96 = arith.addf %94, %95 : vector<8x128xf32>
    %97 = math.tanh %96 : vector<8x128xf32>
    %98 = arith.mulf %93, %97 : vector<8x128xf32>
    %c2_i32 = arith.constant 2 : i32
    %99 = arith.truncf %98 : vector<8x128xf32> to vector<8x128xbf16>
    %100 = arith.index_cast %c2_i32 : i32 to index
    %c0_34 = arith.constant 0 : index
    %c0_35 = arith.constant 0 : index
    %101 = vector.load %arg6[%100, %c0_34, %c0_35] : memref<9x8x512xbf16, #tpu.memory_space<vmem>>, vector<1x8x512xbf16>
    %102 = vector.shape_cast %101 : vector<1x8x512xbf16> to vector<8x512xbf16>
    %103 = vector.extract_strided_slice %102 {offsets = [0, 0], sizes = [8, 128], strides = [1, 1]} : vector<8x512xbf16> to vector<8x128xbf16>
    %104 = arith.extf %103 : vector<8x128xbf16> to vector<8x128xf32>
    %cst_36 = arith.constant dense<0.000000e+00> : vector<8x128xf32>
    %105 = tpu.matmul %99, %11, %cst_36 {dimension_numbers = #tpu.dot_dimension_numbers<[1], [0], [0], [1], [0, 0, 1, 1], [], []>} : vector<8x128xbf16>, vector<128x128xbf16>, vector<8x128xf32> -> vector<8x128xf32>
    %106 = arith.addf %104, %105 : vector<8x128xf32>
    %107 = arith.negf %106 : vector<8x128xf32>
    %108 = math.exp %107 : vector<8x128xf32>
    %cst_37 = arith.constant 1.000000e+00 : f32
    %109 = vector.broadcast %cst_37 : f32 to vector<8x128xf32>
    %110 = arith.addf %109, %108 : vector<8x128xf32>
    %111 = arith.divf %109, %110 : vector<8x128xf32>
    %112 = vector.extract_strided_slice %102 {offsets = [0, 128], sizes = [8, 128], strides = [1, 1]} : vector<8x512xbf16> to vector<8x128xbf16>
    %113 = arith.extf %112 : vector<8x128xbf16> to vector<8x128xf32>
    %cst_38 = arith.constant dense<0.000000e+00> : vector<8x128xf32>
    %114 = tpu.matmul %99, %12, %cst_38 {dimension_numbers = #tpu.dot_dimension_numbers<[1], [0], [0], [1], [0, 0, 1, 1], [], []>} : vector<8x128xbf16>, vector<128x128xbf16>, vector<8x128xf32> -> vector<8x128xf32>
    %115 = arith.addf %113, %114 : vector<8x128xf32>
    %116 = arith.negf %115 : vector<8x128xf32>
    %117 = math.exp %116 : vector<8x128xf32>
    %cst_39 = arith.constant 1.000000e+00 : f32
    %118 = vector.broadcast %cst_39 : f32 to vector<8x128xf32>
    %119 = arith.addf %118, %117 : vector<8x128xf32>
    %120 = arith.divf %118, %119 : vector<8x128xf32>
    %121 = vector.extract_strided_slice %102 {offsets = [0, 256], sizes = [8, 128], strides = [1, 1]} : vector<8x512xbf16> to vector<8x128xbf16>
    %122 = arith.extf %121 : vector<8x128xbf16> to vector<8x128xf32>
    %cst_40 = arith.constant dense<0.000000e+00> : vector<8x128xf32>
    %123 = tpu.matmul %99, %13, %cst_40 {dimension_numbers = #tpu.dot_dimension_numbers<[1], [0], [0], [1], [0, 0, 1, 1], [], []>} : vector<8x128xbf16>, vector<128x128xbf16>, vector<8x128xf32> -> vector<8x128xf32>
    %124 = arith.addf %122, %123 : vector<8x128xf32>
    %125 = math.tanh %124 : vector<8x128xf32>
    %126 = vector.extract_strided_slice %102 {offsets = [0, 384], sizes = [8, 128], strides = [1, 1]} : vector<8x512xbf16> to vector<8x128xbf16>
    %127 = arith.extf %126 : vector<8x128xbf16> to vector<8x128xf32>
    %cst_41 = arith.constant dense<0.000000e+00> : vector<8x128xf32>
    %128 = tpu.matmul %99, %14, %cst_41 {dimension_numbers = #tpu.dot_dimension_numbers<[1], [0], [0], [1], [0, 0, 1, 1], [], []>} : vector<8x128xbf16>, vector<128x128xbf16>, vector<8x128xf32> -> vector<8x128xf32>
    %129 = arith.addf %127, %128 : vector<8x128xf32>
    %130 = arith.negf %129 : vector<8x128xf32>
    %131 = math.exp %130 : vector<8x128xf32>
    %cst_42 = arith.constant 1.000000e+00 : f32
    %132 = vector.broadcast %cst_42 : f32 to vector<8x128xf32>
    %133 = arith.addf %132, %131 : vector<8x128xf32>
    %134 = arith.divf %132, %133 : vector<8x128xf32>
    %135 = arith.mulf %120, %96 : vector<8x128xf32>
    %136 = arith.mulf %111, %125 : vector<8x128xf32>
    %137 = arith.addf %135, %136 : vector<8x128xf32>
    %138 = math.tanh %137 : vector<8x128xf32>
    %139 = arith.mulf %134, %138 : vector<8x128xf32>
    %c3_i32 = arith.constant 3 : i32
    %140 = arith.truncf %139 : vector<8x128xf32> to vector<8x128xbf16>
    %141 = arith.index_cast %c3_i32 : i32 to index
    %c0_43 = arith.constant 0 : index
    %c0_44 = arith.constant 0 : index
    %142 = vector.load %arg6[%141, %c0_43, %c0_44] : memref<9x8x512xbf16, #tpu.memory_space<vmem>>, vector<1x8x512xbf16>
    %143 = vector.shape_cast %142 : vector<1x8x512xbf16> to vector<8x512xbf16>
    %144 = vector.extract_strided_slice %143 {offsets = [0, 0], sizes = [8, 128], strides = [1, 1]} : vector<8x512xbf16> to vector<8x128xbf16>
    %145 = arith.extf %144 : vector<8x128xbf16> to vector<8x128xf32>
    %cst_45 = arith.constant dense<0.000000e+00> : vector<8x128xf32>
    %146 = tpu.matmul %140, %11, %cst_45 {dimension_numbers = #tpu.dot_dimension_numbers<[1], [0], [0], [1], [0, 0, 1, 1], [], []>} : vector<8x128xbf16>, vector<128x128xbf16>, vector<8x128xf32> -> vector<8x128xf32>
    %147 = arith.addf %145, %146 : vector<8x128xf32>
    %148 = arith.negf %147 : vector<8x128xf32>
    %149 = math.exp %148 : vector<8x128xf32>
    %cst_46 = arith.constant 1.000000e+00 : f32
    %150 = vector.broadcast %cst_46 : f32 to vector<8x128xf32>
    %151 = arith.addf %150, %149 : vector<8x128xf32>
    %152 = arith.divf %150, %151 : vector<8x128xf32>
    %153 = vector.extract_strided_slice %143 {offsets = [0, 128], sizes = [8, 128], strides = [1, 1]} : vector<8x512xbf16> to vector<8x128xbf16>
    %154 = arith.extf %153 : vector<8x128xbf16> to vector<8x128xf32>
    %cst_47 = arith.constant dense<0.000000e+00> : vector<8x128xf32>
    %155 = tpu.matmul %140, %12, %cst_47 {dimension_numbers = #tpu.dot_dimension_numbers<[1], [0], [0], [1], [0, 0, 1, 1], [], []>} : vector<8x128xbf16>, vector<128x128xbf16>, vector<8x128xf32> -> vector<8x128xf32>
    %156 = arith.addf %154, %155 : vector<8x128xf32>
    %157 = arith.negf %156 : vector<8x128xf32>
    %158 = math.exp %157 : vector<8x128xf32>
    %cst_48 = arith.constant 1.000000e+00 : f32
    %159 = vector.broadcast %cst_48 : f32 to vector<8x128xf32>
    %160 = arith.addf %159, %158 : vector<8x128xf32>
    %161 = arith.divf %159, %160 : vector<8x128xf32>
    %162 = vector.extract_strided_slice %143 {offsets = [0, 256], sizes = [8, 128], strides = [1, 1]} : vector<8x512xbf16> to vector<8x128xbf16>
    %163 = arith.extf %162 : vector<8x128xbf16> to vector<8x128xf32>
    %cst_49 = arith.constant dense<0.000000e+00> : vector<8x128xf32>
    %164 = tpu.matmul %140, %13, %cst_49 {dimension_numbers = #tpu.dot_dimension_numbers<[1], [0], [0], [1], [0, 0, 1, 1], [], []>} : vector<8x128xbf16>, vector<128x128xbf16>, vector<8x128xf32> -> vector<8x128xf32>
    %165 = arith.addf %163, %164 : vector<8x128xf32>
    %166 = math.tanh %165 : vector<8x128xf32>
    %167 = vector.extract_strided_slice %143 {offsets = [0, 384], sizes = [8, 128], strides = [1, 1]} : vector<8x512xbf16> to vector<8x128xbf16>
    %168 = arith.extf %167 : vector<8x128xbf16> to vector<8x128xf32>
    %cst_50 = arith.constant dense<0.000000e+00> : vector<8x128xf32>
    %169 = tpu.matmul %140, %14, %cst_50 {dimension_numbers = #tpu.dot_dimension_numbers<[1], [0], [0], [1], [0, 0, 1, 1], [], []>} : vector<8x128xbf16>, vector<128x128xbf16>, vector<8x128xf32> -> vector<8x128xf32>
    %170 = arith.addf %168, %169 : vector<8x128xf32>
    %171 = arith.negf %170 : vector<8x128xf32>
    %172 = math.exp %171 : vector<8x128xf32>
    %cst_51 = arith.constant 1.000000e+00 : f32
    %173 = vector.broadcast %cst_51 : f32 to vector<8x128xf32>
    %174 = arith.addf %173, %172 : vector<8x128xf32>
    %175 = arith.divf %173, %174 : vector<8x128xf32>
    %176 = arith.mulf %161, %137 : vector<8x128xf32>
    %177 = arith.mulf %152, %166 : vector<8x128xf32>
    %178 = arith.addf %176, %177 : vector<8x128xf32>
    %179 = math.tanh %178 : vector<8x128xf32>
    %180 = arith.mulf %175, %179 : vector<8x128xf32>
    %c4_i32 = arith.constant 4 : i32
    %181 = arith.truncf %180 : vector<8x128xf32> to vector<8x128xbf16>
    %182 = arith.index_cast %c4_i32 : i32 to index
    %c0_52 = arith.constant 0 : index
    %c0_53 = arith.constant 0 : index
    %183 = vector.load %arg6[%182, %c0_52, %c0_53] : memref<9x8x512xbf16, #tpu.memory_space<vmem>>, vector<1x8x512xbf16>
    %184 = vector.shape_cast %183 : vector<1x8x512xbf16> to vector<8x512xbf16>
    %185 = vector.extract_strided_slice %184 {offsets = [0, 0], sizes = [8, 128], strides = [1, 1]} : vector<8x512xbf16> to vector<8x128xbf16>
    %186 = arith.extf %185 : vector<8x128xbf16> to vector<8x128xf32>
    %cst_54 = arith.constant dense<0.000000e+00> : vector<8x128xf32>
    %187 = tpu.matmul %181, %11, %cst_54 {dimension_numbers = #tpu.dot_dimension_numbers<[1], [0], [0], [1], [0, 0, 1, 1], [], []>} : vector<8x128xbf16>, vector<128x128xbf16>, vector<8x128xf32> -> vector<8x128xf32>
    %188 = arith.addf %186, %187 : vector<8x128xf32>
    %189 = arith.negf %188 : vector<8x128xf32>
    %190 = math.exp %189 : vector<8x128xf32>
    %cst_55 = arith.constant 1.000000e+00 : f32
    %191 = vector.broadcast %cst_55 : f32 to vector<8x128xf32>
    %192 = arith.addf %191, %190 : vector<8x128xf32>
    %193 = arith.divf %191, %192 : vector<8x128xf32>
    %194 = vector.extract_strided_slice %184 {offsets = [0, 128], sizes = [8, 128], strides = [1, 1]} : vector<8x512xbf16> to vector<8x128xbf16>
    %195 = arith.extf %194 : vector<8x128xbf16> to vector<8x128xf32>
    %cst_56 = arith.constant dense<0.000000e+00> : vector<8x128xf32>
    %196 = tpu.matmul %181, %12, %cst_56 {dimension_numbers = #tpu.dot_dimension_numbers<[1], [0], [0], [1], [0, 0, 1, 1], [], []>} : vector<8x128xbf16>, vector<128x128xbf16>, vector<8x128xf32> -> vector<8x128xf32>
    %197 = arith.addf %195, %196 : vector<8x128xf32>
    %198 = arith.negf %197 : vector<8x128xf32>
    %199 = math.exp %198 : vector<8x128xf32>
    %cst_57 = arith.constant 1.000000e+00 : f32
    %200 = vector.broadcast %cst_57 : f32 to vector<8x128xf32>
    %201 = arith.addf %200, %199 : vector<8x128xf32>
    %202 = arith.divf %200, %201 : vector<8x128xf32>
    %203 = vector.extract_strided_slice %184 {offsets = [0, 256], sizes = [8, 128], strides = [1, 1]} : vector<8x512xbf16> to vector<8x128xbf16>
    %204 = arith.extf %203 : vector<8x128xbf16> to vector<8x128xf32>
    %cst_58 = arith.constant dense<0.000000e+00> : vector<8x128xf32>
    %205 = tpu.matmul %181, %13, %cst_58 {dimension_numbers = #tpu.dot_dimension_numbers<[1], [0], [0], [1], [0, 0, 1, 1], [], []>} : vector<8x128xbf16>, vector<128x128xbf16>, vector<8x128xf32> -> vector<8x128xf32>
    %206 = arith.addf %204, %205 : vector<8x128xf32>
    %207 = math.tanh %206 : vector<8x128xf32>
    %208 = vector.extract_strided_slice %184 {offsets = [0, 384], sizes = [8, 128], strides = [1, 1]} : vector<8x512xbf16> to vector<8x128xbf16>
    %209 = arith.extf %208 : vector<8x128xbf16> to vector<8x128xf32>
    %cst_59 = arith.constant dense<0.000000e+00> : vector<8x128xf32>
    %210 = tpu.matmul %181, %14, %cst_59 {dimension_numbers = #tpu.dot_dimension_numbers<[1], [0], [0], [1], [0, 0, 1, 1], [], []>} : vector<8x128xbf16>, vector<128x128xbf16>, vector<8x128xf32> -> vector<8x128xf32>
    %211 = arith.addf %209, %210 : vector<8x128xf32>
    %212 = arith.negf %211 : vector<8x128xf32>
    %213 = math.exp %212 : vector<8x128xf32>
    %cst_60 = arith.constant 1.000000e+00 : f32
    %214 = vector.broadcast %cst_60 : f32 to vector<8x128xf32>
    %215 = arith.addf %214, %213 : vector<8x128xf32>
    %216 = arith.divf %214, %215 : vector<8x128xf32>
    %217 = arith.mulf %202, %178 : vector<8x128xf32>
    %218 = arith.mulf %193, %207 : vector<8x128xf32>
    %219 = arith.addf %217, %218 : vector<8x128xf32>
    %220 = math.tanh %219 : vector<8x128xf32>
    %221 = arith.mulf %216, %220 : vector<8x128xf32>
    %c5_i32 = arith.constant 5 : i32
    %222 = arith.truncf %221 : vector<8x128xf32> to vector<8x128xbf16>
    %223 = arith.index_cast %c5_i32 : i32 to index
    %c0_61 = arith.constant 0 : index
    %c0_62 = arith.constant 0 : index
    %224 = vector.load %arg6[%223, %c0_61, %c0_62] : memref<9x8x512xbf16, #tpu.memory_space<vmem>>, vector<1x8x512xbf16>
    %225 = vector.shape_cast %224 : vector<1x8x512xbf16> to vector<8x512xbf16>
    %226 = vector.extract_strided_slice %225 {offsets = [0, 0], sizes = [8, 128], strides = [1, 1]} : vector<8x512xbf16> to vector<8x128xbf16>
    %227 = arith.extf %226 : vector<8x128xbf16> to vector<8x128xf32>
    %cst_63 = arith.constant dense<0.000000e+00> : vector<8x128xf32>
    %228 = tpu.matmul %222, %11, %cst_63 {dimension_numbers = #tpu.dot_dimension_numbers<[1], [0], [0], [1], [0, 0, 1, 1], [], []>} : vector<8x128xbf16>, vector<128x128xbf16>, vector<8x128xf32> -> vector<8x128xf32>
    %229 = arith.addf %227, %228 : vector<8x128xf32>
    %230 = arith.negf %229 : vector<8x128xf32>
    %231 = math.exp %230 : vector<8x128xf32>
    %cst_64 = arith.constant 1.000000e+00 : f32
    %232 = vector.broadcast %cst_64 : f32 to vector<8x128xf32>
    %233 = arith.addf %232, %231 : vector<8x128xf32>
    %234 = arith.divf %232, %233 : vector<8x128xf32>
    %235 = vector.extract_strided_slice %225 {offsets = [0, 128], sizes = [8, 128], strides = [1, 1]} : vector<8x512xbf16> to vector<8x128xbf16>
    %236 = arith.extf %235 : vector<8x128xbf16> to vector<8x128xf32>
    %cst_65 = arith.constant dense<0.000000e+00> : vector<8x128xf32>
    %237 = tpu.matmul %222, %12, %cst_65 {dimension_numbers = #tpu.dot_dimension_numbers<[1], [0], [0], [1], [0, 0, 1, 1], [], []>} : vector<8x128xbf16>, vector<128x128xbf16>, vector<8x128xf32> -> vector<8x128xf32>
    %238 = arith.addf %236, %237 : vector<8x128xf32>
    %239 = arith.negf %238 : vector<8x128xf32>
    %240 = math.exp %239 : vector<8x128xf32>
    %cst_66 = arith.constant 1.000000e+00 : f32
    %241 = vector.broadcast %cst_66 : f32 to vector<8x128xf32>
    %242 = arith.addf %241, %240 : vector<8x128xf32>
    %243 = arith.divf %241, %242 : vector<8x128xf32>
    %244 = vector.extract_strided_slice %225 {offsets = [0, 256], sizes = [8, 128], strides = [1, 1]} : vector<8x512xbf16> to vector<8x128xbf16>
    %245 = arith.extf %244 : vector<8x128xbf16> to vector<8x128xf32>
    %cst_67 = arith.constant dense<0.000000e+00> : vector<8x128xf32>
    %246 = tpu.matmul %222, %13, %cst_67 {dimension_numbers = #tpu.dot_dimension_numbers<[1], [0], [0], [1], [0, 0, 1, 1], [], []>} : vector<8x128xbf16>, vector<128x128xbf16>, vector<8x128xf32> -> vector<8x128xf32>
    %247 = arith.addf %245, %246 : vector<8x128xf32>
    %248 = math.tanh %247 : vector<8x128xf32>
    %249 = vector.extract_strided_slice %225 {offsets = [0, 384], sizes = [8, 128], strides = [1, 1]} : vector<8x512xbf16> to vector<8x128xbf16>
    %250 = arith.extf %249 : vector<8x128xbf16> to vector<8x128xf32>
    %cst_68 = arith.constant dense<0.000000e+00> : vector<8x128xf32>
    %251 = tpu.matmul %222, %14, %cst_68 {dimension_numbers = #tpu.dot_dimension_numbers<[1], [0], [0], [1], [0, 0, 1, 1], [], []>} : vector<8x128xbf16>, vector<128x128xbf16>, vector<8x128xf32> -> vector<8x128xf32>
    %252 = arith.addf %250, %251 : vector<8x128xf32>
    %253 = arith.negf %252 : vector<8x128xf32>
    %254 = math.exp %253 : vector<8x128xf32>
    %cst_69 = arith.constant 1.000000e+00 : f32
    %255 = vector.broadcast %cst_69 : f32 to vector<8x128xf32>
    %256 = arith.addf %255, %254 : vector<8x128xf32>
    %257 = arith.divf %255, %256 : vector<8x128xf32>
    %258 = arith.mulf %243, %219 : vector<8x128xf32>
    %259 = arith.mulf %234, %248 : vector<8x128xf32>
    %260 = arith.addf %258, %259 : vector<8x128xf32>
    %261 = math.tanh %260 : vector<8x128xf32>
    %262 = arith.mulf %257, %261 : vector<8x128xf32>
    %c6_i32 = arith.constant 6 : i32
    %263 = arith.truncf %262 : vector<8x128xf32> to vector<8x128xbf16>
    %264 = arith.index_cast %c6_i32 : i32 to index
    %c0_70 = arith.constant 0 : index
    %c0_71 = arith.constant 0 : index
    %265 = vector.load %arg6[%264, %c0_70, %c0_71] : memref<9x8x512xbf16, #tpu.memory_space<vmem>>, vector<1x8x512xbf16>
    %266 = vector.shape_cast %265 : vector<1x8x512xbf16> to vector<8x512xbf16>
    %267 = vector.extract_strided_slice %266 {offsets = [0, 0], sizes = [8, 128], strides = [1, 1]} : vector<8x512xbf16> to vector<8x128xbf16>
    %268 = arith.extf %267 : vector<8x128xbf16> to vector<8x128xf32>
    %cst_72 = arith.constant dense<0.000000e+00> : vector<8x128xf32>
    %269 = tpu.matmul %263, %11, %cst_72 {dimension_numbers = #tpu.dot_dimension_numbers<[1], [0], [0], [1], [0, 0, 1, 1], [], []>} : vector<8x128xbf16>, vector<128x128xbf16>, vector<8x128xf32> -> vector<8x128xf32>
    %270 = arith.addf %268, %269 : vector<8x128xf32>
    %271 = arith.negf %270 : vector<8x128xf32>
    %272 = math.exp %271 : vector<8x128xf32>
    %cst_73 = arith.constant 1.000000e+00 : f32
    %273 = vector.broadcast %cst_73 : f32 to vector<8x128xf32>
    %274 = arith.addf %273, %272 : vector<8x128xf32>
    %275 = arith.divf %273, %274 : vector<8x128xf32>
    %276 = vector.extract_strided_slice %266 {offsets = [0, 128], sizes = [8, 128], strides = [1, 1]} : vector<8x512xbf16> to vector<8x128xbf16>
    %277 = arith.extf %276 : vector<8x128xbf16> to vector<8x128xf32>
    %cst_74 = arith.constant dense<0.000000e+00> : vector<8x128xf32>
    %278 = tpu.matmul %263, %12, %cst_74 {dimension_numbers = #tpu.dot_dimension_numbers<[1], [0], [0], [1], [0, 0, 1, 1], [], []>} : vector<8x128xbf16>, vector<128x128xbf16>, vector<8x128xf32> -> vector<8x128xf32>
    %279 = arith.addf %277, %278 : vector<8x128xf32>
    %280 = arith.negf %279 : vector<8x128xf32>
    %281 = math.exp %280 : vector<8x128xf32>
    %cst_75 = arith.constant 1.000000e+00 : f32
    %282 = vector.broadcast %cst_75 : f32 to vector<8x128xf32>
    %283 = arith.addf %282, %281 : vector<8x128xf32>
    %284 = arith.divf %282, %283 : vector<8x128xf32>
    %285 = vector.extract_strided_slice %266 {offsets = [0, 256], sizes = [8, 128], strides = [1, 1]} : vector<8x512xbf16> to vector<8x128xbf16>
    %286 = arith.extf %285 : vector<8x128xbf16> to vector<8x128xf32>
    %cst_76 = arith.constant dense<0.000000e+00> : vector<8x128xf32>
    %287 = tpu.matmul %263, %13, %cst_76 {dimension_numbers = #tpu.dot_dimension_numbers<[1], [0], [0], [1], [0, 0, 1, 1], [], []>} : vector<8x128xbf16>, vector<128x128xbf16>, vector<8x128xf32> -> vector<8x128xf32>
    %288 = arith.addf %286, %287 : vector<8x128xf32>
    %289 = math.tanh %288 : vector<8x128xf32>
    %290 = vector.extract_strided_slice %266 {offsets = [0, 384], sizes = [8, 128], strides = [1, 1]} : vector<8x512xbf16> to vector<8x128xbf16>
    %291 = arith.extf %290 : vector<8x128xbf16> to vector<8x128xf32>
    %cst_77 = arith.constant dense<0.000000e+00> : vector<8x128xf32>
    %292 = tpu.matmul %263, %14, %cst_77 {dimension_numbers = #tpu.dot_dimension_numbers<[1], [0], [0], [1], [0, 0, 1, 1], [], []>} : vector<8x128xbf16>, vector<128x128xbf16>, vector<8x128xf32> -> vector<8x128xf32>
    %293 = arith.addf %291, %292 : vector<8x128xf32>
    %294 = arith.negf %293 : vector<8x128xf32>
    %295 = math.exp %294 : vector<8x128xf32>
    %cst_78 = arith.constant 1.000000e+00 : f32
    %296 = vector.broadcast %cst_78 : f32 to vector<8x128xf32>
    %297 = arith.addf %296, %295 : vector<8x128xf32>
    %298 = arith.divf %296, %297 : vector<8x128xf32>
    %299 = arith.mulf %284, %260 : vector<8x128xf32>
    %300 = arith.mulf %275, %289 : vector<8x128xf32>
    %301 = arith.addf %299, %300 : vector<8x128xf32>
    %302 = math.tanh %301 : vector<8x128xf32>
    %303 = arith.mulf %298, %302 : vector<8x128xf32>
    %c7_i32 = arith.constant 7 : i32
    %304 = arith.truncf %303 : vector<8x128xf32> to vector<8x128xbf16>
    %305 = arith.index_cast %c7_i32 : i32 to index
    %c0_79 = arith.constant 0 : index
    %c0_80 = arith.constant 0 : index
    %306 = vector.load %arg6[%305, %c0_79, %c0_80] : memref<9x8x512xbf16, #tpu.memory_space<vmem>>, vector<1x8x512xbf16>
    %307 = vector.shape_cast %306 : vector<1x8x512xbf16> to vector<8x512xbf16>
    %308 = vector.extract_strided_slice %307 {offsets = [0, 0], sizes = [8, 128], strides = [1, 1]} : vector<8x512xbf16> to vector<8x128xbf16>
    %309 = arith.extf %308 : vector<8x128xbf16> to vector<8x128xf32>
    %cst_81 = arith.constant dense<0.000000e+00> : vector<8x128xf32>
    %310 = tpu.matmul %304, %11, %cst_81 {dimension_numbers = #tpu.dot_dimension_numbers<[1], [0], [0], [1], [0, 0, 1, 1], [], []>} : vector<8x128xbf16>, vector<128x128xbf16>, vector<8x128xf32> -> vector<8x128xf32>
    %311 = arith.addf %309, %310 : vector<8x128xf32>
    %312 = arith.negf %311 : vector<8x128xf32>
    %313 = math.exp %312 : vector<8x128xf32>
    %cst_82 = arith.constant 1.000000e+00 : f32
    %314 = vector.broadcast %cst_82 : f32 to vector<8x128xf32>
    %315 = arith.addf %314, %313 : vector<8x128xf32>
    %316 = arith.divf %314, %315 : vector<8x128xf32>
    %317 = vector.extract_strided_slice %307 {offsets = [0, 128], sizes = [8, 128], strides = [1, 1]} : vector<8x512xbf16> to vector<8x128xbf16>
    %318 = arith.extf %317 : vector<8x128xbf16> to vector<8x128xf32>
    %cst_83 = arith.constant dense<0.000000e+00> : vector<8x128xf32>
    %319 = tpu.matmul %304, %12, %cst_83 {dimension_numbers = #tpu.dot_dimension_numbers<[1], [0], [0], [1], [0, 0, 1, 1], [], []>} : vector<8x128xbf16>, vector<128x128xbf16>, vector<8x128xf32> -> vector<8x128xf32>
    %320 = arith.addf %318, %319 : vector<8x128xf32>
    %321 = arith.negf %320 : vector<8x128xf32>
    %322 = math.exp %321 : vector<8x128xf32>
    %cst_84 = arith.constant 1.000000e+00 : f32
    %323 = vector.broadcast %cst_84 : f32 to vector<8x128xf32>
    %324 = arith.addf %323, %322 : vector<8x128xf32>
    %325 = arith.divf %323, %324 : vector<8x128xf32>
    %326 = vector.extract_strided_slice %307 {offsets = [0, 256], sizes = [8, 128], strides = [1, 1]} : vector<8x512xbf16> to vector<8x128xbf16>
    %327 = arith.extf %326 : vector<8x128xbf16> to vector<8x128xf32>
    %cst_85 = arith.constant dense<0.000000e+00> : vector<8x128xf32>
    %328 = tpu.matmul %304, %13, %cst_85 {dimension_numbers = #tpu.dot_dimension_numbers<[1], [0], [0], [1], [0, 0, 1, 1], [], []>} : vector<8x128xbf16>, vector<128x128xbf16>, vector<8x128xf32> -> vector<8x128xf32>
    %329 = arith.addf %327, %328 : vector<8x128xf32>
    %330 = math.tanh %329 : vector<8x128xf32>
    %331 = vector.extract_strided_slice %307 {offsets = [0, 384], sizes = [8, 128], strides = [1, 1]} : vector<8x512xbf16> to vector<8x128xbf16>
    %332 = arith.extf %331 : vector<8x128xbf16> to vector<8x128xf32>
    %cst_86 = arith.constant dense<0.000000e+00> : vector<8x128xf32>
    %333 = tpu.matmul %304, %14, %cst_86 {dimension_numbers = #tpu.dot_dimension_numbers<[1], [0], [0], [1], [0, 0, 1, 1], [], []>} : vector<8x128xbf16>, vector<128x128xbf16>, vector<8x128xf32> -> vector<8x128xf32>
    %334 = arith.addf %332, %333 : vector<8x128xf32>
    %335 = arith.negf %334 : vector<8x128xf32>
    %336 = math.exp %335 : vector<8x128xf32>
    %cst_87 = arith.constant 1.000000e+00 : f32
    %337 = vector.broadcast %cst_87 : f32 to vector<8x128xf32>
    %338 = arith.addf %337, %336 : vector<8x128xf32>
    %339 = arith.divf %337, %338 : vector<8x128xf32>
    %340 = arith.mulf %325, %301 : vector<8x128xf32>
    %341 = arith.mulf %316, %330 : vector<8x128xf32>
    %342 = arith.addf %340, %341 : vector<8x128xf32>
    %343 = math.tanh %342 : vector<8x128xf32>
    %344 = arith.mulf %339, %343 : vector<8x128xf32>
    %c8_i32 = arith.constant 8 : i32
    %345 = arith.truncf %344 : vector<8x128xf32> to vector<8x128xbf16>
    %346 = arith.index_cast %c8_i32 : i32 to index
    %c0_88 = arith.constant 0 : index
    %c0_89 = arith.constant 0 : index
    %347 = vector.load %arg6[%346, %c0_88, %c0_89] : memref<9x8x512xbf16, #tpu.memory_space<vmem>>, vector<1x8x512xbf16>
    %348 = vector.shape_cast %347 : vector<1x8x512xbf16> to vector<8x512xbf16>
    %349 = vector.extract_strided_slice %348 {offsets = [0, 0], sizes = [8, 128], strides = [1, 1]} : vector<8x512xbf16> to vector<8x128xbf16>
    %350 = arith.extf %349 : vector<8x128xbf16> to vector<8x128xf32>
    %cst_90 = arith.constant dense<0.000000e+00> : vector<8x128xf32>
    %351 = tpu.matmul %345, %11, %cst_90 {dimension_numbers = #tpu.dot_dimension_numbers<[1], [0], [0], [1], [0, 0, 1, 1], [], []>} : vector<8x128xbf16>, vector<128x128xbf16>, vector<8x128xf32> -> vector<8x128xf32>
    %352 = arith.addf %350, %351 : vector<8x128xf32>
    %353 = arith.negf %352 : vector<8x128xf32>
    %354 = math.exp %353 : vector<8x128xf32>
    %cst_91 = arith.constant 1.000000e+00 : f32
    %355 = vector.broadcast %cst_91 : f32 to vector<8x128xf32>
    %356 = arith.addf %355, %354 : vector<8x128xf32>
    %357 = arith.divf %355, %356 : vector<8x128xf32>
    %358 = vector.extract_strided_slice %348 {offsets = [0, 128], sizes = [8, 128], strides = [1, 1]} : vector<8x512xbf16> to vector<8x128xbf16>
    %359 = arith.extf %358 : vector<8x128xbf16> to vector<8x128xf32>
    %cst_92 = arith.constant dense<0.000000e+00> : vector<8x128xf32>
    %360 = tpu.matmul %345, %12, %cst_92 {dimension_numbers = #tpu.dot_dimension_numbers<[1], [0], [0], [1], [0, 0, 1, 1], [], []>} : vector<8x128xbf16>, vector<128x128xbf16>, vector<8x128xf32> -> vector<8x128xf32>
    %361 = arith.addf %359, %360 : vector<8x128xf32>
    %362 = arith.negf %361 : vector<8x128xf32>
    %363 = math.exp %362 : vector<8x128xf32>
    %cst_93 = arith.constant 1.000000e+00 : f32
    %364 = vector.broadcast %cst_93 : f32 to vector<8x128xf32>
    %365 = arith.addf %364, %363 : vector<8x128xf32>
    %366 = arith.divf %364, %365 : vector<8x128xf32>
    %367 = vector.extract_strided_slice %348 {offsets = [0, 256], sizes = [8, 128], strides = [1, 1]} : vector<8x512xbf16> to vector<8x128xbf16>
    %368 = arith.extf %367 : vector<8x128xbf16> to vector<8x128xf32>
    %cst_94 = arith.constant dense<0.000000e+00> : vector<8x128xf32>
    %369 = tpu.matmul %345, %13, %cst_94 {dimension_numbers = #tpu.dot_dimension_numbers<[1], [0], [0], [1], [0, 0, 1, 1], [], []>} : vector<8x128xbf16>, vector<128x128xbf16>, vector<8x128xf32> -> vector<8x128xf32>
    %370 = arith.addf %368, %369 : vector<8x128xf32>
    %371 = math.tanh %370 : vector<8x128xf32>
    %372 = vector.extract_strided_slice %348 {offsets = [0, 384], sizes = [8, 128], strides = [1, 1]} : vector<8x512xbf16> to vector<8x128xbf16>
    %373 = arith.extf %372 : vector<8x128xbf16> to vector<8x128xf32>
    %cst_95 = arith.constant dense<0.000000e+00> : vector<8x128xf32>
    %374 = tpu.matmul %345, %14, %cst_95 {dimension_numbers = #tpu.dot_dimension_numbers<[1], [0], [0], [1], [0, 0, 1, 1], [], []>} : vector<8x128xbf16>, vector<128x128xbf16>, vector<8x128xf32> -> vector<8x128xf32>
    %375 = arith.addf %373, %374 : vector<8x128xf32>
    %376 = arith.negf %375 : vector<8x128xf32>
    %377 = math.exp %376 : vector<8x128xf32>
    %cst_96 = arith.constant 1.000000e+00 : f32
    %378 = vector.broadcast %cst_96 : f32 to vector<8x128xf32>
    %379 = arith.addf %378, %377 : vector<8x128xf32>
    %380 = arith.divf %378, %379 : vector<8x128xf32>
    %381 = arith.mulf %366, %342 : vector<8x128xf32>
    %382 = arith.mulf %357, %371 : vector<8x128xf32>
    %383 = arith.addf %381, %382 : vector<8x128xf32>
    %384 = math.tanh %383 : vector<8x128xf32>
    %385 = arith.mulf %380, %384 : vector<8x128xf32>
    %c9_i32 = arith.constant 9 : i32
    %c0_97 = arith.constant 0 : index
    %c0_98 = arith.constant 0 : index
    %386 = vector.load %arg5[%c0_97, %c0_98] : memref<8x128xf32, #tpu.memory_space<vmem>>, vector<8x128xf32>
    tpu.vector_store %arg5[%c0_97, %c0_98], %385 {strides = array<i32>} : memref<8x128xf32, #tpu.memory_space<vmem>>, vector<8x128xf32>,
    return
  }
  func.func @transform_0(%arg0: i32) -> (i32, i32, i32) {
    %c0_i32 = arith.constant 0 : i32
    %c0_i32_0 = arith.constant 0 : i32
    %c0_i32_1 = arith.constant 0 : i32
    return %c0_i32, %arg0, %c0_i32_0 : i32, i32, i32
  }
  func.func @transform_1(%arg0: i32) -> (i32, i32) {
    %c0_i32 = arith.constant 0 : i32
    %c0_i32_0 = arith.constant 0 : i32
    %c0_i32_1 = arith.constant 0 : i32
    return %c0_i32, %c0_i32_0 : i32, i32
  }
  func.func @transform_2(%arg0: i32) -> (i32, i32) {
    %c0_i32 = arith.constant 0 : i32
    %c0_i32_0 = arith.constant 0 : i32
    %c0_i32_1 = arith.constant 0 : i32
    return %c0_i32, %c0_i32_0 : i32, i32
  }
  func.func @transform_3(%arg0: i32) -> (i32, i32) {
    %c0_i32 = arith.constant 0 : i32
    %c0_i32_0 = arith.constant 0 : i32
    %c0_i32_1 = arith.constant 0 : i32
    return %c0_i32, %c0_i32_0 : i32, i32
  }
  func.func @transform_4(%arg0: i32) -> (i32, i32) {
    %c0_i32 = arith.constant 0 : i32
    %c0_i32_0 = arith.constant 0 : i32
    return %arg0, %c0_i32 : i32, i32
  }
}

</mosaic_0001>

<bundles_post_ra>
// kernel: tpu_custom_call.1
= control target key start
LH: loop header
LB: loop body
LE: loop exit
PB: predicated region body
PF: predicated region fallthrough
CT: control target
= control target key end

     0   :  { %9 = vsyncpa [#allocation4], 0  ;;  %s5333_s0 = inlined_call_operand.hbm [shape: bf16[9,8,128], index: 0, kind: input, shape index: {}]   ;;  %s5334_s1 = inlined_call_operand.hbm [shape: bf16[128,512], index: 1, kind: input, shape index: {}]   ;;  %s5335_s2 = inlined_call_operand.hbm [shape: bf16[128,512], index: 2, kind: input, shape index: {}]   ;;  %s5336_s3 = inlined_call_operand.vmem [shape: f32[1,512], index: 3, kind: input, shape index: {}]   ;;  %s5337_s4 = inlined_call_operand.hbm [shape: f32[8,128], index: 4, kind: output, shape index: {}]  }
   0x1   :  { %10 = vsyncpa [#allocation7], 0 }
   0x2   :  { %11 = vsyncpa [#allocation5], 0  ;;  %s4308_s15 = smov [#allocation6]   ;;  %s4214_s19 = scalar_lea.hbm %s5334_s1, 4096 }
   0x3   :  { %s29_s16 = sshll.u32 %s4308_s15, 4  ;;  %p4215_p0 = scmp.ne.s32.totalorder %s5334_s1, %s4214_s19  ;;  %s30_s16 = int_to_ptr.vmem [resolvable:$true] %s29_s16 }
   0x4   :  { %p4218_p1 = scmp.lt.u32.totalorder %s4214_s19, %s5334_s1 }
   0x6   :  { %p4220_p2 = pnand %p4218_p1, %p4215_p0 }
   0x8   :  { %4223 = shalt.err (!%p4220_p2)
}
   0x9   :  { %s4224_s24 = scalar_lea.vmem %s30_s16, 4096  ;;  %p4229_p4 = scmp.lt.s32.totalorder %s30_s16, %s30_s16 }
   0xa   :  { %p4225_p3 = scmp.ne.s32.totalorder %s30_s16, %s4224_s24  ;;  %p4230_p5 = scmp.lt.s32.totalorder %s4224_s24, %s4224_s24 }
   0xc   :  { %p4231_p6 = por %p4230_p5, %p4229_p4 }
   0xe   :  { %p4232_p7 = pnand %p4231_p6, %p4225_p3 }
  0x10   :  { %4235 = shalt.err (!%p4232_p7)
}
  0x11   :  { %s4309_s25 = smov 256   ;;  %s4310_s26 = smov 16  }
  0x12   :  { %35 = dma.hbm_to_vmem [thread:$0]  %s5334_s1, 4096, %s30_s16, [#allocation7], %s4309_s25, %s4309_s25, %s4310_s26  }
  0x13   :  { %s4311_s29 = smov [#allocation3]   ;;  %s4236_s7 = scalar_lea.hbm %s5333_s0, 576 }
  0x14   :  { %s17_s30 = sshll.u32 %s4311_s29, 4  ;;  %p4237_p8 = scmp.ne.s32.totalorder %s5333_s0, %s4236_s7  ;;  %s18_s30 = int_to_ptr.vmem [resolvable:$true] %s17_s30 }
  0x15   :  { %p4240_p9 = scmp.lt.u32.totalorder %s4236_s7, %s5333_s0 }
  0x17   :  { %p4242_p10 = pnand %p4240_p9, %p4237_p8 }
  0x19   :  { %4245 = shalt.err (!%p4242_p10)
}
  0x1a   :  { %s4246_s12 = scalar_lea.vmem %s18_s30, 576  ;;  %p4251_p12 = scmp.lt.s32.totalorder %s18_s30, %s18_s30 }
  0x1b   :  { %p4247_p11 = scmp.ne.s32.totalorder %s18_s30, %s4246_s12  ;;  %p4252_p13 = scmp.lt.s32.totalorder %s4246_s12, %s4246_s12 }
  0x1d   :  { %p4253_p0 = por %p4252_p13, %p4251_p12 }
  0x1f   :  { %p4254_p1 = pnand %p4253_p0, %p4247_p11 }
  0x21   :  { %4257 = shalt.err (!%p4254_p1)
}
  0x22   :  { %s4312_s1 = smov 64   ;;  %s4313_s13 = smov 4  }
  0x23   :  { %23 = dma.hbm_to_vmem [thread:$0]  %s5333_s0, 576, %s18_s30, [#allocation4], %s4312_s1, %s4312_s1, %s4313_s13  }
  0x24   :  { %s4314_s16 = smov [#allocation8]   ;;  %s4258_s20 = scalar_lea.hbm %s5335_s2, 4096 }
  0x25   :  { %s41_s17 = sshll.u32 %s4314_s16, 4  ;;  %p4259_p2 = scmp.ne.s32.totalorder %s5335_s2, %s4258_s20  ;;  %s42_s17 = int_to_ptr.vmem [resolvable:$true] %s41_s17 }
  0x26   :  { %p4262_p3 = scmp.lt.u32.totalorder %s4258_s20, %s5335_s2 }
  0x28   :  { %p4264_p4 = pnand %p4262_p3, %p4259_p2 }
  0x2a   :  { %4267 = shalt.err (!%p4264_p4)
}
  0x2b   :  { %s4268_s27 = scalar_lea.vmem %s42_s17, 4096  ;;  %p4273_p6 = scmp.lt.s32.totalorder %s42_s17, %s42_s17 }
  0x2c   :  { %p4269_p5 = scmp.ne.s32.totalorder %s42_s17, %s4268_s27  ;;  %p4274_p7 = scmp.lt.s32.totalorder %s4268_s27, %s4268_s27 }
  0x2e   :  { %p4275_p8 = por %p4274_p7, %p4273_p6 }
  0x30   :  { %p4276_p9 = pnand %p4275_p8, %p4269_p5 }
  0x32   :  { %4279 = shalt.err (!%p4276_p9)
}
  0x33   :  { %47 = dma.hbm_to_vmem [thread:$0]  %s5335_s2, 4096, %s42_s17, [#allocation7], %s4309_s25, %s4309_s25, %s4310_s26  }
  0x34   :  { %4302 = dma.done.wait [#allocation4], 576  }
  0x35   :  { %4303 = vsyncadd [#allocation4], 4294966720 }
  0x36   :  { %4304 = dma.done.wait [#allocation7], 8192  }
  0x37   :  { %4305 = vsyncadd [#allocation7], 4294959104  ;;  %v4315_v0 = vmov 0   ;;  %v3947_v1 = vld [vmem:[#allocation6 + $0x4] ss:$16 sps:$4 sm:$0xff]   ;;  %v3995_v33 = vld [vmem:[#allocation3] sm:$0xff]  }
  0x38   :  { %321 = vmatprep.mubr.bf16.mxu0 %v4315_v0  ;;  %402 = vmatprep.mubr.bf16.mxu1 %v4315_v0  ;;  %v3949_v2 = vld [vmem:[#allocation6 + $0xc] ss:$16 sps:$4 sm:$0xff]   ;;  %v3951_v3 = vld [vmem:[#allocation6] ss:$16 sps:$4 sm:$0xff]   ;;  %v3952_v4 = vld [vmem:[#allocation6 + $0x8] ss:$16 sps:$4 sm:$0xff]  }
  0x39   :  { %289 = vmatprep.subr.bf16.mxu0 %v3947_v1  ;;  %370 = vmatprep.subr.bf16.mxu1 %v3949_v2  ;;  %v3953_v5 = vld [vmem:[#allocation6 + $0x24] ss:$16 sps:$4 sm:$0xff]   ;;  %v3955_v6 = vld [vmem:[#allocation6 + $0x2c] ss:$16 sps:$4 sm:$0xff]   ;;  %v3957_v7 = vld [vmem:[#allocation6 + $0x20] ss:$16 sps:$4 sm:$0xff]  }
  0x3a   :  { %290 = vmatpush1.bf16.msra.mxu0 %v3951_v3  ;;  %371 = vmatpush1.bf16.msra.mxu1 %v3952_v4  ;;  %v3958_v8 = vld [vmem:[#allocation6 + $0x28] ss:$16 sps:$4 sm:$0xff]   ;;  %v3959_v9 = vld [vmem:[#allocation6 + $0x44] ss:$16 sps:$4 sm:$0xff]   ;;  %v3961_v10 = vld [vmem:[#allocation6 + $0x4c] ss:$16 sps:$4 sm:$0xff]  }
  0x3b   :  { %291 = vmatprep.subr.bf16.mxu0 %v3953_v5  ;;  %372 = vmatprep.subr.bf16.mxu1 %v3955_v6  ;;  %v3963_v11 = vld [vmem:[#allocation6 + $0x40] ss:$16 sps:$4 sm:$0xff]   ;;  %v3964_v12 = vld [vmem:[#allocation6 + $0x48] ss:$16 sps:$4 sm:$0xff]   ;;  %v3965_v13 = vld [vmem:[#allocation6 + $0x64] ss:$16 sps:$4 sm:$0xff]  }
  0x3c   :  { %v3967_v14 = vld [vmem:[#allocation6 + $0x6c] ss:$16 sps:$4 sm:$0xff]   ;;  %v3969_v15 = vld [vmem:[#allocation6 + $0x60] ss:$16 sps:$4 sm:$0xff]   ;;  %v3970_v16 = vld [vmem:[#allocation6 + $0x68] ss:$16 sps:$4 sm:$0xff]  }
  0x3d   :  { %v3971_v17 = vld [vmem:[#allocation6 + $0x84] ss:$16 sps:$4 sm:$0xff]   ;;  %v3973_v18 = vld [vmem:[#allocation6 + $0x8c] ss:$16 sps:$4 sm:$0xff]   ;;  %v3975_v19 = vld [vmem:[#allocation6 + $0x80] ss:$16 sps:$4 sm:$0xff]  }
  0x3e   :  { %292 = vmatpush1.bf16.msra.mxu0 %v3957_v7  ;;  %373 = vmatpush1.bf16.msra.mxu1 %v3958_v8  ;;  %v3976_v20 = vld [vmem:[#allocation6 + $0x88] ss:$16 sps:$4 sm:$0xff]   ;;  %v3977_v21 = vld [vmem:[#allocation6 + $0xa4] ss:$16 sps:$4 sm:$0xff]   ;;  %v3979_v22 = vld [vmem:[#allocation6 + $0xac] ss:$16 sps:$4 sm:$0xff]  }
  0x3f   :  { %293 = vmatprep.subr.bf16.mxu0 %v3959_v9  ;;  %374 = vmatprep.subr.bf16.mxu1 %v3961_v10  ;;  %v3981_v23 = vld [vmem:[#allocation6 + $0xa0] ss:$16 sps:$4 sm:$0xff]   ;;  %v3982_v24 = vld [vmem:[#allocation6 + $0xa8] ss:$16 sps:$4 sm:$0xff]   ;;  %v3983_v25 = vld [vmem:[#allocation6 + $0xc4] ss:$16 sps:$4 sm:$0xff]  }
  0x40   :  { %v3985_v26 = vld [vmem:[#allocation6 + $0xcc] ss:$16 sps:$4 sm:$0xff]   ;;  %v3987_v27 = vld [vmem:[#allocation6 + $0xc0] ss:$16 sps:$4 sm:$0xff]   ;;  %v3988_v28 = vld [vmem:[#allocation6 + $0xc8] ss:$16 sps:$4 sm:$0xff]  }
  0x41   :  { %v3989_v29 = vld [vmem:[#allocation6 + $0xe4] ss:$16 sps:$4 sm:$0xff]   ;;  %v3991_v30 = vld [vmem:[#allocation6 + $0xec] ss:$16 sps:$4 sm:$0xff]   ;;  %v3993_v31 = vld [vmem:[#allocation6 + $0xe0] ss:$16 sps:$4 sm:$0xff]  }
  0x42   :  { %294 = vmatpush1.bf16.msra.mxu0 %v3963_v11  ;;  %375 = vmatpush1.bf16.msra.mxu1 %v3964_v12  ;;  %v3994_v32 = vld [vmem:[#allocation6 + $0xe8] ss:$16 sps:$4 sm:$0xff]   ;;  %v4388_v34 = vld [vmem:[#allocation8] ss:$16 sps:$4 sm:$0xff]   ;;  %v4390_v35 = vld [vmem:[#allocation8 + $0x4] ss:$16 sps:$4 sm:$0xff]  }
  0x43   :  { %295 = vmatprep.subr.bf16.mxu0 %v3965_v13  ;;  %376 = vmatprep.subr.bf16.mxu1 %v3967_v14  ;;  %v5338_v36 = vmov 0.0   ;;  %v4394_v37 = vld [vmem:[#allocation8 + $0x20] ss:$16 sps:$4 sm:$0xff]   ;;  %v4398_v38 = vld [vmem:[#allocation8 + $0x24] ss:$16 sps:$4 sm:$0xff]   ;;  %vm4317_vm0 = vmmov 0  }
  0x44   :  { %v4000_v39 = vld [vmem:[#allocation3 + $0x8] sm:$0xff]   ;;  %v4404_v40 = vld [vmem:[#allocation8 + $0x40] ss:$16 sps:$4 sm:$0xff]   ;;  %v4008_v49 = vld [vmem:[#allocation3 + $0x18] sm:$0xff]  }
  0x45   :  { %v4408_v41 = vld [vmem:[#allocation8 + $0x44] ss:$16 sps:$4 sm:$0xff]   ;;  %v4412_v42 = vld [vmem:[#allocation8 + $0x60] ss:$16 sps:$4 sm:$0xff]   ;;  %v4013_v54 = vld [vmem:[#allocation3 + $0x20] ss:$0 sps:$4 sm:$0xff]  }
  0x46   :  { %296 = vmatpush1.bf16.msra.mxu0 %v3969_v15  ;;  %377 = vmatpush1.bf16.msra.mxu1 %v3970_v16  ;;  %v4416_v43 = vld [vmem:[#allocation8 + $0x64] ss:$16 sps:$4 sm:$0xff]   ;;  %v4003_v44 = vld [vmem:[#allocation3 + $0x10] sm:$0xff]   ;;  %v4466_v55 = vld [vmem:[#allocation8 + $0x8] ss:$16 sps:$4 sm:$0xff]  }
  0x47   :  { %297 = vmatprep.subr.bf16.mxu0 %v3971_v17  ;;  %378 = vmatprep.subr.bf16.mxu1 %v3973_v18  ;;  %v4422_v45 = vld [vmem:[#allocation8 + $0x80] ss:$16 sps:$4 sm:$0xff]   ;;  %v4426_v46 = vld [vmem:[#allocation8 + $0x84] ss:$16 sps:$4 sm:$0xff]   ;;  %v4468_v56 = vld [vmem:[#allocation8 + $0xc] ss:$16 sps:$4 sm:$0xff]  }
  0x48   :  { %v4430_v47 = vld [vmem:[#allocation8 + $0xa0] ss:$16 sps:$4 sm:$0xff]   ;;  %v4434_v48 = vld [vmem:[#allocation8 + $0xa4] ss:$16 sps:$4 sm:$0xff]   ;;  %v4474_v57 = vld [vmem:[#allocation8 + $0x28] ss:$16 sps:$4 sm:$0xff]  }
  0x49   :  { %v4442_v50 = vld [vmem:[#allocation8 + $0xc0] ss:$16 sps:$4 sm:$0xff]   ;;  %v4446_v51 = vld [vmem:[#allocation8 + $0xc4] ss:$16 sps:$4 sm:$0xff]   ;;  %v4476_v58 = vld [vmem:[#allocation8 + $0x2c] ss:$16 sps:$4 sm:$0xff]  }
  0x4a   :  { %298 = vmatpush1.bf16.msra.mxu0 %v3975_v19  ;;  %379 = vmatpush1.bf16.msra.mxu1 %v3976_v20  ;;  %v4452_v52 = vld [vmem:[#allocation8 + $0xe0] ss:$16 sps:$4 sm:$0xff]   ;;  %v4454_v53 = vld [vmem:[#allocation8 + $0xe4] ss:$16 sps:$4 sm:$0xff]   ;;  %v4486_v59 = vld [vmem:[#allocation8 + $0x48] ss:$16 sps:$4 sm:$0xff]  }
  0x4b   :  { %299 = vmatprep.subr.bf16.mxu0 %v3977_v21  ;;  %380 = vmatprep.subr.bf16.mxu1 %v3979_v22  ;;  %v4488_v60 = vld [vmem:[#allocation8 + $0x4c] ss:$16 sps:$4 sm:$0xff]   ;;  %v4494_v61 = vld [vmem:[#allocation8 + $0x68] ss:$16 sps:$4 sm:$0xff]  }
  0x4c   :  { %v4496_v62 = vld [vmem:[#allocation8 + $0x6c] ss:$16 sps:$4 sm:$0xff]   ;;  %v4502_v63 = vld [vmem:[#allocation8 + $0x88] ss:$16 sps:$4 sm:$0xff]  }
  0x4d   :  { %v4504_v1 = vld [vmem:[#allocation8 + $0x8c] ss:$16 sps:$4 sm:$0xff]   ;;  %v4510_v2 = vld [vmem:[#allocation8 + $0xa8] ss:$16 sps:$4 sm:$0xff]  }
  0x4e   :  { %300 = vmatpush1.bf16.msra.mxu0 %v3981_v23  ;;  %381 = vmatpush1.bf16.msra.mxu1 %v3982_v24  ;;  %v4512_v3 = vld [vmem:[#allocation8 + $0xac] ss:$16 sps:$4 sm:$0xff]   ;;  %v4518_v4 = vld [vmem:[#allocation8 + $0xc8] ss:$16 sps:$4 sm:$0xff]  }
  0x4f   :  { %301 = vmatprep.subr.bf16.mxu0 %v3983_v25  ;;  %382 = vmatprep.subr.bf16.mxu1 %v3985_v26  ;;  %v4520_v5 = vld [vmem:[#allocation8 + $0xcc] ss:$16 sps:$4 sm:$0xff]   ;;  %v4526_v6 = vld [vmem:[#allocation8 + $0xe8] ss:$16 sps:$4 sm:$0xff]  }
  0x50   :  { %v4528_v7 = vld [vmem:[#allocation8 + $0xec] ss:$16 sps:$4 sm:$0xff]  }
  0x51   :  { %v451_v11 = vld [vmem:[%s5336_s3] sm:$0xf]  ;;  %s4318_s3 = smov [#allocation9]  }
  0x52   :  { %302 = vmatpush1.bf16.msra.mxu0 %v3987_v27  ;;  %383 = vmatpush1.bf16.msra.mxu1 %v3988_v28  ;;  %s2750_s26 = sshll.u32 %s4318_s3, 4  ;;  %s2751_s26 = int_to_ptr.vmem [resolvable:$true] %s2750_s26 }
  0x53   :  { %303 = vmatprep.subr.bf16.mxu0 %v3989_v29  ;;  %384 = vmatprep.subr.bf16.mxu1 %v3991_v30  ;;  %s4280_s29 = scalar_lea.vmem %s2751_s26, 128  ;;  %p4285_p11 = scmp.lt.s32.totalorder %s2751_s26, %s2751_s26 }
  0x54   :  { %p4281_p10 = scmp.ne.s32.totalorder %s2751_s26, %s4280_s29  ;;  %p4286_p12 = scmp.lt.s32.totalorder %s4280_s29, %s4280_s29 }
  0x56   :  { %304 = vmatpush1.bf16.msra.mxu0 %v3993_v31  ;;  %385 = vmatpush1.bf16.msra.mxu1 %v3994_v32  ;;  %p4287_p13 = por %p4286_p12, %p4285_p11 }
  0x57   :  { %3216 = vmatprep.subr.bf16.mxu0 %v5338_v36  ;;  %3236 = vmatprep.subr.bf16.mxu1 %v5338_v36 }
  0x58   :  { %p4288_p0 = pnand %p4287_p13, %p4281_p10 }
  0x59   :  { %322 = vmatmul.mubr.bf16.vlgmr.msra.gmra.mrb[0].mxu0 %v3995_v33  ;;  %403 = vmatmul.mubr.bf16.vlgmr.msra.gmra.mrb[0].mxu1 %v3995_v33 }
  0x5a   :  { %3217 = vmatpush3.bf16.msra.mxu0 %v4388_v34  ;;  %3237 = vmatpush3.bf16.msra.mxu1 %v4390_v35 }
  0x5b   :  { %3218 = vmatprep.subr.bf16.mxu0 %v5338_v36  ;;  %3238 = vmatprep.subr.bf16.mxu1 %v5338_v36 }
  0x5c   :  { %331 = vmatprep.mubr.bf16.mxu0 %v4315_v0  ;;  %412 = vmatprep.mubr.bf16.mxu1 %v4315_v0 }
  0x5e   :  { %3219 = vmatpush3.bf16.msra.mxu0 %v4394_v37  ;;  %3239 = vmatpush3.bf16.msra.mxu1 %v4398_v38 }
  0x5f   :  { %3220 = vmatprep.subr.bf16.mxu0 %v5338_v36  ;;  %3240 = vmatprep.subr.bf16.mxu1 %v5338_v36 }
  0x61   :  { %332 = vmatmul.mubr.bf16.gmra.mrb[4].mxu0 %v4000_v39  ;;  %413 = vmatmul.mubr.bf16.gmra.mrb[4].mxu1 %v4000_v39 }
  0x62   :  { %3221 = vmatpush3.bf16.msra.mxu0 %v4404_v40  ;;  %3241 = vmatpush3.bf16.msra.mxu1 %v4408_v41 }
  0x63   :  { %341 = vmatprep.mubr.bf16.mxu0 %v4315_v0  ;;  %422 = vmatprep.mubr.bf16.mxu1 %v4315_v0 }
  0x64   :  { %3222 = vmatprep.subr.bf16.mxu0 %v5338_v36  ;;  %3242 = vmatprep.subr.bf16.mxu1 %v5338_v36 }
  0x66   :  { %3223 = vmatpush3.bf16.msra.mxu0 %v4412_v42  ;;  %3243 = vmatpush3.bf16.msra.mxu1 %v4416_v43 }
  0x67   :  { %3224 = vmatprep.subr.bf16.mxu0 %v5338_v36  ;;  %3244 = vmatprep.subr.bf16.mxu1 %v5338_v36 }
  0x69   :  { %342 = vmatmul.mubr.bf16.gmra.mrb[8].mxu0 %v4003_v44  ;;  %423 = vmatmul.mubr.bf16.gmra.mrb[8].mxu1 %v4003_v44 }
  0x6a   :  { %3225 = vmatpush3.bf16.msra.mxu0 %v4422_v45  ;;  %3245 = vmatpush3.bf16.msra.mxu1 %v4426_v46 }
  0x6b   :  { %351 = vmatprep.mubr.bf16.mxu0 %v4315_v0  ;;  %432 = vmatprep.mubr.bf16.mxu1 %v4315_v0 }
  0x6c   :  { %3226 = vmatprep.subr.bf16.mxu0 %v5338_v36  ;;  %3246 = vmatprep.subr.bf16.mxu1 %v5338_v36 }
  0x6e   :  { %3227 = vmatpush3.bf16.msra.mxu0 %v4430_v47  ;;  %3247 = vmatpush3.bf16.msra.mxu1 %v4434_v48 }
  0x6f   :  { %3228 = vmatprep.subr.bf16.mxu0 %v5338_v36  ;;  %3248 = vmatprep.subr.bf16.mxu1 %v5338_v36 }
  0x71   :  { %352 = vmatmul.mubr.bf16.gmra.mrb[12].mxu0 %v4008_v49  ;;  %433 = vmatmul.mubr.bf16.gmra.mrb[12].mxu1 %v4008_v49 }
  0x72   :  { %361 = vmatprep.mubr.bf16.mxu0 %v4315_v0  ;;  %442 = vmatprep.mubr.bf16.mxu1 %v4315_v0 }
  0x73   :  { %3229 = vmatpush3.bf16.msra.mxu0 %v4442_v50  ;;  %3249 = vmatpush3.bf16.msra.mxu1 %v4446_v51 }
  0x74   :  { %3230 = vmatprep.subr.bf16.mxu0 %v5338_v36  ;;  %3250 = vmatprep.subr.bf16.mxu1 %v5338_v36 }
  0x77   :  { %3231 = vmatpush3.bf16.msra.mxu0 %v4452_v52  ;;  %3251 = vmatpush3.bf16.msra.mxu1 %v4454_v53 }
  0x78   :  { %3256 = vmatprep.subr.bf16.mxu0 %v5338_v36  ;;  %3276 = vmatprep.subr.bf16.mxu1 %v5338_v36 }
  0x79   :  { %362 = vmatmul.mubr.bf16.gmra.mrb[16].mxu0 %v4013_v54  ;;  %443 = vmatmul.mubr.bf16.gmra.mrb[16].mxu1 %v4013_v54 }
  0x7a   :  { %3232 = vmatprep.mubr.msk.bf16.mxu0 %vm4317_vm0, %v5338_v36  ;;  %3252 = vmatprep.mubr.msk.bf16.mxu1 %vm4317_vm0, %v5338_v36 }
  0x81   :  { %3233 = vmatmul.mubr.bf16.vlgmr.msra.gmra.mrb[20].mxu0 %v4315_v0  ;;  %3253 = vmatmul.mubr.bf16.vlgmr.msra.gmra.mrb[20].mxu1 %v4315_v0 }
  0x82   :  { %3257 = vmatpush3.bf16.msra.mxu0 %v4466_v55  ;;  %3277 = vmatpush3.bf16.msra.mxu1 %v4468_v56 }
  0x83   :  { %3258 = vmatprep.subr.bf16.mxu0 %v5338_v36  ;;  %3278 = vmatprep.subr.bf16.mxu1 %v5338_v36 }
  0x84   :  { %3272 = vmatprep.mubr.msk.bf16.mxu0 %vm4317_vm0, %v5338_v36  ;;  %3292 = vmatprep.mubr.msk.bf16.mxu1 %vm4317_vm0, %v5338_v36 }
  0x86   :  { %3259 = vmatpush3.bf16.msra.mxu0 %v4474_v57  ;;  %3279 = vmatpush3.bf16.msra.mxu1 %v4476_v58 }
  0x87   :  { %3260 = vmatprep.subr.bf16.mxu0 %v5338_v36  ;;  %3280 = vmatprep.subr.bf16.mxu1 %v5338_v36 }
  0x8a   :  { %3261 = vmatpush3.bf16.msra.mxu0 %v4486_v59  ;;  %3281 = vmatpush3.bf16.msra.mxu1 %v4488_v60 }
  0x8b   :  { %3262 = vmatprep.subr.bf16.mxu0 %v5338_v36  ;;  %3282 = vmatprep.subr.bf16.mxu1 %v5338_v36 }
  0x8e   :  { %3263 = vmatpush3.bf16.msra.mxu0 %v4494_v61  ;;  %3283 = vmatpush3.bf16.msra.mxu1 %v4496_v62 }
  0x8f   :  { %3264 = vmatprep.subr.bf16.mxu0 %v5338_v36  ;;  %3284 = vmatprep.subr.bf16.mxu1 %v5338_v36 }
  0x92   :  { %3265 = vmatpush3.bf16.msra.mxu0 %v4502_v63  ;;  %3285 = vmatpush3.bf16.msra.mxu1 %v4504_v1 }
  0x93   :  { %3266 = vmatprep.subr.bf16.mxu0 %v5338_v36  ;;  %3286 = vmatprep.subr.bf16.mxu1 %v5338_v36 }
  0x96   :  { %3267 = vmatpush3.bf16.msra.mxu0 %v4510_v2  ;;  %3287 = vmatpush3.bf16.msra.mxu1 %v4512_v3 }
  0x97   :  { %3268 = vmatprep.subr.bf16.mxu0 %v5338_v36  ;;  %3288 = vmatprep.subr.bf16.mxu1 %v5338_v36 }
  0x9a   :  { %3269 = vmatpush3.bf16.msra.mxu0 %v4518_v4  ;;  %3289 = vmatpush3.bf16.msra.mxu1 %v4520_v5 }
  0x9b   :  { %3270 = vmatprep.subr.bf16.mxu0 %v5338_v36  ;;  %3290 = vmatprep.subr.bf16.mxu1 %v5338_v36 }
  0x9e   :  { %3271 = vmatpush3.bf16.msra.mxu0 %v4526_v6  ;;  %3291 = vmatpush3.bf16.msra.mxu1 %v4528_v7 }
  0x9f   :  { %3296 = vmatprep.subr.bf16.mxu0 %v5338_v36  ;;  %3316 = vmatprep.subr.bf16.mxu1 %v5338_v36 }
  0xa1   :  { %3273 = vmatmul.mubr.bf16.vlgmr.msra.gmra.mrb[24].mxu0 %v4315_v0  ;;  %3293 = vmatmul.mubr.bf16.vlgmr.msra.gmra.mrb[24].mxu1 %v4315_v0  ;;  %v453_v0 = vlaneseq }
  0xa2   :  { %3297 = vmatpush3.bf16.msra.mxu0 %v4388_v34  ;;  %3317 = vmatpush3.bf16.msra.mxu1 %v4390_v35 }
  0xa3   :  { %3298 = vmatprep.subr.bf16.mxu0 %v5338_v36  ;;  %3318 = vmatprep.subr.bf16.mxu1 %v5338_v36  ;;  %v454_v8 = vshrl.u32 %v453_v0, 7 }
  0xa4   :  { %3312 = vmatprep.mubr.msk.bf16.mxu0 %vm4317_vm0, %v5338_v36  ;;  %3332 = vmatprep.mubr.msk.bf16.mxu1 %vm4317_vm0, %v5338_v36 }
  0xa5   :  { %v455_v9 = vsub.s32 0, %v454_v8  ;;  %v463_v10 = vsub.s32 2, %v454_v8  ;;  %v459_v12 = vsub.s32 1, %v454_v8  ;;  %v467_v13 = vsub.s32 3, %v454_v8 }
  0xa6   :  { %3299 = vmatpush3.bf16.msra.mxu0 %v4394_v37  ;;  %3319 = vmatpush3.bf16.msra.mxu1 %v4398_v38 }
  0xa7   :  { %3300 = vmatprep.subr.bf16.mxu0 %v5338_v36  ;;  %3320 = vmatprep.subr.bf16.mxu1 %v5338_v36  ;;  %v4577_v14 = vrot.slane %v451_v11, %v455_v9  ;;  %v4579_v15 = vrot.slane %v451_v11, %v463_v10  ;;  %v4581_v16 = vrot.slane %v451_v11, %v459_v12 }
  0xa8   :  { %v4583_v17 = vrot.slane %v451_v11, %v467_v13 }
  0xaa   :  { %3301 = vmatpush3.bf16.msra.mxu0 %v4404_v40  ;;  %3321 = vmatpush3.bf16.msra.mxu1 %v4408_v41 }
  0xab   :  { %3302 = vmatprep.subr.bf16.mxu0 %v5338_v36  ;;  %3322 = vmatprep.subr.bf16.mxu1 %v5338_v36 }
  0xae   :  { %3303 = vmatpush3.bf16.msra.mxu0 %v4412_v42  ;;  %3323 = vmatpush3.bf16.msra.mxu1 %v4416_v43 }
  0xaf   :  { %3304 = vmatprep.subr.bf16.mxu0 %v5338_v36  ;;  %3324 = vmatprep.subr.bf16.mxu1 %v5338_v36 }
  0xb2   :  { %3305 = vmatpush3.bf16.msra.mxu0 %v4422_v45  ;;  %3325 = vmatpush3.bf16.msra.mxu1 %v4426_v46 }
  0xb3   :  { %3306 = vmatprep.subr.bf16.mxu0 %v5338_v36  ;;  %3326 = vmatprep.subr.bf16.mxu1 %v5338_v36 }
  0xb6   :  { %3307 = vmatpush3.bf16.msra.mxu0 %v4430_v47  ;;  %3327 = vmatpush3.bf16.msra.mxu1 %v4434_v48 }
  0xb7   :  { %3308 = vmatprep.subr.bf16.mxu0 %v5338_v36  ;;  %3328 = vmatprep.subr.bf16.mxu1 %v5338_v36 }
  0xba   :  { %3309 = vmatpush3.bf16.msra.mxu0 %v4442_v50  ;;  %3329 = vmatpush3.bf16.msra.mxu1 %v4446_v51 }
  0xbb   :  { %3310 = vmatprep.subr.bf16.mxu0 %v5338_v36  ;;  %3330 = vmatprep.subr.bf16.mxu1 %v5338_v36 }
  0xbe   :  { %3311 = vmatpush3.bf16.msra.mxu0 %v4452_v52  ;;  %3331 = vmatpush3.bf16.msra.mxu1 %v4454_v53 }
  0xbf   :  { %3336 = vmatprep.subr.bf16.mxu0 %v5338_v36  ;;  %3356 = vmatprep.subr.bf16.mxu1 %v5338_v36 }
 0x12c   :  { %v323_v18 = vpop.f32.mrb[0].mxu0  ;;  %v404_v19 = vpop.f32.mrb[0].mxu1 }
 0x12d   :  { %v473_v20 = vadd.f32 %v4577_v14, %v323_v18  ;;  %v475_v21 = vadd.f32 %v4579_v15, %v404_v19  ;;  %v325_v22 = vpop.f32.mrb[1].mxu0  ;;  %v406_v23 = vpop.f32.mrb[1].mxu1 }
 0x12e   :  { %v474_v24 = vadd.f32 %v4581_v16, %v325_v22  ;;  %v476_v25 = vadd.f32 %v4583_v17, %v406_v23  ;;  %v327_v26 = vpop.f32.mrb[2].mxu0  ;;  %v408_v27 = vpop.f32.mrb[2].mxu1 }
 0x12f   :  { %v477_v28 = vadd.f32 %v4577_v14, %v327_v26  ;;  %v479_v29 = vadd.f32 %v4579_v15, %v408_v27  ;;  %v329_v30 = vpop.f32.mrb[3].mxu0  ;;  %v410_v31 = vpop.f32.mrb[3].mxu1 }
 0x130   :  { %v4591_v32 = vpack.c.bf16 %v474_v24, %v473_v20  ;;  %v4593_v33 = vpack.c.bf16 %v476_v25, %v475_v21  ;;  %v478_v39 = vadd.f32 %v4581_v16, %v329_v30  ;;  %v480_v44 = vadd.f32 %v4583_v17, %v410_v31 }
 0x132   :  { %v4597_v49 = vpack.c.bf16 %v478_v39, %v477_v28  ;;  %v4599_v54 = vpack.c.bf16 %v480_v44, %v479_v29 }
 0x134   :  { %v333_v0 = vpop.f32.mrb[4].mxu0  ;;  %v414_v8 = vpop.f32.mrb[4].mxu1 }
 0x135   :  { %v481_v9 = vadd.f32 %v4577_v14, %v333_v0  ;;  %v483_v10 = vadd.f32 %v4579_v15, %v414_v8  ;;  %v335_v11 = vpop.f32.mrb[5].mxu0  ;;  %v416_v12 = vpop.f32.mrb[5].mxu1 }
 0x136   :  { %v482_v13 = vadd.f32 %v4581_v16, %v335_v11  ;;  %v484_v18 = vadd.f32 %v4583_v17, %v416_v12  ;;  %v337_v19 = vpop.f32.mrb[6].mxu0  ;;  %v418_v20 = vpop.f32.mrb[6].mxu1 }
 0x137   :  { %v485_v21 = vadd.f32 %v4577_v14, %v337_v19  ;;  %v487_v22 = vadd.f32 %v4579_v15, %v418_v20  ;;  %v339_v23 = vpop.f32.mrb[7].mxu0  ;;  %v420_v24 = vpop.f32.mrb[7].mxu1 }
 0x138   :  { %v4607_v25 = vpack.c.bf16 %v482_v13, %v481_v9  ;;  %v4609_v26 = vpack.c.bf16 %v484_v18, %v483_v10  ;;  %v486_v27 = vadd.f32 %v4581_v16, %v339_v23  ;;  %v488_v28 = vadd.f32 %v4583_v17, %v420_v24 }
 0x13a   :  { %v4613_v29 = vpack.c.bf16 %v486_v27, %v485_v21  ;;  %v4615_v30 = vpack.c.bf16 %v488_v28, %v487_v22 }
 0x13c   :  { %v343_v31 = vpop.f32.mrb[8].mxu0  ;;  %v424_v39 = vpop.f32.mrb[8].mxu1 }
 0x13d   :  { %v489_v44 = vadd.f32 %v4577_v14, %v343_v31  ;;  %v491_v0 = vadd.f32 %v4579_v15, %v424_v39  ;;  %v345_v8 = vpop.f32.mrb[9].mxu0  ;;  %v426_v11 = vpop.f32.mrb[9].mxu1 }
 0x13e   :  { %v490_v9 = vadd.f32 %v4581_v16, %v345_v8  ;;  %v492_v10 = vadd.f32 %v4583_v17, %v426_v11  ;;  %v347_v12 = vpop.f32.mrb[10].mxu0  ;;  %v428_v13 = vpop.f32.mrb[10].mxu1 }
 0x13f   :  { %v493_v18 = vadd.f32 %v4577_v14, %v347_v12  ;;  %v495_v19 = vadd.f32 %v4579_v15, %v428_v13  ;;  %v349_v20 = vpop.f32.mrb[11].mxu0  ;;  %v430_v21 = vpop.f32.mrb[11].mxu1 }
 0x140   :  { %v4623_v22 = vpack.c.bf16 %v490_v9, %v489_v44  ;;  %v4625_v23 = vpack.c.bf16 %v492_v10, %v491_v0  ;;  %v494_v24 = vadd.f32 %v4581_v16, %v349_v20  ;;  %v496_v27 = vadd.f32 %v4583_v17, %v430_v21 }
 0x142   :  { %5346 = vst [vmem:[#allocation13_spill] sm:$0xff] %v4623_v22  ;;  %5347 = vst [vmem:[#allocation14_spill] sm:$0xff] %v4625_v23  ;;  %v4629_v28 = vpack.c.bf16 %v494_v24, %v493_v18  ;;  %v4631_v31 = vpack.c.bf16 %v496_v27, %v495_v19 }
 0x144   :  { %5348 = vst [vmem:[#allocation15_spill] sm:$0xff] %v4629_v28  ;;  %5349 = vst [vmem:[#allocation16_spill] sm:$0xff] %v4631_v31  ;;  %v353_v39 = vpop.f32.mrb[12].mxu0  ;;  %v434_v8 = vpop.f32.mrb[12].mxu1 }
 0x145   :  { %v497_v11 = vadd.f32 %v4577_v14, %v353_v39  ;;  %v499_v12 = vadd.f32 %v4579_v15, %v434_v8  ;;  %v355_v13 = vpop.f32.mrb[13].mxu0  ;;  %v436_v36 = vpop.f32.mrb[13].mxu1 }
 0x146   :  { %v498_v44 = vadd.f32 %v4581_v16, %v355_v13  ;;  %v500_v0 = vadd.f32 %v4583_v17, %v436_v36  ;;  %v357_v9 = vpop.f32.mrb[14].mxu0  ;;  %v438_v10 = vpop.f32.mrb[14].mxu1 }
 0x147   :  { %v501_v20 = vadd.f32 %v4577_v14, %v357_v9  ;;  %v503_v18 = vadd.f32 %v4579_v15, %v438_v10  ;;  %v359_v19 = vpop.f32.mrb[15].mxu0  ;;  %v440_v21 = vpop.f32.mrb[15].mxu1 }
 0x148   :  { %v4639_v24 = vpack.c.bf16 %v498_v44, %v497_v11  ;;  %v4641_v27 = vpack.c.bf16 %v500_v0, %v499_v12  ;;  %v502_v39 = vadd.f32 %v4581_v16, %v359_v19  ;;  %v504_v8 = vadd.f32 %v4583_v17, %v440_v21 }
 0x14a   :  { %v4645_v31 = vpack.c.bf16 %v502_v39, %v501_v20  ;;  %v4647_v13 = vpack.c.bf16 %v504_v8, %v503_v18  ;;  %v834_v20 = vrot.slane %v4591_v32, 4 }
 0x14c   :  { %5350 = vst [vmem:[#allocation17_spill] sm:$0xff] %v4647_v13  ;;  %v363_v36 = vpop.f32.mrb[16].mxu0  ;;  %v444_v28 = vpop.f32.mrb[16].mxu1  ;;  %v836_v8 = vunpack.c.l.bf16 %v834_v20  ;;  %v932_v20 = vunpack.c.l.bf16 %v4593_v33 }
 0x14d   :  { %v505_v9 = vadd.f32 %v4577_v14, %v363_v36  ;;  %v507_v10 = vadd.f32 %v4579_v15, %v444_v28  ;;  %v365_v23 = vpop.f32.mrb[17].mxu0  ;;  %v446_v22 = vpop.f32.mrb[17].mxu1  ;;  %v737_v14 = vunpack.c.l.bf16 %v4591_v32 }
 0x14e   :  { %v506_v11 = vadd.f32 %v4581_v16, %v365_v23  ;;  %v508_v12 = vadd.f32 %v4583_v17, %v446_v22  ;;  %v367_v44 = vpop.f32.mrb[18].mxu0  ;;  %v448_v0 = vpop.f32.mrb[18].mxu1 }
 0x14f   :  { %v368_v19 = vpop.f32.mrb[19].mxu0  ;;  %v449_v21 = vpop.f32.mrb[19].mxu1 }
 0x150   :  { %v4654_v18 = vpack.c.bf16 %v506_v11, %v505_v9  ;;  %v4656_v39 = vpack.c.bf16 %v508_v12, %v507_v10  ;;  %v1024_v11 = vrot.slane %v4593_v33, 4 }
 0x152   :  { %5351 = vst [vmem:[#allocation18_spill] sm:$0xff] %v4656_v39 }
 0x154   :  { %v820_v15 = vpop.f32.mrb[20].mxu0  ;;  %v919_v28 = vpop.f32.mrb[20].mxu1 }
 0x155   :  { %v826_v36 = vadd.f32 %v820_v15, %v737_v14  ;;  %v925_v13 = vadd.f32 %v919_v28, %v836_v8  ;;  %v3234_v16 = vpop.f32.mrb[21].mxu0  ;;  %v3254_v23 = vpop.f32.mrb[21].mxu1  ;;  %v1026_v14 = vunpack.c.l.bf16 %v1024_v11 }
 0x156   :  { %v823_v17 = vpop.f32.mrb[22].mxu0  ;;  %v922_v22 = vpop.f32.mrb[22].mxu1 }
 0x157   :  { %v3235_v44 = vpop.f32.mrb[23].mxu0  ;;  %v3255_v0 = vpop.f32.mrb[23].mxu1  ;;  %v2832_v19 = vmul.f32 -1.442695, %v925_v13  ;;  %v2823_v21 = vmul.f32 -1.442695, %v826_v36 }
 0x159   :  { %4032 = vpow2.f32 %v2832_v19 }
 0x15a   :  { %4034 = vpow2.f32 %v2823_v21 }
 0x163   :  { %v4033_v9 = vpop.eup %4032 }
 0x164   :  { %v4035_v10 = vpop.eup %4034  ;;  %v929_v32 = vadd.f32 1.0, %v4033_v9 }
 0x165   :  { %v830_v12 = vadd.f32 1.0, %v4035_v10 }
 0x166   :  { %4036 = vrcp.f32 %v929_v32 }
 0x167   :  { %4038 = vrcp.f32 %v830_v12 }
 0x170   :  { %v4037_v19 = vpop.eup %4036 }
 0x171   :  { %v4039_v21 = vpop.eup %4038  ;;  %v1122_v33 = vmul.f32 0.0, %v4037_v19 }
 0x174   :  { %v1015_v8 = vpop.f32.mrb[24].mxu0  ;;  %v1109_v15 = vpop.f32.mrb[24].mxu1 }
 0x175   :  { %v1021_v28 = vadd.f32 %v1015_v8, %v932_v20  ;;  %v1115_v16 = vadd.f32 %v1109_v15, %v1026_v14  ;;  %v3274_v23 = vpop.f32.mrb[25].mxu0  ;;  %v3294_v17 = vpop.f32.mrb[25].mxu1  ;;  %v5352_v15 = vmov 0.0  }
 0x176   :  { %v1018_v13 = vpop.f32.mrb[26].mxu0  ;;  %v1112_v36 = vpop.f32.mrb[26].mxu1 }
 0x177   :  { %4040 = vtanh.f32 %v1021_v28  ;;  %v2849_v22 = vmul.f32 -1.442695, %v1115_v16  ;;  %v3275_v44 = vpop.f32.mrb[27].mxu0  ;;  %v3295_v0 = vpop.f32.mrb[27].mxu1 }
 0x179   :  { %4042 = vpow2.f32 %v2849_v22 }
 0x181   :  { %v4041_v9 = vpop.eup %4040 }
 0x182   :  { %v1123_v10 = vmul.f32 %v4041_v9, %v4039_v21  ;;  %v1274_v9 = vrot.slane %v4599_v54, 4 }
 0x183   :  { %v4043_v11 = vpop.eup %4042 }
 0x184   :  { %v4661_v39 = vadd.f32 %v1123_v10, %v1122_v33  ;;  %v1119_v32 = vadd.f32 1.0, %v4043_v11  ;;  %v1230_v10 = vunpack.c.l.bf16 %v4599_v54  ;;  %v1276_v11 = vunpack.c.l.bf16 %v1274_v9  ;;  %v4783_v9 = vld [vmem:[#allocation8 + $0x4] ss:$16 sps:$4 sm:$0xff]  }
 0x186   :  { %4044 = vtanh.f32 %v4661_v39 }
 0x187   :  { %4046 = vrcp.f32 %v1119_v32 }
 0x190   :  { %v4045_v12 = vpop.eup %4044 }
 0x191   :  { %v4047_v20 = vpop.eup %4046 }
 0x192   :  { %v1126_v14 = vmul.f32 %v4047_v20, %v4045_v12 }
 0x194   :  { %v1127_v8 = vpack.c.bf16 %v1126_v14, %v1126_v14 }
 0x196   :  { %3313 = vmatmul.mubr.bf16.vlgmr.msra.gmra.mrb[28].mxu0 %v1127_v8  ;;  %3333 = vmatmul.mubr.bf16.vlgmr.msra.gmra.mrb[28].mxu1 %v1127_v8 }
 0x197   :  { %3337 = vmatpush3.bf16.msra.mxu0 %v4466_v55  ;;  %3357 = vmatpush3.bf16.msra.mxu1 %v4468_v56 }
 0x198   :  { %3338 = vmatprep.subr.bf16.mxu0 %v5352_v15  ;;  %3358 = vmatprep.subr.bf16.mxu1 %v5352_v15 }
 0x199   :  { %3352 = vmatprep.mubr.msk.bf16.mxu0 %vm4317_vm0, %v5352_v15  ;;  %3372 = vmatprep.mubr.msk.bf16.mxu1 %vm4317_vm0, %v5352_v15 }
 0x19b   :  { %3339 = vmatpush3.bf16.msra.mxu0 %v4474_v57  ;;  %3359 = vmatpush3.bf16.msra.mxu1 %v4476_v58 }
 0x19c   :  { %3340 = vmatprep.subr.bf16.mxu0 %v5352_v15  ;;  %3360 = vmatprep.subr.bf16.mxu1 %v5352_v15 }
 0x19f   :  { %3341 = vmatpush3.bf16.msra.mxu0 %v4486_v59  ;;  %3361 = vmatpush3.bf16.msra.mxu1 %v4488_v60 }
 0x1a0   :  { %3342 = vmatprep.subr.bf16.mxu0 %v5352_v15  ;;  %3362 = vmatprep.subr.bf16.mxu1 %v5352_v15 }
 0x1a3   :  { %3343 = vmatpush3.bf16.msra.mxu0 %v4494_v61  ;;  %3363 = vmatpush3.bf16.msra.mxu1 %v4496_v62 }
 0x1a4   :  { %3344 = vmatprep.subr.bf16.mxu0 %v5352_v15  ;;  %3364 = vmatprep.subr.bf16.mxu1 %v5352_v15 }
 0x1a7   :  { %3345 = vmatpush3.bf16.msra.mxu0 %v4502_v63  ;;  %3365 = vmatpush3.bf16.msra.mxu1 %v4504_v1 }
 0x1a8   :  { %3346 = vmatprep.subr.bf16.mxu0 %v5352_v15  ;;  %3366 = vmatprep.subr.bf16.mxu1 %v5352_v15 }
 0x1ab   :  { %3347 = vmatpush3.bf16.msra.mxu0 %v4510_v2  ;;  %3367 = vmatpush3.bf16.msra.mxu1 %v4512_v3 }
 0x1ac   :  { %3348 = vmatprep.subr.bf16.mxu0 %v5352_v15  ;;  %3368 = vmatprep.subr.bf16.mxu1 %v5352_v15 }
 0x1af   :  { %3349 = vmatpush3.bf16.msra.mxu0 %v4518_v4  ;;  %3369 = vmatpush3.bf16.msra.mxu1 %v4520_v5 }
 0x1b0   :  { %3350 = vmatprep.subr.bf16.mxu0 %v5352_v15  ;;  %3370 = vmatprep.subr.bf16.mxu1 %v5352_v15 }
 0x1b3   :  { %3351 = vmatpush3.bf16.msra.mxu0 %v4526_v6  ;;  %3371 = vmatpush3.bf16.msra.mxu1 %v4528_v7 }
 0x1b4   :  { %3376 = vmatprep.subr.bf16.mxu0 %v5352_v15  ;;  %3396 = vmatprep.subr.bf16.mxu1 %v5352_v15 }
 0x1b6   :  { %3353 = vmatmul.mubr.bf16.vlgmr.msra.gmra.mrb[32].mxu0 %v1127_v8  ;;  %3373 = vmatmul.mubr.bf16.vlgmr.msra.gmra.mrb[32].mxu1 %v1127_v8 }
 0x1b7   :  { %3377 = vmatpush3.bf16.msra.mxu0 %v4388_v34  ;;  %3397 = vmatpush3.bf16.msra.mxu1 %v4390_v35  ;;  %v1180_v34 = vrot.slane %v4597_v49, 4  ;;  %v1131_v35 = vunpack.c.l.bf16 %v4597_v49 }
 0x1b8   :  { %3378 = vmatprep.subr.bf16.mxu0 %v5352_v15  ;;  %3398 = vmatprep.subr.bf16.mxu1 %v5352_v15 }
 0x1b9   :  { %3392 = vmatprep.mubr.msk.bf16.mxu0 %vm4317_vm0, %v5352_v15  ;;  %3412 = vmatprep.mubr.msk.bf16.mxu1 %vm4317_vm0, %v5352_v15 }
 0x1bb   :  { %3379 = vmatpush3.bf16.msra.mxu0 %v4394_v37  ;;  %3399 = vmatpush3.bf16.msra.mxu1 %v4398_v38  ;;  %v1182_v37 = vunpack.c.l.bf16 %v1180_v34 }
 0x1bc   :  { %3380 = vmatprep.subr.bf16.mxu0 %v5352_v15  ;;  %3400 = vmatprep.subr.bf16.mxu1 %v5352_v15 }
 0x1bf   :  { %3381 = vmatpush3.bf16.msra.mxu0 %v4404_v40  ;;  %3401 = vmatpush3.bf16.msra.mxu1 %v4408_v41 }
 0x1c0   :  { %3382 = vmatprep.subr.bf16.mxu0 %v5352_v15  ;;  %3402 = vmatprep.subr.bf16.mxu1 %v5352_v15 }
 0x1c3   :  { %3383 = vmatpush3.bf16.msra.mxu0 %v4412_v42  ;;  %3403 = vmatpush3.bf16.msra.mxu1 %v4416_v43 }
 0x1c4   :  { %3384 = vmatprep.subr.bf16.mxu0 %v5352_v15  ;;  %3404 = vmatprep.subr.bf16.mxu1 %v5352_v15 }
 0x1c7   :  { %3385 = vmatpush3.bf16.msra.mxu0 %v4422_v45  ;;  %3405 = vmatpush3.bf16.msra.mxu1 %v4426_v46 }
 0x1c8   :  { %3386 = vmatprep.subr.bf16.mxu0 %v5352_v15  ;;  %3406 = vmatprep.subr.bf16.mxu1 %v5352_v15 }
 0x1cb   :  { %3387 = vmatpush3.bf16.msra.mxu0 %v4430_v47  ;;  %3407 = vmatpush3.bf16.msra.mxu1 %v4434_v48 }
 0x1cc   :  { %3388 = vmatprep.subr.bf16.mxu0 %v5352_v15  ;;  %3408 = vmatprep.subr.bf16.mxu1 %v5352_v15 }
 0x1cf   :  { %3389 = vmatpush3.bf16.msra.mxu0 %v4442_v50  ;;  %3409 = vmatpush3.bf16.msra.mxu1 %v4446_v51 }
 0x1d0   :  { %3390 = vmatprep.subr.bf16.mxu0 %v5352_v15  ;;  %3410 = vmatprep.subr.bf16.mxu1 %v5352_v15 }
 0x1d3   :  { %3391 = vmatpush3.bf16.msra.mxu0 %v4452_v52  ;;  %3411 = vmatpush3.bf16.msra.mxu1 %v4454_v53 }
 0x1d4   :  { %3416 = vmatprep.subr.bf16.mxu0 %v5352_v15  ;;  %3436 = vmatprep.subr.bf16.mxu1 %v5352_v15 }
 0x269   :  { %v1166_v38 = vpop.f32.mrb[28].mxu0  ;;  %v1217_v40 = vpop.f32.mrb[28].mxu1 }
 0x26a   :  { %v1172_v41 = vadd.f32 %v1166_v38, %v1131_v35  ;;  %v1223_v28 = vadd.f32 %v1217_v40, %v1182_v37  ;;  %v3314_v16 = vpop.f32.mrb[29].mxu0  ;;  %v3334_v23 = vpop.f32.mrb[29].mxu1 }
 0x26b   :  { %v1169_v17 = vpop.f32.mrb[30].mxu0  ;;  %v1220_v13 = vpop.f32.mrb[30].mxu1 }
 0x26c   :  { %v3315_v36 = vpop.f32.mrb[31].mxu0  ;;  %v3335_v22 = vpop.f32.mrb[31].mxu1  ;;  %v2851_v44 = vmul.f32 -1.442695, %v1223_v28  ;;  %v2850_v0 = vmul.f32 -1.442695, %v1172_v41 }
 0x26e   :  { %4048 = vpow2.f32 %v2851_v44 }
 0x26f   :  { %4050 = vpow2.f32 %v2850_v0 }
 0x278   :  { %v4049_v19 = vpop.eup %4048 }
 0x279   :  { %v4051_v21 = vpop.eup %4050  ;;  %v1227_v49 = vadd.f32 1.0, %v4049_v19 }
 0x27a   :  { %v1176_v33 = vadd.f32 1.0, %v4051_v21 }
 0x27b   :  { %4052 = vrcp.f32 %v1227_v49  ;;  %v4792_v49 = vld [vmem:[#allocation8 + $0x20] ss:$16 sps:$4 sm:$0xff]  }
 0x27c   :  { %4054 = vrcp.f32 %v1176_v33  ;;  %v4795_v33 = vld [vmem:[#allocation8 + $0x24] ss:$16 sps:$4 sm:$0xff]  }
 0x285   :  { %v4053_v28 = vpop.eup %4052 }
 0x286   :  { %v4055_v16 = vpop.eup %4054  ;;  %v1324_v54 = vmul.f32 %v4053_v28, %v4661_v39  ;;  %v4780_v39 = vld [vmem:[#allocation8] ss:$16 sps:$4 sm:$0xff]  }
 0x289   :  { %v1265_v32 = vpop.f32.mrb[32].mxu0  ;;  %v1311_v12 = vpop.f32.mrb[32].mxu1 }
 0x28a   :  { %v1271_v20 = vadd.f32 %v1265_v32, %v1230_v10  ;;  %v1317_v14 = vadd.f32 %v1311_v12, %v1276_v11  ;;  %v3354_v8 = vpop.f32.mrb[33].mxu0  ;;  %v3374_v34 = vpop.f32.mrb[33].mxu1  ;;  %v4800_v10 = vld [vmem:[#allocation8 + $0x40] ss:$16 sps:$4 sm:$0xff]   ;;  %v4803_v11 = vld [vmem:[#allocation8 + $0x44] ss:$16 sps:$4 sm:$0xff]  }
 0x28b   :  { %v1268_v35 = vpop.f32.mrb[34].mxu0  ;;  %v1314_v37 = vpop.f32.mrb[34].mxu1 }
 0x28c   :  { %4056 = vtanh.f32 %v1271_v20  ;;  %v2852_v38 = vmul.f32 -1.442695, %v1317_v14  ;;  %v3355_v40 = vpop.f32.mrb[35].mxu0  ;;  %v3375_v41 = vpop.f32.mrb[35].mxu1  ;;  %v1476_v37 = vrot.slane %v4609_v26, 4 }
 0x28d   :  { %v1432_v40 = vunpack.c.l.bf16 %v4609_v26 }
 0x28e   :  { %4058 = vpow2.f32 %v2852_v38  ;;  %v1478_v41 = vunpack.c.l.bf16 %v1476_v37 }
 0x296   :  { %v4057_v23 = vpop.eup %4056 }
 0x297   :  { %v1325_v17 = vmul.f32 %v4057_v23, %v4055_v16 }
 0x298   :  { %v4059_v13 = vpop.eup %4058 }
 0x299   :  { %v4741_v36 = vadd.f32 %v1325_v17, %v1324_v54  ;;  %v1321_v22 = vadd.f32 1.0, %v4059_v13 }
 0x29b   :  { %4060 = vtanh.f32 %v4741_v36 }
 0x29c   :  { %4062 = vrcp.f32 %v1321_v22 }
 0x2a5   :  { %v4061_v44 = vpop.eup %4060 }
 0x2a6   :  { %v4063_v0 = vpop.eup %4062 }
 0x2a7   :  { %v1328_v19 = vmul.f32 %v4063_v0, %v4061_v44 }
 0x2a9   :  { %v1329_v21 = vpack.c.bf16 %v1328_v19, %v1328_v19 }
 0x2ab   :  { %3393 = vmatmul.mubr.bf16.vlgmr.msra.gmra.mrb[36].mxu0 %v1329_v21  ;;  %3413 = vmatmul.mubr.bf16.vlgmr.msra.gmra.mrb[36].mxu1 %v1329_v21 }
 0x2ac   :  { %3417 = vmatpush3.bf16.msra.mxu0 %v4466_v55  ;;  %3437 = vmatpush3.bf16.msra.mxu1 %v4468_v56 }
 0x2ad   :  { %3418 = vmatprep.subr.bf16.mxu0 %v5352_v15  ;;  %3438 = vmatprep.subr.bf16.mxu1 %v5352_v15 }
 0x2ae   :  { %3432 = vmatprep.mubr.msk.bf16.mxu0 %vm4317_vm0, %v5352_v15  ;;  %3452 = vmatprep.mubr.msk.bf16.mxu1 %vm4317_vm0, %v5352_v15 }
 0x2b0   :  { %3419 = vmatpush3.bf16.msra.mxu0 %v4474_v57  ;;  %3439 = vmatpush3.bf16.msra.mxu1 %v4476_v58 }
 0x2b1   :  { %3420 = vmatprep.subr.bf16.mxu0 %v5352_v15  ;;  %3440 = vmatprep.subr.bf16.mxu1 %v5352_v15 }
 0x2b4   :  { %3421 = vmatpush3.bf16.msra.mxu0 %v4486_v59  ;;  %3441 = vmatpush3.bf16.msra.mxu1 %v4488_v60 }
 0x2b5   :  { %3422 = vmatprep.subr.bf16.mxu0 %v5352_v15  ;;  %3442 = vmatprep.subr.bf16.mxu1 %v5352_v15 }
 0x2b8   :  { %3423 = vmatpush3.bf16.msra.mxu0 %v4494_v61  ;;  %3443 = vmatpush3.bf16.msra.mxu1 %v4496_v62 }
 0x2b9   :  { %3424 = vmatprep.subr.bf16.mxu0 %v5352_v15  ;;  %3444 = vmatprep.subr.bf16.mxu1 %v5352_v15 }
 0x2bc   :  { %3425 = vmatpush3.bf16.msra.mxu0 %v4502_v63  ;;  %3445 = vmatpush3.bf16.msra.mxu1 %v4504_v1 }
 0x2bd   :  { %3426 = vmatprep.subr.bf16.mxu0 %v5352_v15  ;;  %3446 = vmatprep.subr.bf16.mxu1 %v5352_v15 }
 0x2c0   :  { %3427 = vmatpush3.bf16.msra.mxu0 %v4510_v2  ;;  %3447 = vmatpush3.bf16.msra.mxu1 %v4512_v3 }
 0x2c1   :  { %3428 = vmatprep.subr.bf16.mxu0 %v5352_v15  ;;  %3448 = vmatprep.subr.bf16.mxu1 %v5352_v15 }
 0x2c4   :  { %3429 = vmatpush3.bf16.msra.mxu0 %v4518_v4  ;;  %3449 = vmatpush3.bf16.msra.mxu1 %v4520_v5 }
 0x2c5   :  { %3430 = vmatprep.subr.bf16.mxu0 %v5352_v15  ;;  %3450 = vmatprep.subr.bf16.mxu1 %v5352_v15 }
 0x2c8   :  { %3431 = vmatpush3.bf16.msra.mxu0 %v4526_v6  ;;  %3451 = vmatpush3.bf16.msra.mxu1 %v4528_v7 }
 0x2c9   :  { %3456 = vmatprep.subr.bf16.mxu0 %v5352_v15  ;;  %3476 = vmatprep.subr.bf16.mxu1 %v5352_v15 }
 0x2cb   :  { %3433 = vmatmul.mubr.bf16.vlgmr.msra.gmra.mrb[40].mxu0 %v1329_v21  ;;  %3453 = vmatmul.mubr.bf16.vlgmr.msra.gmra.mrb[40].mxu1 %v1329_v21 }
 0x2cc   :  { %3457 = vmatpush3.bf16.msra.mxu0 %v4780_v39  ;;  %3477 = vmatpush3.bf16.msra.mxu1 %v4783_v9 }
 0x2cd   :  { %3458 = vmatprep.subr.bf16.mxu0 %v5352_v15  ;;  %3478 = vmatprep.subr.bf16.mxu1 %v5352_v15 }
 0x2ce   :  { %3472 = vmatprep.mubr.msk.bf16.mxu0 %vm4317_vm0, %v5352_v15  ;;  %3492 = vmatprep.mubr.msk.bf16.mxu1 %vm4317_vm0, %v5352_v15 }
 0x2d0   :  { %3459 = vmatpush3.bf16.msra.mxu0 %v4792_v49  ;;  %3479 = vmatpush3.bf16.msra.mxu1 %v4795_v33 }
 0x2d1   :  { %3460 = vmatprep.subr.bf16.mxu0 %v5352_v15  ;;  %3480 = vmatprep.subr.bf16.mxu1 %v5352_v15 }
 0x2d4   :  { %3461 = vmatpush3.bf16.msra.mxu0 %v4800_v10  ;;  %3481 = vmatpush3.bf16.msra.mxu1 %v4803_v11 }
 0x2d5   :  { %3462 = vmatprep.subr.bf16.mxu0 %v5352_v15  ;;  %3482 = vmatprep.subr.bf16.mxu1 %v5352_v15 }
 0x2d8   :  { %3463 = vmatpush3.bf16.msra.mxu0 %v4412_v42  ;;  %3483 = vmatpush3.bf16.msra.mxu1 %v4416_v43  ;;  %v1382_v42 = vrot.slane %v4607_v25, 4  ;;  %v1333_v43 = vunpack.c.l.bf16 %v4607_v25 }
 0x2d9   :  { %3464 = vmatprep.subr.bf16.mxu0 %v5352_v15  ;;  %3484 = vmatprep.subr.bf16.mxu1 %v5352_v15 }
 0x2dc   :  { %3465 = vmatpush3.bf16.msra.mxu0 %v4422_v45  ;;  %3485 = vmatpush3.bf16.msra.mxu1 %v4426_v46  ;;  %v1384_v45 = vunpack.c.l.bf16 %v1382_v42 }
 0x2dd   :  { %3466 = vmatprep.subr.bf16.mxu0 %v5352_v15  ;;  %3486 = vmatprep.subr.bf16.mxu1 %v5352_v15 }
 0x2e0   :  { %3467 = vmatpush3.bf16.msra.mxu0 %v4430_v47  ;;  %3487 = vmatpush3.bf16.msra.mxu1 %v4434_v48 }
 0x2e1   :  { %3468 = vmatprep.subr.bf16.mxu0 %v5352_v15  ;;  %3488 = vmatprep.subr.bf16.mxu1 %v5352_v15 }
 0x2e4   :  { %3469 = vmatpush3.bf16.msra.mxu0 %v4442_v50  ;;  %3489 = vmatpush3.bf16.msra.mxu1 %v4446_v51 }
 0x2e5   :  { %3470 = vmatprep.subr.bf16.mxu0 %v5352_v15  ;;  %3490 = vmatprep.subr.bf16.mxu1 %v5352_v15 }
 0x2e8   :  { %3471 = vmatpush3.bf16.msra.mxu0 %v4452_v52  ;;  %3491 = vmatpush3.bf16.msra.mxu1 %v4454_v53 }
 0x2e9   :  { %3496 = vmatprep.subr.bf16.mxu0 %v5352_v15  ;;  %3516 = vmatprep.subr.bf16.mxu1 %v5352_v15 }
 0x37e   :  { %v1368_v46 = vpop.f32.mrb[36].mxu0  ;;  %v1419_v47 = vpop.f32.mrb[36].mxu1 }
 0x37f   :  { %v1374_v48 = vadd.f32 %v1368_v46, %v1333_v43  ;;  %v1425_v50 = vadd.f32 %v1419_v47, %v1384_v45  ;;  %v3394_v51 = vpop.f32.mrb[37].mxu0  ;;  %v3414_v32 = vpop.f32.mrb[37].mxu1 }
 0x380   :  { %v1371_v12 = vpop.f32.mrb[38].mxu0  ;;  %v1422_v20 = vpop.f32.mrb[38].mxu1 }
 0x381   :  { %v3395_v52 = vpop.f32.mrb[39].mxu0  ;;  %v3415_v14 = vpop.f32.mrb[39].mxu1  ;;  %v2854_v53 = vmul.f32 -1.442695, %v1425_v50  ;;  %v2853_v8 = vmul.f32 -1.442695, %v1374_v48 }
 0x383   :  { %4064 = vpow2.f32 %v2854_v53 }
 0x384   :  { %4066 = vpow2.f32 %v2853_v8 }
 0x38d   :  { %v4065_v34 = vpop.eup %4064 }
 0x38e   :  { %v4067_v35 = vpop.eup %4066  ;;  %v1429_v25 = vadd.f32 1.0, %v4065_v34 }
 0x38f   :  { %v1378_v38 = vadd.f32 1.0, %v4067_v35 }
 0x390   :  { %4068 = vrcp.f32 %v1429_v25 }
 0x391   :  { %4070 = vrcp.f32 %v1378_v38 }
 0x39a   :  { %v4069_v42 = vpop.eup %4068 }
 0x39b   :  { %v4071_v43 = vpop.eup %4070  ;;  %v1526_v26 = vmul.f32 %v4069_v42, %v4741_v36 }
 0x39e   :  { %v1467_v28 = vpop.f32.mrb[40].mxu0  ;;  %v1513_v16 = vpop.f32.mrb[40].mxu1 }
 0x39f   :  { %v1473_v23 = vadd.f32 %v1467_v28, %v1432_v40  ;;  %v1519_v54 = vadd.f32 %v1513_v16, %v1478_v41  ;;  %v3434_v17 = vpop.f32.mrb[41].mxu0  ;;  %v3454_v13 = vpop.f32.mrb[41].mxu1  ;;  %v1678_v41 = vrot.slane %v4615_v30, 4  ;;  %v1634_v16 = vunpack.c.l.bf16 %v4615_v30 }
 0x3a0   :  { %v1470_v22 = vpop.f32.mrb[42].mxu0  ;;  %v1516_v44 = vpop.f32.mrb[42].mxu1 }
 0x3a1   :  { %4072 = vtanh.f32 %v1473_v23  ;;  %v2855_v0 = vmul.f32 -1.442695, %v1519_v54  ;;  %v3435_v19 = vpop.f32.mrb[43].mxu0  ;;  %v3455_v21 = vpop.f32.mrb[43].mxu1  ;;  %v1680_v23 = vunpack.c.l.bf16 %v1678_v41  ;;  %v4999_v41 = vld [vmem:[#allocation8 + $0xec] ss:$16 sps:$4 sm:$0xff]  }
 0x3a3   :  { %4074 = vpow2.f32 %v2855_v0 }
 0x3ab   :  { %v4073_v45 = vpop.eup %4072 }
 0x3ac   :  { %v1527_v46 = vmul.f32 %v4073_v45, %v4071_v43 }
 0x3ad   :  { %v4075_v47 = vpop.eup %4074 }
 0x3ae   :  { %v4833_v48 = vadd.f32 %v1527_v46, %v1526_v26  ;;  %v1523_v50 = vadd.f32 1.0, %v4075_v47 }
 0x3b0   :  { %4076 = vtanh.f32 %v4833_v48 }
 0x3b1   :  { %4078 = vrcp.f32 %v1523_v50 }
 0x3ba   :  { %v4077_v51 = vpop.eup %4076 }
 0x3bb   :  { %v4079_v32 = vpop.eup %4078 }
 0x3bc   :  { %v1530_v12 = vmul.f32 %v4079_v32, %v4077_v51 }
 0x3be   :  { %v1531_v20 = vpack.c.bf16 %v1530_v12, %v1530_v12 }
 0x3c0   :  { %3473 = vmatmul.mubr.bf16.vlgmr.msra.gmra.mrb[44].mxu0 %v1531_v20  ;;  %3493 = vmatmul.mubr.bf16.vlgmr.msra.gmra.mrb[44].mxu1 %v1531_v20 }
 0x3c1   :  { %3497 = vmatpush3.bf16.msra.mxu0 %v4466_v55  ;;  %3517 = vmatpush3.bf16.msra.mxu1 %v4468_v56  ;;  %v4888_v55 = vld [vmem:[#allocation8 + $0x60] ss:$16 sps:$4 sm:$0xff]   ;;  %v4891_v56 = vld [vmem:[#allocation8 + $0x64] ss:$16 sps:$4 sm:$0xff]  }
 0x3c2   :  { %3498 = vmatprep.subr.bf16.mxu0 %v5352_v15  ;;  %3518 = vmatprep.subr.bf16.mxu1 %v5352_v15 }
 0x3c3   :  { %3512 = vmatprep.mubr.msk.bf16.mxu0 %vm4317_vm0, %v5352_v15  ;;  %3532 = vmatprep.mubr.msk.bf16.mxu1 %vm4317_vm0, %v5352_v15 }
 0x3c5   :  { %3499 = vmatpush3.bf16.msra.mxu0 %v4474_v57  ;;  %3519 = vmatpush3.bf16.msra.mxu1 %v4476_v58  ;;  %v4896_v57 = vld [vmem:[#allocation8 + $0x80] ss:$16 sps:$4 sm:$0xff]   ;;  %v4899_v58 = vld [vmem:[#allocation8 + $0x84] ss:$16 sps:$4 sm:$0xff]  }
 0x3c6   :  { %3500 = vmatprep.subr.bf16.mxu0 %v5352_v15  ;;  %3520 = vmatprep.subr.bf16.mxu1 %v5352_v15 }
 0x3c9   :  { %3501 = vmatpush3.bf16.msra.mxu0 %v4486_v59  ;;  %3521 = vmatpush3.bf16.msra.mxu1 %v4488_v60  ;;  %v4904_v59 = vld [vmem:[#allocation8 + $0xa0] ss:$16 sps:$4 sm:$0xff]   ;;  %v4907_v60 = vld [vmem:[#allocation8 + $0xa4] ss:$16 sps:$4 sm:$0xff]  }
 0x3ca   :  { %3502 = vmatprep.subr.bf16.mxu0 %v5352_v15  ;;  %3522 = vmatprep.subr.bf16.mxu1 %v5352_v15 }
 0x3cd   :  { %3503 = vmatpush3.bf16.msra.mxu0 %v4494_v61  ;;  %3523 = vmatpush3.bf16.msra.mxu1 %v4496_v62  ;;  %v4912_v61 = vld [vmem:[#allocation8 + $0xc0] ss:$16 sps:$4 sm:$0xff]   ;;  %v4915_v62 = vld [vmem:[#allocation8 + $0xc4] ss:$16 sps:$4 sm:$0xff]  }
 0x3ce   :  { %3504 = vmatprep.subr.bf16.mxu0 %v5352_v15  ;;  %3524 = vmatprep.subr.bf16.mxu1 %v5352_v15 }
 0x3d1   :  { %3505 = vmatpush3.bf16.msra.mxu0 %v4502_v63  ;;  %3525 = vmatpush3.bf16.msra.mxu1 %v4504_v1  ;;  %v4920_v63 = vld [vmem:[#allocation8 + $0xe0] ss:$16 sps:$4 sm:$0xff]   ;;  %v4923_v1 = vld [vmem:[#allocation8 + $0xe4] ss:$16 sps:$4 sm:$0xff]  }
 0x3d2   :  { %3506 = vmatprep.subr.bf16.mxu0 %v5352_v15  ;;  %3526 = vmatprep.subr.bf16.mxu1 %v5352_v15 }
 0x3d5   :  { %3507 = vmatpush3.bf16.msra.mxu0 %v4510_v2  ;;  %3527 = vmatpush3.bf16.msra.mxu1 %v4512_v3  ;;  %v1584_v2 = vrot.slane %v4613_v29, 4  ;;  %v1535_v3 = vunpack.c.l.bf16 %v4613_v29 }
 0x3d6   :  { %3508 = vmatprep.subr.bf16.mxu0 %v5352_v15  ;;  %3528 = vmatprep.subr.bf16.mxu1 %v5352_v15 }
 0x3d9   :  { %3509 = vmatpush3.bf16.msra.mxu0 %v4518_v4  ;;  %3529 = vmatpush3.bf16.msra.mxu1 %v4520_v5  ;;  %v1586_v4 = vunpack.c.l.bf16 %v1584_v2 }
 0x3da   :  { %3510 = vmatprep.subr.bf16.mxu0 %v5352_v15  ;;  %3530 = vmatprep.subr.bf16.mxu1 %v5352_v15 }
 0x3dd   :  { %3511 = vmatpush3.bf16.msra.mxu0 %v4526_v6  ;;  %3531 = vmatpush3.bf16.msra.mxu1 %v4528_v7 }
 0x3de   :  { %3536 = vmatprep.subr.bf16.mxu0 %v5352_v15  ;;  %3556 = vmatprep.subr.bf16.mxu1 %v5352_v15 }
 0x3e0   :  { %3513 = vmatmul.mubr.bf16.vlgmr.msra.gmra.mrb[48].mxu0 %v1531_v20  ;;  %3533 = vmatmul.mubr.bf16.vlgmr.msra.gmra.mrb[48].mxu1 %v1531_v20 }
 0x3e1   :  { %3537 = vmatpush3.bf16.msra.mxu0 %v4780_v39  ;;  %3557 = vmatpush3.bf16.msra.mxu1 %v4783_v9 }
 0x3e2   :  { %3538 = vmatprep.subr.bf16.mxu0 %v5352_v15  ;;  %3558 = vmatprep.subr.bf16.mxu1 %v5352_v15 }
 0x3e3   :  { %3552 = vmatprep.mubr.msk.bf16.mxu0 %vm4317_vm0, %v5352_v15  ;;  %3572 = vmatprep.mubr.msk.bf16.mxu1 %vm4317_vm0, %v5352_v15 }
 0x3e5   :  { %3539 = vmatpush3.bf16.msra.mxu0 %v4792_v49  ;;  %3559 = vmatpush3.bf16.msra.mxu1 %v4795_v33 }
 0x3e6   :  { %3540 = vmatprep.subr.bf16.mxu0 %v5352_v15  ;;  %3560 = vmatprep.subr.bf16.mxu1 %v5352_v15 }
 0x3e9   :  { %3541 = vmatpush3.bf16.msra.mxu0 %v4800_v10  ;;  %3561 = vmatpush3.bf16.msra.mxu1 %v4803_v11 }
 0x3ea   :  { %3542 = vmatprep.subr.bf16.mxu0 %v5352_v15  ;;  %3562 = vmatprep.subr.bf16.mxu1 %v5352_v15 }
 0x3ed   :  { %3543 = vmatpush3.bf16.msra.mxu0 %v4888_v55  ;;  %3563 = vmatpush3.bf16.msra.mxu1 %v4891_v56 }
 0x3ee   :  { %3544 = vmatprep.subr.bf16.mxu0 %v5352_v15  ;;  %3564 = vmatprep.subr.bf16.mxu1 %v5352_v15 }
 0x3f1   :  { %3545 = vmatpush3.bf16.msra.mxu0 %v4896_v57  ;;  %3565 = vmatpush3.bf16.msra.mxu1 %v4899_v58 }
 0x3f2   :  { %3546 = vmatprep.subr.bf16.mxu0 %v5352_v15  ;;  %3566 = vmatprep.subr.bf16.mxu1 %v5352_v15 }
 0x3f5   :  { %3547 = vmatpush3.bf16.msra.mxu0 %v4904_v59  ;;  %3567 = vmatpush3.bf16.msra.mxu1 %v4907_v60 }
 0x3f6   :  { %3548 = vmatprep.subr.bf16.mxu0 %v5352_v15  ;;  %3568 = vmatprep.subr.bf16.mxu1 %v5352_v15 }
 0x3f9   :  { %3549 = vmatpush3.bf16.msra.mxu0 %v4912_v61  ;;  %3569 = vmatpush3.bf16.msra.mxu1 %v4915_v62 }
 0x3fa   :  { %3550 = vmatprep.subr.bf16.mxu0 %v5352_v15  ;;  %3570 = vmatprep.subr.bf16.mxu1 %v5352_v15 }
 0x3fd   :  { %3551 = vmatpush3.bf16.msra.mxu0 %v4920_v63  ;;  %3571 = vmatpush3.bf16.msra.mxu1 %v4923_v1 }
 0x3fe   :  { %3576 = vmatprep.subr.bf16.mxu0 %v5352_v15  ;;  %3596 = vmatprep.subr.bf16.mxu1 %v5352_v15 }
 0x493   :  { %v1570_v5 = vpop.f32.mrb[44].mxu0  ;;  %v1621_v6 = vpop.f32.mrb[44].mxu1 }
 0x494   :  { %v1576_v7 = vadd.f32 %v1570_v5, %v1535_v3  ;;  %v1627_v36 = vadd.f32 %v1621_v6, %v1586_v4  ;;  %v3474_v52 = vpop.f32.mrb[45].mxu0  ;;  %v3494_v14 = vpop.f32.mrb[45].mxu1  ;;  %v4936_v5 = vld [vmem:[#allocation8 + $0x8] ss:$16 sps:$4 sm:$0xff]   ;;  %v4939_v6 = vld [vmem:[#allocation8 + $0xc] ss:$16 sps:$4 sm:$0xff]  }
 0x495   :  { %v1573_v53 = vpop.f32.mrb[46].mxu0  ;;  %v1624_v8 = vpop.f32.mrb[46].mxu1  ;;  %v4959_v52 = vld [vmem:[#allocation8 + $0x4c] ss:$16 sps:$4 sm:$0xff]   ;;  %v4964_v14 = vld [vmem:[#allocation8 + $0x68] ss:$16 sps:$4 sm:$0xff]  }
 0x496   :  { %v3475_v34 = vpop.f32.mrb[47].mxu0  ;;  %v3495_v35 = vpop.f32.mrb[47].mxu1  ;;  %v2857_v37 = vmul.f32 -1.442695, %v1627_v36  ;;  %v2856_v25 = vmul.f32 -1.442695, %v1576_v7 }
 0x497   :  { %v4951_v7 = vld [vmem:[#allocation8 + $0x2c] ss:$16 sps:$4 sm:$0xff]   ;;  %v4956_v36 = vld [vmem:[#allocation8 + $0x48] ss:$16 sps:$4 sm:$0xff]  }
 0x498   :  { %4080 = vpow2.f32 %v2857_v37  ;;  %v4967_v53 = vld [vmem:[#allocation8 + $0x6c] ss:$16 sps:$4 sm:$0xff]   ;;  %v4972_v8 = vld [vmem:[#allocation8 + $0x88] ss:$16 sps:$4 sm:$0xff]  }
 0x499   :  { %4082 = vpow2.f32 %v2856_v25  ;;  %v4975_v34 = vld [vmem:[#allocation8 + $0x8c] ss:$16 sps:$4 sm:$0xff]   ;;  %v4980_v35 = vld [vmem:[#allocation8 + $0xa8] ss:$16 sps:$4 sm:$0xff]  }
 0x49a   :  { %v4983_v37 = vld [vmem:[#allocation8 + $0xac] ss:$16 sps:$4 sm:$0xff]   ;;  %v4988_v25 = vld [vmem:[#allocation8 + $0xc8] ss:$16 sps:$4 sm:$0xff]  }
 0x4a2   :  { %v4081_v38 = vpop.eup %4080 }
 0x4a3   :  { %v4083_v40 = vpop.eup %4082  ;;  %v1631_v29 = vadd.f32 1.0, %v4081_v38  ;;  %v4991_v38 = vld [vmem:[#allocation8 + $0xcc] ss:$16 sps:$4 sm:$0xff]  }
 0x4a4   :  { %v1580_v28 = vadd.f32 1.0, %v4083_v40  ;;  %v4996_v40 = vld [vmem:[#allocation8 + $0xe8] ss:$16 sps:$4 sm:$0xff]  }
 0x4a5   :  { %4084 = vrcp.f32 %v1631_v29  ;;  %v5353_v29 = vld [vmem:[#allocation13_spill] sm:$0xff] }
 0x4a6   :  { %4086 = vrcp.f32 %v1580_v28  ;;  %v1786_v28 = vrot.slane %v5353_v29, 4 }
 0x4af   :  { %v4085_v26 = vpop.eup %4084 }
 0x4b0   :  { %v4087_v46 = vpop.eup %4086  ;;  %v1728_v30 = vmul.f32 %v4085_v26, %v4833_v48  ;;  %v4948_v48 = vld [vmem:[#allocation8 + $0x28] ss:$16 sps:$4 sm:$0xff]  }
 0x4b3   :  { %v1669_v54 = vpop.f32.mrb[48].mxu0  ;;  %v1715_v17 = vpop.f32.mrb[48].mxu1 }
 0x4b4   :  { %v1675_v13 = vadd.f32 %v1669_v54, %v1634_v16  ;;  %v1721_v22 = vadd.f32 %v1715_v17, %v1680_v23  ;;  %v3514_v44 = vpop.f32.mrb[49].mxu0  ;;  %v3534_v0 = vpop.f32.mrb[49].mxu1  ;;  %v1737_v16 = vunpack.c.l.bf16 %v5353_v29  ;;  %v1788_v23 = vunpack.c.l.bf16 %v1786_v28 }
 0x4b5   :  { %v1672_v19 = vpop.f32.mrb[50].mxu0  ;;  %v1718_v21 = vpop.f32.mrb[50].mxu1 }
 0x4b6   :  { %4088 = vtanh.f32 %v1675_v13  ;;  %v2858_v42 = vmul.f32 -1.442695, %v1721_v22  ;;  %v3515_v43 = vpop.f32.mrb[51].mxu0  ;;  %v3535_v45 = vpop.f32.mrb[51].mxu1 }
 0x4b8   :  { %4090 = vpow2.f32 %v2858_v42 }
 0x4c0   :  { %v4089_v47 = vpop.eup %4088 }
 0x4c1   :  { %v1729_v50 = vmul.f32 %v4089_v47, %v4087_v46 }
 0x4c2   :  { %v4091_v51 = vpop.eup %4090 }
 0x4c3   :  { %v4933_v32 = vadd.f32 %v1729_v50, %v1728_v30  ;;  %v1725_v12 = vadd.f32 1.0, %v4091_v51  ;;  %v5354_v30 = vld [vmem:[#allocation14_spill] sm:$0xff] }
 0x4c4   :  { %v1880_v50 = vrot.slane %v5354_v30, 4 }
 0x4c5   :  { %4092 = vtanh.f32 %v4933_v32 }
 0x4c6   :  { %4094 = vrcp.f32 %v1725_v12 }
 0x4cf   :  { %v4093_v20 = vpop.eup %4092 }
 0x4d0   :  { %v4095_v2 = vpop.eup %4094 }
 0x4d1   :  { %v1732_v3 = vmul.f32 %v4095_v2, %v4093_v20  ;;  %v1836_v20 = vunpack.c.l.bf16 %v5354_v30  ;;  %v1882_v2 = vunpack.c.l.bf16 %v1880_v50 }
 0x4d3   :  { %v1733_v4 = vpack.c.bf16 %v1732_v3, %v1732_v3 }
 0x4d5   :  { %3553 = vmatmul.mubr.bf16.vlgmr.msra.gmra.mrb[52].mxu0 %v1733_v4  ;;  %3573 = vmatmul.mubr.bf16.vlgmr.msra.gmra.mrb[52].mxu1 %v1733_v4 }
 0x4d6   :  { %3577 = vmatpush3.bf16.msra.mxu0 %v4936_v5  ;;  %3597 = vmatpush3.bf16.msra.mxu1 %v4939_v6 }
 0x4d7   :  { %3578 = vmatprep.subr.bf16.mxu0 %v5352_v15  ;;  %3598 = vmatprep.subr.bf16.mxu1 %v5352_v15 }
 0x4d8   :  { %3592 = vmatprep.mubr.msk.bf16.mxu0 %vm4317_vm0, %v5352_v15  ;;  %3612 = vmatprep.mubr.msk.bf16.mxu1 %vm4317_vm0, %v5352_v15 }
 0x4da   :  { %3579 = vmatpush3.bf16.msra.mxu0 %v4948_v48  ;;  %3599 = vmatpush3.bf16.msra.mxu1 %v4951_v7 }
 0x4db   :  { %3580 = vmatprep.subr.bf16.mxu0 %v5352_v15  ;;  %3600 = vmatprep.subr.bf16.mxu1 %v5352_v15 }
 0x4de   :  { %3581 = vmatpush3.bf16.msra.mxu0 %v4956_v36  ;;  %3601 = vmatpush3.bf16.msra.mxu1 %v4959_v52 }
 0x4df   :  { %3582 = vmatprep.subr.bf16.mxu0 %v5352_v15  ;;  %3602 = vmatprep.subr.bf16.mxu1 %v5352_v15 }
 0x4e2   :  { %3583 = vmatpush3.bf16.msra.mxu0 %v4964_v14  ;;  %3603 = vmatpush3.bf16.msra.mxu1 %v4967_v53 }
 0x4e3   :  { %3584 = vmatprep.subr.bf16.mxu0 %v5352_v15  ;;  %3604 = vmatprep.subr.bf16.mxu1 %v5352_v15 }
 0x4e6   :  { %3585 = vmatpush3.bf16.msra.mxu0 %v4972_v8  ;;  %3605 = vmatpush3.bf16.msra.mxu1 %v4975_v34 }
 0x4e7   :  { %3586 = vmatprep.subr.bf16.mxu0 %v5352_v15  ;;  %3606 = vmatprep.subr.bf16.mxu1 %v5352_v15 }
 0x4ea   :  { %3587 = vmatpush3.bf16.msra.mxu0 %v4980_v35  ;;  %3607 = vmatpush3.bf16.msra.mxu1 %v4983_v37 }
 0x4eb   :  { %3588 = vmatprep.subr.bf16.mxu0 %v5352_v15  ;;  %3608 = vmatprep.subr.bf16.mxu1 %v5352_v15 }
 0x4ee   :  { %3589 = vmatpush3.bf16.msra.mxu0 %v4988_v25  ;;  %3609 = vmatpush3.bf16.msra.mxu1 %v4991_v38 }
 0x4ef   :  { %3590 = vmatprep.subr.bf16.mxu0 %v5352_v15  ;;  %3610 = vmatprep.subr.bf16.mxu1 %v5352_v15 }
 0x4f2   :  { %3591 = vmatpush3.bf16.msra.mxu0 %v4996_v40  ;;  %3611 = vmatpush3.bf16.msra.mxu1 %v4999_v41 }
 0x4f3   :  { %3616 = vmatprep.subr.bf16.mxu0 %v5352_v15  ;;  %3636 = vmatprep.subr.bf16.mxu1 %v5352_v15 }
 0x4f5   :  { %3593 = vmatmul.mubr.bf16.vlgmr.msra.gmra.mrb[56].mxu0 %v1733_v4  ;;  %3613 = vmatmul.mubr.bf16.vlgmr.msra.gmra.mrb[56].mxu1 %v1733_v4 }
 0x4f6   :  { %3617 = vmatpush3.bf16.msra.mxu0 %v4780_v39  ;;  %3637 = vmatpush3.bf16.msra.mxu1 %v4783_v9 }
 0x4f7   :  { %3618 = vmatprep.subr.bf16.mxu0 %v5352_v15  ;;  %3638 = vmatprep.subr.bf16.mxu1 %v5352_v15 }
 0x4f8   :  { %3632 = vmatprep.mubr.msk.bf16.mxu0 %vm4317_vm0, %v5352_v15  ;;  %3652 = vmatprep.mubr.msk.bf16.mxu1 %vm4317_vm0, %v5352_v15 }
 0x4fa   :  { %3619 = vmatpush3.bf16.msra.mxu0 %v4792_v49  ;;  %3639 = vmatpush3.bf16.msra.mxu1 %v4795_v33 }
 0x4fb   :  { %3620 = vmatprep.subr.bf16.mxu0 %v5352_v15  ;;  %3640 = vmatprep.subr.bf16.mxu1 %v5352_v15 }
 0x4fe   :  { %3621 = vmatpush3.bf16.msra.mxu0 %v4800_v10  ;;  %3641 = vmatpush3.bf16.msra.mxu1 %v4803_v11 }
 0x4ff   :  { %3622 = vmatprep.subr.bf16.mxu0 %v5352_v15  ;;  %3642 = vmatprep.subr.bf16.mxu1 %v5352_v15 }
 0x502   :  { %3623 = vmatpush3.bf16.msra.mxu0 %v4888_v55  ;;  %3643 = vmatpush3.bf16.msra.mxu1 %v4891_v56 }
 0x503   :  { %3624 = vmatprep.subr.bf16.mxu0 %v5352_v15  ;;  %3644 = vmatprep.subr.bf16.mxu1 %v5352_v15 }
 0x506   :  { %3625 = vmatpush3.bf16.msra.mxu0 %v4896_v57  ;;  %3645 = vmatpush3.bf16.msra.mxu1 %v4899_v58 }
 0x507   :  { %3626 = vmatprep.subr.bf16.mxu0 %v5352_v15  ;;  %3646 = vmatprep.subr.bf16.mxu1 %v5352_v15 }
 0x50a   :  { %3627 = vmatpush3.bf16.msra.mxu0 %v4904_v59  ;;  %3647 = vmatpush3.bf16.msra.mxu1 %v4907_v60 }
 0x50b   :  { %3628 = vmatprep.subr.bf16.mxu0 %v5352_v15  ;;  %3648 = vmatprep.subr.bf16.mxu1 %v5352_v15 }
 0x50e   :  { %3629 = vmatpush3.bf16.msra.mxu0 %v4912_v61  ;;  %3649 = vmatpush3.bf16.msra.mxu1 %v4915_v62 }
 0x50f   :  { %3630 = vmatprep.subr.bf16.mxu0 %v5352_v15  ;;  %3650 = vmatprep.subr.bf16.mxu1 %v5352_v15 }
 0x512   :  { %3631 = vmatpush3.bf16.msra.mxu0 %v4920_v63  ;;  %3651 = vmatpush3.bf16.msra.mxu1 %v4923_v1 }
 0x513   :  { %3656 = vmatprep.subr.bf16.mxu0 %v5352_v15  ;;  %3676 = vmatprep.subr.bf16.mxu1 %v5352_v15 }
 0x5a8   :  { %v1772_v54 = vpop.f32.mrb[52].mxu0  ;;  %v1823_v17 = vpop.f32.mrb[52].mxu1 }
 0x5a9   :  { %v1778_v13 = vadd.f32 %v1772_v54, %v1737_v16  ;;  %v1829_v22 = vadd.f32 %v1823_v17, %v1788_v23  ;;  %v3554_v44 = vpop.f32.mrb[53].mxu0  ;;  %v3574_v0 = vpop.f32.mrb[53].mxu1 }
 0x5aa   :  { %v1775_v19 = vpop.f32.mrb[54].mxu0  ;;  %v1826_v21 = vpop.f32.mrb[54].mxu1 }
 0x5ab   :  { %v3555_v42 = vpop.f32.mrb[55].mxu0  ;;  %v3575_v43 = vpop.f32.mrb[55].mxu1  ;;  %v2860_v45 = vmul.f32 -1.442695, %v1829_v22  ;;  %v2859_v26 = vmul.f32 -1.442695, %v1778_v13 }
 0x5ad   :  { %4096 = vpow2.f32 %v2860_v45 }
 0x5ae   :  { %4098 = vpow2.f32 %v2859_v26 }
 0x5b7   :  { %v4097_v46 = vpop.eup %4096 }
 0x5b8   :  { %v4099_v47 = vpop.eup %4098  ;;  %v1833_v51 = vadd.f32 1.0, %v4097_v46 }
 0x5b9   :  { %v1782_v12 = vadd.f32 1.0, %v4099_v47 }
 0x5ba   :  { %4100 = vrcp.f32 %v1833_v51 }
 0x5bb   :  { %4102 = vrcp.f32 %v1782_v12 }
 0x5c4   :  { %v4101_v0 = vpop.eup %4100 }
 0x5c5   :  { %v4103_v19 = vpop.eup %4102  ;;  %v1930_v42 = vmul.f32 %v4101_v0, %v4933_v32  ;;  %v5355_v32 = vld [vmem:[#allocation15_spill] sm:$0xff] }
 0x5c6   :  { %v1988_v12 = vrot.slane %v5355_v32, 4 }
 0x5c8   :  { %v1871_v3 = vpop.f32.mrb[56].mxu0  ;;  %v1917_v4 = vpop.f32.mrb[56].mxu1 }
 0x5c9   :  { %v1877_v29 = vadd.f32 %v1871_v3, %v1836_v20  ;;  %v1923_v28 = vadd.f32 %v1917_v4, %v1882_v2  ;;  %v3594_v16 = vpop.f32.mrb[57].mxu0  ;;  %v3614_v23 = vpop.f32.mrb[57].mxu1  ;;  %v1939_v20 = vunpack.c.l.bf16 %v5355_v32  ;;  %v1990_v2 = vunpack.c.l.bf16 %v1988_v12 }
 0x5ca   :  { %v1874_v54 = vpop.f32.mrb[58].mxu0  ;;  %v1920_v17 = vpop.f32.mrb[58].mxu1 }
 0x5cb   :  { %4104 = vtanh.f32 %v1877_v29  ;;  %v2861_v13 = vmul.f32 -1.442695, %v1923_v28  ;;  %v3595_v22 = vpop.f32.mrb[59].mxu0  ;;  %v3615_v44 = vpop.f32.mrb[59].mxu1 }
 0x5cd   :  { %4106 = vpow2.f32 %v2861_v13 }
 0x5d5   :  { %v4105_v21 = vpop.eup %4104 }
 0x5d6   :  { %v1931_v43 = vmul.f32 %v4105_v21, %v4103_v19 }
 0x5d7   :  { %v4107_v45 = vpop.eup %4106 }
 0x5d8   :  { %v5045_v26 = vadd.f32 %v1931_v43, %v1930_v42  ;;  %v1927_v46 = vadd.f32 1.0, %v4107_v45  ;;  %v5356_v42 = vld [vmem:[#allocation16_spill] sm:$0xff] }
 0x5d9   :  { %v2082_v43 = vrot.slane %v5356_v42, 4 }
 0x5da   :  { %4108 = vtanh.f32 %v5045_v26 }
 0x5db   :  { %4110 = vrcp.f32 %v1927_v46 }
 0x5e4   :  { %v4109_v47 = vpop.eup %4108 }
 0x5e5   :  { %v4111_v30 = vpop.eup %4110 }
 0x5e6   :  { %v1934_v50 = vmul.f32 %v4111_v30, %v4109_v47  ;;  %v2038_v47 = vunpack.c.l.bf16 %v5356_v42  ;;  %v2084_v30 = vunpack.c.l.bf16 %v2082_v43 }
 0x5e8   :  { %v1935_v51 = vpack.c.bf16 %v1934_v50, %v1934_v50 }
 0x5ea   :  { %3633 = vmatmul.mubr.bf16.vlgmr.msra.gmra.mrb[60].mxu0 %v1935_v51  ;;  %3653 = vmatmul.mubr.bf16.vlgmr.msra.gmra.mrb[60].mxu1 %v1935_v51 }
 0x5eb   :  { %3657 = vmatpush3.bf16.msra.mxu0 %v4936_v5  ;;  %3677 = vmatpush3.bf16.msra.mxu1 %v4939_v6 }
 0x5ec   :  { %3658 = vmatprep.subr.bf16.mxu0 %v5352_v15  ;;  %3678 = vmatprep.subr.bf16.mxu1 %v5352_v15 }
 0x5ed   :  { %3672 = vmatprep.mubr.msk.bf16.mxu0 %vm4317_vm0, %v5352_v15  ;;  %3692 = vmatprep.mubr.msk.bf16.mxu1 %vm4317_vm0, %v5352_v15 }
 0x5ef   :  { %3659 = vmatpush3.bf16.msra.mxu0 %v4948_v48  ;;  %3679 = vmatpush3.bf16.msra.mxu1 %v4951_v7 }
 0x5f0   :  { %3660 = vmatprep.subr.bf16.mxu0 %v5352_v15  ;;  %3680 = vmatprep.subr.bf16.mxu1 %v5352_v15 }
 0x5f3   :  { %3661 = vmatpush3.bf16.msra.mxu0 %v4956_v36  ;;  %3681 = vmatpush3.bf16.msra.mxu1 %v4959_v52 }
 0x5f4   :  { %3662 = vmatprep.subr.bf16.mxu0 %v5352_v15  ;;  %3682 = vmatprep.subr.bf16.mxu1 %v5352_v15 }
 0x5f7   :  { %3663 = vmatpush3.bf16.msra.mxu0 %v4964_v14  ;;  %3683 = vmatpush3.bf16.msra.mxu1 %v4967_v53 }
 0x5f8   :  { %3664 = vmatprep.subr.bf16.mxu0 %v5352_v15  ;;  %3684 = vmatprep.subr.bf16.mxu1 %v5352_v15 }
 0x5fb   :  { %3665 = vmatpush3.bf16.msra.mxu0 %v4972_v8  ;;  %3685 = vmatpush3.bf16.msra.mxu1 %v4975_v34 }
 0x5fc   :  { %3666 = vmatprep.subr.bf16.mxu0 %v5352_v15  ;;  %3686 = vmatprep.subr.bf16.mxu1 %v5352_v15 }
 0x5ff   :  { %3667 = vmatpush3.bf16.msra.mxu0 %v4980_v35  ;;  %3687 = vmatpush3.bf16.msra.mxu1 %v4983_v37 }
 0x600   :  { %3668 = vmatprep.subr.bf16.mxu0 %v5352_v15  ;;  %3688 = vmatprep.subr.bf16.mxu1 %v5352_v15 }
 0x603   :  { %3669 = vmatpush3.bf16.msra.mxu0 %v4988_v25  ;;  %3689 = vmatpush3.bf16.msra.mxu1 %v4991_v38 }
 0x604   :  { %3670 = vmatprep.subr.bf16.mxu0 %v5352_v15  ;;  %3690 = vmatprep.subr.bf16.mxu1 %v5352_v15 }
 0x607   :  { %3671 = vmatpush3.bf16.msra.mxu0 %v4996_v40  ;;  %3691 = vmatpush3.bf16.msra.mxu1 %v4999_v41 }
 0x608   :  { %3696 = vmatprep.subr.bf16.mxu0 %v5352_v15  ;;  %3716 = vmatprep.subr.bf16.mxu1 %v5352_v15 }
 0x60a   :  { %3673 = vmatmul.mubr.bf16.vlgmr.msra.gmra.mrb[64].mxu0 %v1935_v51  ;;  %3693 = vmatmul.mubr.bf16.vlgmr.msra.gmra.mrb[64].mxu1 %v1935_v51 }
 0x60b   :  { %3697 = vmatpush3.bf16.msra.mxu0 %v4780_v39  ;;  %3717 = vmatpush3.bf16.msra.mxu1 %v4783_v9 }
 0x60c   :  { %3698 = vmatprep.subr.bf16.mxu0 %v5352_v15  ;;  %3718 = vmatprep.subr.bf16.mxu1 %v5352_v15 }
 0x60d   :  { %3712 = vmatprep.mubr.msk.bf16.mxu0 %vm4317_vm0, %v5352_v15  ;;  %3732 = vmatprep.mubr.msk.bf16.mxu1 %vm4317_vm0, %v5352_v15 }
 0x60f   :  { %3699 = vmatpush3.bf16.msra.mxu0 %v4792_v49  ;;  %3719 = vmatpush3.bf16.msra.mxu1 %v4795_v33 }
 0x610   :  { %3700 = vmatprep.subr.bf16.mxu0 %v5352_v15  ;;  %3720 = vmatprep.subr.bf16.mxu1 %v5352_v15 }
 0x613   :  { %3701 = vmatpush3.bf16.msra.mxu0 %v4800_v10  ;;  %3721 = vmatpush3.bf16.msra.mxu1 %v4803_v11 }
 0x614   :  { %3702 = vmatprep.subr.bf16.mxu0 %v5352_v15  ;;  %3722 = vmatprep.subr.bf16.mxu1 %v5352_v15 }
 0x617   :  { %3703 = vmatpush3.bf16.msra.mxu0 %v4888_v55  ;;  %3723 = vmatpush3.bf16.msra.mxu1 %v4891_v56 }
 0x618   :  { %3704 = vmatprep.subr.bf16.mxu0 %v5352_v15  ;;  %3724 = vmatprep.subr.bf16.mxu1 %v5352_v15 }
 0x61b   :  { %3705 = vmatpush3.bf16.msra.mxu0 %v4896_v57  ;;  %3725 = vmatpush3.bf16.msra.mxu1 %v4899_v58 }
 0x61c   :  { %3706 = vmatprep.subr.bf16.mxu0 %v5352_v15  ;;  %3726 = vmatprep.subr.bf16.mxu1 %v5352_v15 }
 0x61f   :  { %3707 = vmatpush3.bf16.msra.mxu0 %v4904_v59  ;;  %3727 = vmatpush3.bf16.msra.mxu1 %v4907_v60 }
 0x620   :  { %3708 = vmatprep.subr.bf16.mxu0 %v5352_v15  ;;  %3728 = vmatprep.subr.bf16.mxu1 %v5352_v15 }
 0x623   :  { %3709 = vmatpush3.bf16.msra.mxu0 %v4912_v61  ;;  %3729 = vmatpush3.bf16.msra.mxu1 %v4915_v62 }
 0x624   :  { %3710 = vmatprep.subr.bf16.mxu0 %v5352_v15  ;;  %3730 = vmatprep.subr.bf16.mxu1 %v5352_v15 }
 0x627   :  { %3711 = vmatpush3.bf16.msra.mxu0 %v4920_v63  ;;  %3731 = vmatpush3.bf16.msra.mxu1 %v4923_v1 }
 0x628   :  { %3736 = vmatprep.subr.bf16.mxu0 %v5352_v15  ;;  %3756 = vmatprep.subr.bf16.mxu1 %v5352_v15 }
 0x6bd   :  { %v1974_v3 = vpop.f32.mrb[60].mxu0  ;;  %v2025_v4 = vpop.f32.mrb[60].mxu1 }
 0x6be   :  { %v1980_v29 = vadd.f32 %v1974_v3, %v1939_v20  ;;  %v2031_v28 = vadd.f32 %v2025_v4, %v1990_v2  ;;  %v3634_v16 = vpop.f32.mrb[61].mxu0  ;;  %v3654_v23 = vpop.f32.mrb[61].mxu1 }
 0x6bf   :  { %v1977_v54 = vpop.f32.mrb[62].mxu0  ;;  %v2028_v17 = vpop.f32.mrb[62].mxu1 }
 0x6c0   :  { %v3635_v13 = vpop.f32.mrb[63].mxu0  ;;  %v3655_v22 = vpop.f32.mrb[63].mxu1  ;;  %v2863_v44 = vmul.f32 -1.442695, %v2031_v28  ;;  %v2862_v0 = vmul.f32 -1.442695, %v1980_v29 }
 0x6c2   :  { %4112 = vpow2.f32 %v2863_v44 }
 0x6c3   :  { %4114 = vpow2.f32 %v2862_v0 }
 0x6cc   :  { %v4113_v19 = vpop.eup %4112 }
 0x6cd   :  { %v4115_v21 = vpop.eup %4114  ;;  %v2035_v45 = vadd.f32 1.0, %v4113_v19 }
 0x6ce   :  { %v1984_v46 = vadd.f32 1.0, %v4115_v21 }
 0x6cf   :  { %4116 = vrcp.f32 %v2035_v45 }
 0x6d0   :  { %4118 = vrcp.f32 %v1984_v46 }
 0x6d9   :  { %v4117_v23 = vpop.eup %4116 }
 0x6da   :  { %v4119_v54 = vpop.eup %4118  ;;  %v2132_v13 = vmul.f32 %v4117_v23, %v5045_v26 }
 0x6dd   :  { %v2073_v50 = vpop.f32.mrb[64].mxu0  ;;  %v2119_v51 = vpop.f32.mrb[64].mxu1 }
 0x6de   :  { %v2079_v32 = vadd.f32 %v2073_v50, %v2038_v47  ;;  %v2125_v12 = vadd.f32 %v2119_v51, %v2084_v30  ;;  %v3674_v20 = vpop.f32.mrb[65].mxu0  ;;  %v3694_v2 = vpop.f32.mrb[65].mxu1 }
 0x6df   :  { %v2076_v3 = vpop.f32.mrb[66].mxu0  ;;  %v2122_v4 = vpop.f32.mrb[66].mxu1 }
 0x6e0   :  { %4120 = vtanh.f32 %v2079_v32  ;;  %v2864_v29 = vmul.f32 -1.442695, %v2125_v12  ;;  %v3675_v28 = vpop.f32.mrb[67].mxu0  ;;  %v3695_v16 = vpop.f32.mrb[67].mxu1  ;;  %v2284_v4 = vrot.slane %v4641_v27, 4 }
 0x6e1   :  { %v2240_v28 = vunpack.c.l.bf16 %v4641_v27 }
 0x6e2   :  { %4122 = vpow2.f32 %v2864_v29  ;;  %v2286_v16 = vunpack.c.l.bf16 %v2284_v4 }
 0x6ea   :  { %v4121_v17 = vpop.eup %4120 }
 0x6eb   :  { %v2133_v22 = vmul.f32 %v4121_v17, %v4119_v54 }
 0x6ec   :  { %v4123_v44 = vpop.eup %4122 }
 0x6ed   :  { %v5125_v0 = vadd.f32 %v2133_v22, %v2132_v13  ;;  %v2129_v19 = vadd.f32 1.0, %v4123_v44 }
 0x6ef   :  { %4124 = vtanh.f32 %v5125_v0 }
 0x6f0   :  { %4126 = vrcp.f32 %v2129_v19 }
 0x6f9   :  { %v4125_v21 = vpop.eup %4124 }
 0x6fa   :  { %v4127_v42 = vpop.eup %4126 }
 0x6fb   :  { %v2136_v43 = vmul.f32 %v4127_v42, %v4125_v21 }
 0x6fd   :  { %v2137_v45 = vpack.c.bf16 %v2136_v43, %v2136_v43 }
 0x6ff   :  { %3713 = vmatmul.mubr.bf16.vlgmr.msra.gmra.mrb[68].mxu0 %v2137_v45  ;;  %3733 = vmatmul.mubr.bf16.vlgmr.msra.gmra.mrb[68].mxu1 %v2137_v45 }
 0x700   :  { %3737 = vmatpush3.bf16.msra.mxu0 %v4936_v5  ;;  %3757 = vmatpush3.bf16.msra.mxu1 %v4939_v6 }
 0x701   :  { %3738 = vmatprep.subr.bf16.mxu0 %v5352_v15  ;;  %3758 = vmatprep.subr.bf16.mxu1 %v5352_v15 }
 0x702   :  { %3752 = vmatprep.mubr.msk.bf16.mxu0 %vm4317_vm0, %v5352_v15  ;;  %3772 = vmatprep.mubr.msk.bf16.mxu1 %vm4317_vm0, %v5352_v15 }
 0x704   :  { %3739 = vmatpush3.bf16.msra.mxu0 %v4948_v48  ;;  %3759 = vmatpush3.bf16.msra.mxu1 %v4951_v7 }
 0x705   :  { %3740 = vmatprep.subr.bf16.mxu0 %v5352_v15  ;;  %3760 = vmatprep.subr.bf16.mxu1 %v5352_v15 }
 0x708   :  { %3741 = vmatpush3.bf16.msra.mxu0 %v4956_v36  ;;  %3761 = vmatpush3.bf16.msra.mxu1 %v4959_v52 }
 0x709   :  { %3742 = vmatprep.subr.bf16.mxu0 %v5352_v15  ;;  %3762 = vmatprep.subr.bf16.mxu1 %v5352_v15 }
 0x70c   :  { %3743 = vmatpush3.bf16.msra.mxu0 %v4964_v14  ;;  %3763 = vmatpush3.bf16.msra.mxu1 %v4967_v53 }
 0x70d   :  { %3744 = vmatprep.subr.bf16.mxu0 %v5352_v15  ;;  %3764 = vmatprep.subr.bf16.mxu1 %v5352_v15 }
 0x710   :  { %3745 = vmatpush3.bf16.msra.mxu0 %v4972_v8  ;;  %3765 = vmatpush3.bf16.msra.mxu1 %v4975_v34 }
 0x711   :  { %3746 = vmatprep.subr.bf16.mxu0 %v5352_v15  ;;  %3766 = vmatprep.subr.bf16.mxu1 %v5352_v15 }
 0x714   :  { %3747 = vmatpush3.bf16.msra.mxu0 %v4980_v35  ;;  %3767 = vmatpush3.bf16.msra.mxu1 %v4983_v37 }
 0x715   :  { %3748 = vmatprep.subr.bf16.mxu0 %v5352_v15  ;;  %3768 = vmatprep.subr.bf16.mxu1 %v5352_v15 }
 0x718   :  { %3749 = vmatpush3.bf16.msra.mxu0 %v4988_v25  ;;  %3769 = vmatpush3.bf16.msra.mxu1 %v4991_v38 }
 0x719   :  { %3750 = vmatprep.subr.bf16.mxu0 %v5352_v15  ;;  %3770 = vmatprep.subr.bf16.mxu1 %v5352_v15 }
 0x71c   :  { %3751 = vmatpush3.bf16.msra.mxu0 %v4996_v40  ;;  %3771 = vmatpush3.bf16.msra.mxu1 %v4999_v41 }
 0x71d   :  { %3776 = vmatprep.subr.bf16.mxu0 %v5352_v15  ;;  %3796 = vmatprep.subr.bf16.mxu1 %v5352_v15 }
 0x71f   :  { %3753 = vmatmul.mubr.bf16.vlgmr.msra.gmra.mrb[72].mxu0 %v2137_v45  ;;  %3773 = vmatmul.mubr.bf16.vlgmr.msra.gmra.mrb[72].mxu1 %v2137_v45 }
 0x720   :  { %3777 = vmatpush3.bf16.msra.mxu0 %v4780_v39  ;;  %3797 = vmatpush3.bf16.msra.mxu1 %v4783_v9  ;;  %v2190_v39 = vrot.slane %v4639_v24, 4  ;;  %v2141_v9 = vunpack.c.l.bf16 %v4639_v24 }
 0x721   :  { %3778 = vmatprep.subr.bf16.mxu0 %v5352_v15  ;;  %3798 = vmatprep.subr.bf16.mxu1 %v5352_v15 }
 0x722   :  { %3792 = vmatprep.mubr.msk.bf16.mxu0 %vm4317_vm0, %v5352_v15  ;;  %3812 = vmatprep.mubr.msk.bf16.mxu1 %vm4317_vm0, %v5352_v15 }
 0x724   :  { %3779 = vmatpush3.bf16.msra.mxu0 %v4792_v49  ;;  %3799 = vmatpush3.bf16.msra.mxu1 %v4795_v33  ;;  %v2192_v49 = vunpack.c.l.bf16 %v2190_v39 }
 0x725   :  { %3780 = vmatprep.subr.bf16.mxu0 %v5352_v15  ;;  %3800 = vmatprep.subr.bf16.mxu1 %v5352_v15 }
 0x728   :  { %3781 = vmatpush3.bf16.msra.mxu0 %v4800_v10  ;;  %3801 = vmatpush3.bf16.msra.mxu1 %v4803_v11 }
 0x729   :  { %3782 = vmatprep.subr.bf16.mxu0 %v5352_v15  ;;  %3802 = vmatprep.subr.bf16.mxu1 %v5352_v15 }
 0x72c   :  { %3783 = vmatpush3.bf16.msra.mxu0 %v4888_v55  ;;  %3803 = vmatpush3.bf16.msra.mxu1 %v4891_v56 }
 0x72d   :  { %3784 = vmatprep.subr.bf16.mxu0 %v5352_v15  ;;  %3804 = vmatprep.subr.bf16.mxu1 %v5352_v15 }
 0x730   :  { %3785 = vmatpush3.bf16.msra.mxu0 %v4896_v57  ;;  %3805 = vmatpush3.bf16.msra.mxu1 %v4899_v58 }
 0x731   :  { %3786 = vmatprep.subr.bf16.mxu0 %v5352_v15  ;;  %3806 = vmatprep.subr.bf16.mxu1 %v5352_v15 }
 0x734   :  { %3787 = vmatpush3.bf16.msra.mxu0 %v4904_v59  ;;  %3807 = vmatpush3.bf16.msra.mxu1 %v4907_v60 }
 0x735   :  { %3788 = vmatprep.subr.bf16.mxu0 %v5352_v15  ;;  %3808 = vmatprep.subr.bf16.mxu1 %v5352_v15 }
 0x738   :  { %3789 = vmatpush3.bf16.msra.mxu0 %v4912_v61  ;;  %3809 = vmatpush3.bf16.msra.mxu1 %v4915_v62 }
 0x739   :  { %3790 = vmatprep.subr.bf16.mxu0 %v5352_v15  ;;  %3810 = vmatprep.subr.bf16.mxu1 %v5352_v15 }
 0x73c   :  { %3791 = vmatpush3.bf16.msra.mxu0 %v4920_v63  ;;  %3811 = vmatpush3.bf16.msra.mxu1 %v4923_v1 }
 0x73d   :  { %3816 = vmatprep.subr.bf16.mxu0 %v5352_v15  ;;  %3836 = vmatprep.subr.bf16.mxu1 %v5352_v15 }
 0x7d2   :  { %v2176_v33 = vpop.f32.mrb[68].mxu0  ;;  %v2227_v10 = vpop.f32.mrb[68].mxu1 }
 0x7d3   :  { %v2182_v11 = vadd.f32 %v2176_v33, %v2141_v9  ;;  %v2233_v26 = vadd.f32 %v2227_v10, %v2192_v49  ;;  %v3714_v46 = vpop.f32.mrb[69].mxu0  ;;  %v3734_v47 = vpop.f32.mrb[69].mxu1 }
 0x7d4   :  { %v2179_v30 = vpop.f32.mrb[70].mxu0  ;;  %v2230_v50 = vpop.f32.mrb[70].mxu1 }
 0x7d5   :  { %v3715_v51 = vpop.f32.mrb[71].mxu0  ;;  %v3735_v32 = vpop.f32.mrb[71].mxu1  ;;  %v2866_v12 = vmul.f32 -1.442695, %v2233_v26  ;;  %v2865_v20 = vmul.f32 -1.442695, %v2182_v11 }
 0x7d6   :  { %v4209_v51 = vld [vmem:[#allocation8 + $0x4] ss:$16 sps:$4 sm:$0xff]   ;;  %v4210_v32 = vld [vmem:[#allocation8 + $0x20] ss:$16 sps:$4 sm:$0xff]  }
 0x7d7   :  { %4128 = vpow2.f32 %v2866_v12  ;;  %v4211_v12 = vld [vmem:[#allocation8 + $0x24] ss:$16 sps:$4 sm:$0xff]  }
 0x7d8   :  { %4130 = vpow2.f32 %v2865_v20  ;;  %v4212_v20 = vld [vmem:[#allocation8 + $0x40] ss:$16 sps:$4 sm:$0xff]  }
 0x7e1   :  { %v4129_v2 = vpop.eup %4128 }
 0x7e2   :  { %v4131_v3 = vpop.eup %4130  ;;  %v2237_v24 = vadd.f32 1.0, %v4129_v2  ;;  %v4213_v2 = vld [vmem:[#allocation8 + $0x44] ss:$16 sps:$4 sm:$0xff]  }
 0x7e3   :  { %v2186_v29 = vadd.f32 1.0, %v4131_v3 }
 0x7e4   :  { %4132 = vrcp.f32 %v2237_v24 }
 0x7e5   :  { %4134 = vrcp.f32 %v2186_v29 }
 0x7ee   :  { %v4133_v39 = vpop.eup %4132 }
 0x7ef   :  { %v4135_v9 = vpop.eup %4134  ;;  %v2334_v27 = vmul.f32 %v4133_v39, %v5125_v0  ;;  %v4208_v0 = vld [vmem:[#allocation8] ss:$16 sps:$4 sm:$0xff]  }
 0x7f2   :  { %v2275_v23 = vpop.f32.mrb[72].mxu0  ;;  %v2321_v54 = vpop.f32.mrb[72].mxu1 }
 0x7f3   :  { %v2281_v17 = vadd.f32 %v2275_v23, %v2240_v28  ;;  %v2327_v13 = vadd.f32 %v2321_v54, %v2286_v16  ;;  %v3754_v22 = vpop.f32.mrb[73].mxu0  ;;  %v3774_v44 = vpop.f32.mrb[73].mxu1  ;;  %v5357_v54 = vld [vmem:[#allocation17_spill] sm:$0xff] }
 0x7f4   :  { %v2278_v19 = vpop.f32.mrb[74].mxu0  ;;  %v2324_v21 = vpop.f32.mrb[74].mxu1  ;;  %v2442_v22 = vunpack.c.l.bf16 %v5357_v54 }
 0x7f5   :  { %4136 = vtanh.f32 %v2281_v17  ;;  %v2867_v42 = vmul.f32 -1.442695, %v2327_v13  ;;  %v3755_v43 = vpop.f32.mrb[75].mxu0  ;;  %v3775_v45 = vpop.f32.mrb[75].mxu1  ;;  %v2486_v17 = vrot.slane %v5357_v54, 4 }
 0x7f7   :  { %4138 = vpow2.f32 %v2867_v42  ;;  %v2488_v44 = vunpack.c.l.bf16 %v2486_v17 }
 0x7ff   :  { %v4137_v49 = vpop.eup %4136 }
 0x800   :  { %v2335_v33 = vmul.f32 %v4137_v49, %v4135_v9 }
 0x801   :  { %v4139_v10 = vpop.eup %4138 }
 0x802   :  { %v5205_v11 = vadd.f32 %v2335_v33, %v2334_v27  ;;  %v2331_v26 = vadd.f32 1.0, %v4139_v10 }
 0x804   :  { %4140 = vtanh.f32 %v5205_v11 }
 0x805   :  { %4142 = vrcp.f32 %v2331_v26 }
 0x80e   :  { %v4141_v46 = vpop.eup %4140 }
 0x80f   :  { %v4143_v47 = vpop.eup %4142 }
 0x810   :  { %v2338_v30 = vmul.f32 %v4143_v47, %v4141_v46 }
 0x812   :  { %v2339_v50 = vpack.c.bf16 %v2338_v30, %v2338_v30 }
 0x814   :  { %3793 = vmatmul.mubr.bf16.vlgmr.msra.gmra.mrb[76].mxu0 %v2339_v50  ;;  %3813 = vmatmul.mubr.bf16.vlgmr.msra.gmra.mrb[76].mxu1 %v2339_v50 }
 0x815   :  { %3817 = vmatpush3.bf16.msra.mxu0 %v4936_v5  ;;  %3837 = vmatpush3.bf16.msra.mxu1 %v4939_v6 }
 0x816   :  { %3818 = vmatprep.subr.bf16.mxu0 %v5352_v15  ;;  %3838 = vmatprep.subr.bf16.mxu1 %v5352_v15 }
 0x817   :  { %3832 = vmatprep.mubr.msk.bf16.mxu0 %vm4317_vm0, %v5352_v15  ;;  %3852 = vmatprep.mubr.msk.bf16.mxu1 %vm4317_vm0, %v5352_v15 }
 0x819   :  { %3819 = vmatpush3.bf16.msra.mxu0 %v4948_v48  ;;  %3839 = vmatpush3.bf16.msra.mxu1 %v4951_v7 }
 0x81a   :  { %3820 = vmatprep.subr.bf16.mxu0 %v5352_v15  ;;  %3840 = vmatprep.subr.bf16.mxu1 %v5352_v15 }
 0x81d   :  { %3821 = vmatpush3.bf16.msra.mxu0 %v4956_v36  ;;  %3841 = vmatpush3.bf16.msra.mxu1 %v4959_v52 }
 0x81e   :  { %3822 = vmatprep.subr.bf16.mxu0 %v5352_v15  ;;  %3842 = vmatprep.subr.bf16.mxu1 %v5352_v15 }
 0x821   :  { %3823 = vmatpush3.bf16.msra.mxu0 %v4964_v14  ;;  %3843 = vmatpush3.bf16.msra.mxu1 %v4967_v53 }
 0x822   :  { %3824 = vmatprep.subr.bf16.mxu0 %v5352_v15  ;;  %3844 = vmatprep.subr.bf16.mxu1 %v5352_v15 }
 0x825   :  { %3825 = vmatpush3.bf16.msra.mxu0 %v4972_v8  ;;  %3845 = vmatpush3.bf16.msra.mxu1 %v4975_v34 }
 0x826   :  { %3826 = vmatprep.subr.bf16.mxu0 %v5352_v15  ;;  %3846 = vmatprep.subr.bf16.mxu1 %v5352_v15 }
 0x829   :  { %3827 = vmatpush3.bf16.msra.mxu0 %v4980_v35  ;;  %3847 = vmatpush3.bf16.msra.mxu1 %v4983_v37 }
 0x82a   :  { %3828 = vmatprep.subr.bf16.mxu0 %v5352_v15  ;;  %3848 = vmatprep.subr.bf16.mxu1 %v5352_v15 }
 0x82d   :  { %3829 = vmatpush3.bf16.msra.mxu0 %v4988_v25  ;;  %3849 = vmatpush3.bf16.msra.mxu1 %v4991_v38 }
 0x82e   :  { %3830 = vmatprep.subr.bf16.mxu0 %v5352_v15  ;;  %3850 = vmatprep.subr.bf16.mxu1 %v5352_v15 }
 0x831   :  { %3831 = vmatpush3.bf16.msra.mxu0 %v4996_v40  ;;  %3851 = vmatpush3.bf16.msra.mxu1 %v4999_v41 }
 0x832   :  { %3856 = vmatprep.subr.bf16.mxu0 %v5352_v15  ;;  %3876 = vmatprep.subr.bf16.mxu1 %v5352_v15 }
 0x834   :  { %3833 = vmatmul.mubr.bf16.vlgmr.msra.gmra.mrb[80].mxu0 %v2339_v50  ;;  %3853 = vmatmul.mubr.bf16.vlgmr.msra.gmra.mrb[80].mxu1 %v2339_v50 }
 0x835   :  { %3857 = vmatpush3.bf16.msra.mxu0 %v4208_v0  ;;  %3877 = vmatpush3.bf16.msra.mxu1 %v4209_v51 }
 0x836   :  { %3858 = vmatprep.subr.bf16.mxu0 %v5352_v15  ;;  %3878 = vmatprep.subr.bf16.mxu1 %v5352_v15 }
 0x837   :  { %3872 = vmatprep.mubr.msk.bf16.mxu0 %vm4317_vm0, %v5352_v15  ;;  %3892 = vmatprep.mubr.msk.bf16.mxu1 %vm4317_vm0, %v5352_v15 }
 0x839   :  { %3859 = vmatpush3.bf16.msra.mxu0 %v4210_v32  ;;  %3879 = vmatpush3.bf16.msra.mxu1 %v4211_v12 }
 0x83a   :  { %3860 = vmatprep.subr.bf16.mxu0 %v5352_v15  ;;  %3880 = vmatprep.subr.bf16.mxu1 %v5352_v15 }
 0x83d   :  { %3861 = vmatpush3.bf16.msra.mxu0 %v4212_v20  ;;  %3881 = vmatpush3.bf16.msra.mxu1 %v4213_v2 }
 0x83e   :  { %3862 = vmatprep.subr.bf16.mxu0 %v5352_v15  ;;  %3882 = vmatprep.subr.bf16.mxu1 %v5352_v15 }
 0x841   :  { %3863 = vmatpush3.bf16.msra.mxu0 %v4888_v55  ;;  %3883 = vmatpush3.bf16.msra.mxu1 %v4891_v56  ;;  %v2392_v55 = vrot.slane %v4645_v31, 4  ;;  %v2343_v56 = vunpack.c.l.bf16 %v4645_v31 }
 0x842   :  { %3864 = vmatprep.subr.bf16.mxu0 %v5352_v15  ;;  %3884 = vmatprep.subr.bf16.mxu1 %v5352_v15 }
 0x845   :  { %3865 = vmatpush3.bf16.msra.mxu0 %v4896_v57  ;;  %3885 = vmatpush3.bf16.msra.mxu1 %v4899_v58  ;;  %v2394_v57 = vunpack.c.l.bf16 %v2392_v55 }
 0x846   :  { %3866 = vmatprep.subr.bf16.mxu0 %v5352_v15  ;;  %3886 = vmatprep.subr.bf16.mxu1 %v5352_v15 }
 0x849   :  { %3867 = vmatpush3.bf16.msra.mxu0 %v4904_v59  ;;  %3887 = vmatpush3.bf16.msra.mxu1 %v4907_v60 }
 0x84a   :  { %3868 = vmatprep.subr.bf16.mxu0 %v5352_v15  ;;  %3888 = vmatprep.subr.bf16.mxu1 %v5352_v15 }
 0x84d   :  { %3869 = vmatpush3.bf16.msra.mxu0 %v4912_v61  ;;  %3889 = vmatpush3.bf16.msra.mxu1 %v4915_v62 }
 0x84e   :  { %3870 = vmatprep.subr.bf16.mxu0 %v5352_v15  ;;  %3890 = vmatprep.subr.bf16.mxu1 %v5352_v15 }
 0x851   :  { %3871 = vmatpush3.bf16.msra.mxu0 %v4920_v63  ;;  %3891 = vmatpush3.bf16.msra.mxu1 %v4923_v1 }
 0x852   :  { %3896 = vmatprep.subr.bf16.mxu0 %v5352_v15  ;;  %3916 = vmatprep.subr.bf16.mxu1 %v5352_v15 }
 0x8e7   :  { %v2378_v58 = vpop.f32.mrb[76].mxu0  ;;  %v2429_v59 = vpop.f32.mrb[76].mxu1 }
 0x8e8   :  { %v2384_v60 = vadd.f32 %v2378_v58, %v2343_v56  ;;  %v2435_v61 = vadd.f32 %v2429_v59, %v2394_v57  ;;  %v3794_v62 = vpop.f32.mrb[77].mxu0  ;;  %v3814_v3 = vpop.f32.mrb[77].mxu1 }
 0x8e9   :  { %v2381_v4 = vpop.f32.mrb[78].mxu0  ;;  %v2432_v24 = vpop.f32.mrb[78].mxu1 }
 0x8ea   :  { %v3795_v63 = vpop.f32.mrb[79].mxu0  ;;  %v3815_v29 = vpop.f32.mrb[79].mxu1  ;;  %v2869_v1 = vmul.f32 -1.442695, %v2435_v61  ;;  %v2868_v28 = vmul.f32 -1.442695, %v2384_v60 }
 0x8ec   :  { %4144 = vpow2.f32 %v2869_v1 }
 0x8ed   :  { %4146 = vpow2.f32 %v2868_v28 }
 0x8f6   :  { %v4145_v16 = vpop.eup %4144 }
 0x8f7   :  { %v4147_v23 = vpop.eup %4146  ;;  %v2439_v31 = vadd.f32 1.0, %v4145_v16 }
 0x8f8   :  { %v2388_v13 = vadd.f32 1.0, %v4147_v23 }
 0x8f9   :  { %4148 = vrcp.f32 %v2439_v31 }
 0x8fa   :  { %4150 = vrcp.f32 %v2388_v13 }
 0x903   :  { %v4149_v26 = vpop.eup %4148 }
 0x904   :  { %v4151_v46 = vpop.eup %4150  ;;  %v2536_v30 = vmul.f32 %v4149_v26, %v5205_v11  ;;  %v5358_v11 = vld [vmem:[#allocation18_spill] sm:$0xff] }
 0x905   :  { %v2688_v56 = vrot.slane %v5358_v11, 4  ;;  %v2644_v58 = vunpack.c.l.bf16 %v5358_v11 }
 0x907   :  { %v2477_v19 = vpop.f32.mrb[80].mxu0  ;;  %v2523_v21 = vpop.f32.mrb[80].mxu1  ;;  %v2690_v59 = vunpack.c.l.bf16 %v2688_v56 }
 0x908   :  { %v2483_v42 = vadd.f32 %v2477_v19, %v2442_v22  ;;  %v2529_v43 = vadd.f32 %v2523_v21, %v2488_v44  ;;  %v3834_v45 = vpop.f32.mrb[81].mxu0  ;;  %v3854_v39 = vpop.f32.mrb[81].mxu1 }
 0x909   :  { %v2480_v9 = vpop.f32.mrb[82].mxu0  ;;  %v2526_v49 = vpop.f32.mrb[82].mxu1 }
 0x90a   :  { %4152 = vtanh.f32 %v2483_v42  ;;  %v2870_v27 = vmul.f32 -1.442695, %v2529_v43  ;;  %v3835_v33 = vpop.f32.mrb[83].mxu0  ;;  %v3855_v10 = vpop.f32.mrb[83].mxu1 }
 0x90c   :  { %4154 = vpow2.f32 %v2870_v27 }
 0x914   :  { %v4153_v47 = vpop.eup %4152 }
 0x915   :  { %v2537_v50 = vmul.f32 %v4153_v47, %v4151_v46 }
 0x916   :  { %v4155_v0 = vpop.eup %4154 }
 0x917   :  { %v5279_v51 = vadd.f32 %v2537_v50, %v2536_v30  ;;  %v2533_v32 = vadd.f32 1.0, %v4155_v0 }
 0x919   :  { %4156 = vtanh.f32 %v5279_v51 }
 0x91a   :  { %4158 = vrcp.f32 %v2533_v32 }
 0x923   :  { %v4157_v12 = vpop.eup %4156 }
 0x924   :  { %v4159_v20 = vpop.eup %4158 }
 0x925   :  { %v2540_v2 = vmul.f32 %v4159_v20, %v4157_v12 }
 0x927   :  { %v2541_v55 = vpack.c.bf16 %v2540_v2, %v2540_v2 }
 0x929   :  { %3873 = vmatmul.mubr.bf16.vlgmr.msra.gmra.mrb[84].mxu0 %v2541_v55  ;;  %3893 = vmatmul.mubr.bf16.vlgmr.msra.gmra.mrb[84].mxu1 %v2541_v55 }
 0x92a   :  { %3897 = vmatpush3.bf16.msra.mxu0 %v4936_v5  ;;  %3917 = vmatpush3.bf16.msra.mxu1 %v4939_v6  ;;  %v2594_v5 = vrot.slane %v4654_v18, 4  ;;  %v2545_v6 = vunpack.c.l.bf16 %v4654_v18 }
 0x92b   :  { %3898 = vmatprep.subr.bf16.mxu0 %v5352_v15  ;;  %3918 = vmatprep.subr.bf16.mxu1 %v5352_v15 }
 0x92c   :  { %3912 = vmatprep.mubr.msk.bf16.mxu0 %vm4317_vm0, %v5352_v15  ;;  %3932 = vmatprep.mubr.msk.bf16.mxu1 %vm4317_vm0, %v5352_v15 }
 0x92e   :  { %3899 = vmatpush3.bf16.msra.mxu0 %v4948_v48  ;;  %3919 = vmatpush3.bf16.msra.mxu1 %v4951_v7  ;;  %v2596_v48 = vunpack.c.l.bf16 %v2594_v5 }
 0x92f   :  { %3900 = vmatprep.subr.bf16.mxu0 %v5352_v15  ;;  %3920 = vmatprep.subr.bf16.mxu1 %v5352_v15 }
 0x932   :  { %3901 = vmatpush3.bf16.msra.mxu0 %v4956_v36  ;;  %3921 = vmatpush3.bf16.msra.mxu1 %v4959_v52 }
 0x933   :  { %3902 = vmatprep.subr.bf16.mxu0 %v5352_v15  ;;  %3922 = vmatprep.subr.bf16.mxu1 %v5352_v15 }
 0x936   :  { %3903 = vmatpush3.bf16.msra.mxu0 %v4964_v14  ;;  %3923 = vmatpush3.bf16.msra.mxu1 %v4967_v53 }
 0x937   :  { %3904 = vmatprep.subr.bf16.mxu0 %v5352_v15  ;;  %3924 = vmatprep.subr.bf16.mxu1 %v5352_v15 }
 0x93a   :  { %3905 = vmatpush3.bf16.msra.mxu0 %v4972_v8  ;;  %3925 = vmatpush3.bf16.msra.mxu1 %v4975_v34 }
 0x93b   :  { %3906 = vmatprep.subr.bf16.mxu0 %v5352_v15  ;;  %3926 = vmatprep.subr.bf16.mxu1 %v5352_v15 }
 0x93e   :  { %3907 = vmatpush3.bf16.msra.mxu0 %v4980_v35  ;;  %3927 = vmatpush3.bf16.msra.mxu1 %v4983_v37 }
 0x93f   :  { %3908 = vmatprep.subr.bf16.mxu0 %v5352_v15  ;;  %3928 = vmatprep.subr.bf16.mxu1 %v5352_v15 }
 0x942   :  { %3909 = vmatpush3.bf16.msra.mxu0 %v4988_v25  ;;  %3929 = vmatpush3.bf16.msra.mxu1 %v4991_v38 }
 0x943   :  { %3910 = vmatprep.subr.bf16.mxu0 %v5352_v15  ;;  %3930 = vmatprep.subr.bf16.mxu1 %v5352_v15 }
 0x946   :  { %3911 = vmatpush3.bf16.msra.mxu0 %v4996_v40  ;;  %3931 = vmatpush3.bf16.msra.mxu1 %v4999_v41 }
 0x949   :  { %3913 = vmatmul.mubr.bf16.vlgmr.msra.gmra.mrb[88].mxu0 %v2541_v55  ;;  %3933 = vmatmul.mubr.bf16.vlgmr.msra.gmra.mrb[88].mxu1 %v2541_v55 }
 0x9fc   :  { %v2580_v7 = vpop.f32.mrb[84].mxu0  ;;  %v2631_v36 = vpop.f32.mrb[84].mxu1 }
 0x9fd   :  { %v2586_v52 = vadd.f32 %v2580_v7, %v2545_v6  ;;  %v2637_v14 = vadd.f32 %v2631_v36, %v2596_v48  ;;  %v3874_v53 = vpop.f32.mrb[85].mxu0  ;;  %v3894_v8 = vpop.f32.mrb[85].mxu1 }
 0x9fe   :  { %v2583_v34 = vpop.f32.mrb[86].mxu0  ;;  %v2634_v35 = vpop.f32.mrb[86].mxu1 }
 0x9ff   :  { %v3875_v15 = vpop.f32.mrb[87].mxu0  ;;  %v3895_v37 = vpop.f32.mrb[87].mxu1  ;;  %v2872_v25 = vmul.f32 -1.442695, %v2637_v14  ;;  %v2871_v38 = vmul.f32 -1.442695, %v2586_v52 }
 0xa01   :  { %4160 = vpow2.f32 %v2872_v25 }
 0xa02   :  { %4162 = vpow2.f32 %v2871_v38 }
 0xa0b   :  { %v4161_v40 = vpop.eup %4160 }
 0xa0c   :  { %v4163_v41 = vpop.eup %4162  ;;  %v2641_v18 = vadd.f32 1.0, %v4161_v40 }
 0xa0d   :  { %v2590_v57 = vadd.f32 1.0, %v4163_v41 }
 0xa0e   :  { %4164 = vrcp.f32 %v2641_v18 }
 0xa0f   :  { %4166 = vrcp.f32 %v2590_v57 }
 0xa18   :  { %v4165_v23 = vpop.eup %4164 }
 0xa19   :  { %v4167_v54 = vpop.eup %4166  ;;  %v2738_v31 = vmul.f32 %v4165_v23, %v5279_v51 }
 0xa1c   :  { %v2679_v60 = vpop.f32.mrb[88].mxu0  ;;  %v2725_v61 = vpop.f32.mrb[88].mxu1 }
 0xa1d   :  { %v2685_v62 = vadd.f32 %v2679_v60, %v2644_v58  ;;  %v2731_v3 = vadd.f32 %v2725_v61, %v2690_v59  ;;  %v3914_v4 = vpop.f32.mrb[89].mxu0  ;;  %v3934_v24 = vpop.f32.mrb[89].mxu1 }
 0xa1e   :  { %v2682_v63 = vpop.f32.mrb[90].mxu0  ;;  %v2728_v29 = vpop.f32.mrb[90].mxu1 }
 0xa1f   :  { %4168 = vtanh.f32 %v2685_v62  ;;  %v2873_v1 = vmul.f32 -1.442695, %v2731_v3  ;;  %v3915_v28 = vpop.f32.mrb[91].mxu0  ;;  %v3935_v16 = vpop.f32.mrb[91].mxu1 }
 0xa21   :  { %4170 = vpow2.f32 %v2873_v1 }
 0xa29   :  { %v4169_v17 = vpop.eup %4168 }
 0xa2a   :  { %v2739_v13 = vmul.f32 %v4169_v17, %v4167_v54 }
 0xa2b   :  { %v4171_v22 = vpop.eup %4170 }
 0xa2c   :  { %v2740_v44 = vadd.f32 %v2739_v13, %v2738_v31  ;;  %v2735_v19 = vadd.f32 1.0, %v4171_v22 }
 0xa2e   :  { %4172 = vtanh.f32 %v2740_v44 }
 0xa2f   :  { %4174 = vrcp.f32 %v2735_v19 }
 0xa38   :  { %v4173_v21 = vpop.eup %4172 }
 0xa39   :  { %v4175_v42 = vpop.eup %4174 }
 0xa3a   :  { %v2742_v43 = vmul.f32 %v4175_v42, %v4173_v21 }
 0xa3c   :  { %2743 = vst [vmem:[#allocation9] sm:$0xff] %v2742_v43 }
 0xa3d   :  { %4291 = shalt.err (!%p4288_p0)
}
 0xa3e   :  { %s4292_s6 = scalar_lea.hbm %s5337_s4, 128 }
 0xa3f   :  { %p4293_p1 = scmp.ne.s32.totalorder %s5337_s4, %s4292_s6  ;;  %p4296_p2 = scmp.lt.u32.totalorder %s4292_s6, %s5337_s4 }
 0xa41   :  { %p4298_p3 = pnand %p4296_p2, %p4293_p1 }
 0xa43   :  { %4301 = shalt.err (!%p4298_p3)
}
 0xa44   :  { %2753 = dma.vmem_to_hbm [thread:$0]  %s2751_s26, 128, %s5337_s4, [#allocation5]  }
 0xa45   :  { %4306 = dma.done.wait [#allocation5], 128  }
 0xa46   :  { %4307 = vsyncadd [#allocation5], 4294967168 }
 0xa47   :  { %2757 = vsyncpa [#allocation4], 1 }
 0xa48   :  { %2758 = vsyncpa [#allocation7], 1 }
 0xa49   :  { %2759 = vsyncpa [#allocation5], 1 }

// kernel: tpu_custom_call.1
= control target key start
LH: loop header
LB: loop body
LE: loop exit
PB: predicated region body
PF: predicated region fallthrough
CT: control target
= control target key end

     0   :  { %9 = vsyncpa [#allocation4], 0  ;;  %s5333_s0 = inlined_call_operand.hbm [shape: bf16[9,8,128], index: 0, kind: input, shape index: {}]   ;;  %s5334_s1 = inlined_call_operand.hbm [shape: bf16[128,512], index: 1, kind: input, shape index: {}]   ;;  %s5335_s2 = inlined_call_operand.hbm [shape: bf16[128,512], index: 2, kind: input, shape index: {}]   ;;  %s5336_s3 = inlined_call_operand.vmem [shape: f32[1,512], index: 3, kind: input, shape index: {}]   ;;  %s5337_s4 = inlined_call_operand.hbm [shape: f32[8,128], index: 4, kind: output, shape index: {}]  }
   0x1   :  { %10 = vsyncpa [#allocation7], 0 }
   0x2   :  { %11 = vsyncpa [#allocation5], 0  ;;  %s4308_s15 = smov [#allocation6]   ;;  %s4214_s19 = scalar_lea.hbm %s5334_s1, 4096 }
   0x3   :  { %s29_s16 = sshll.u32 %s4308_s15, 4  ;;  %p4215_p0 = scmp.ne.s32.totalorder %s5334_s1, %s4214_s19  ;;  %s30_s16 = int_to_ptr.vmem [resolvable:$true] %s29_s16 }
   0x4   :  { %p4218_p1 = scmp.lt.u32.totalorder %s4214_s19, %s5334_s1 }
   0x6   :  { %p4220_p2 = pnand %p4218_p1, %p4215_p0 }
   0x8   :  { %4223 = shalt.err (!%p4220_p2)
}
   0x9   :  { %s4224_s24 = scalar_lea.vmem %s30_s16, 4096  ;;  %p4229_p4 = scmp.lt.s32.totalorder %s30_s16, %s30_s16 }
   0xa   :  { %p4225_p3 = scmp.ne.s32.totalorder %s30_s16, %s4224_s24  ;;  %p4230_p5 = scmp.lt.s32.totalorder %s4224_s24, %s4224_s24 }
   0xc   :  { %p4231_p6 = por %p4230_p5, %p4229_p4 }
   0xe   :  { %p4232_p7 = pnand %p4231_p6, %p4225_p3 }
  0x10   :  { %4235 = shalt.err (!%p4232_p7)
}
  0x11   :  { %s4309_s25 = smov 256   ;;  %s4310_s26 = smov 16  }
  0x12   :  { %35 = dma.hbm_to_vmem [thread:$0]  %s5334_s1, 4096, %s30_s16, [#allocation7], %s4309_s25, %s4309_s25, %s4310_s26  }
  0x13   :  { %s4311_s29 = smov [#allocation3]   ;;  %s4236_s7 = scalar_lea.hbm %s5333_s0, 576 }
  0x14   :  { %s17_s30 = sshll.u32 %s4311_s29, 4  ;;  %p4237_p8 = scmp.ne.s32.totalorder %s5333_s0, %s4236_s7  ;;  %s18_s30 = int_to_ptr.vmem [resolvable:$true] %s17_s30 }
  0x15   :  { %p4240_p9 = scmp.lt.u32.totalorder %s4236_s7, %s5333_s0 }
  0x17   :  { %p4242_p10 = pnand %p4240_p9, %p4237_p8 }
  0x19   :  { %4245 = shalt.err (!%p4242_p10)
}
  0x1a   :  { %s4246_s12 = scalar_lea.vmem %s18_s30, 576  ;;  %p4251_p12 = scmp.lt.s32.totalorder %s18_s30, %s18_s30 }
  0x1b   :  { %p4247_p11 = scmp.ne.s32.totalorder %s18_s30, %s4246_s12  ;;  %p4252_p13 = scmp.lt.s32.totalorder %s4246_s12, %s4246_s12 }
  0x1d   :  { %p4253_p0 = por %p4252_p13, %p4251_p12 }
  0x1f   :  { %p4254_p1 = pnand %p4253_p0, %p4247_p11 }
  0x21   :  { %4257 = shalt.err (!%p4254_p1)
}
  0x22   :  { %s4312_s1 = smov 64   ;;  %s4313_s13 = smov 4  }
  0x23   :  { %23 = dma.hbm_to_vmem [thread:$0]  %s5333_s0, 576, %s18_s30, [#allocation4], %s4312_s1, %s4312_s1, %s4313_s13  }
  0x24   :  { %s4314_s16 = smov [#allocation8]   ;;  %s4258_s20 = scalar_lea.hbm %s5335_s2, 4096 }
  0x25   :  { %s41_s17 = sshll.u32 %s4314_s16, 4  ;;  %p4259_p2 = scmp.ne.s32.totalorder %s5335_s2, %s4258_s20  ;;  %s42_s17 = int_to_ptr.vmem [resolvable:$true] %s41_s17 }
  0x26   :  { %p4262_p3 = scmp.lt.u32.totalorder %s4258_s20, %s5335_s2 }
  0x28   :  { %p4264_p4 = pnand %p4262_p3, %p4259_p2 }
  0x2a   :  { %4267 = shalt.err (!%p4264_p4)
}
  0x2b   :  { %s4268_s27 = scalar_lea.vmem %s42_s17, 4096  ;;  %p4273_p6 = scmp.lt.s32.totalorder %s42_s17, %s42_s17 }
  0x2c   :  { %p4269_p5 = scmp.ne.s32.totalorder %s42_s17, %s4268_s27  ;;  %p4274_p7 = scmp.lt.s32.totalorder %s4268_s27, %s4268_s27 }
  0x2e   :  { %p4275_p8 = por %p4274_p7, %p4273_p6 }
  0x30   :  { %p4276_p9 = pnand %p4275_p8, %p4269_p5 }
  0x32   :  { %4279 = shalt.err (!%p4276_p9)
}
  0x33   :  { %47 = dma.hbm_to_vmem [thread:$0]  %s5335_s2, 4096, %s42_s17, [#allocation7], %s4309_s25, %s4309_s25, %s4310_s26  }
  0x34   :  { %4302 = dma.done.wait [#allocation4], 576  }
  0x35   :  { %4303 = vsyncadd [#allocation4], 4294966720 }
  0x36   :  { %4304 = dma.done.wait [#allocation7], 8192  }
  0x37   :  { %4305 = vsyncadd [#allocation7], 4294959104  ;;  %v4315_v0 = vmov 0   ;;  %v3947_v1 = vld [vmem:[#allocation6 + $0x4] ss:$16 sps:$4 sm:$0xff]   ;;  %v3995_v33 = vld [vmem:[#allocation3] sm:$0xff]  }
  0x38   :  { %321 = vmatprep.mubr.bf16.mxu0 %v4315_v0  ;;  %402 = vmatprep.mubr.bf16.mxu1 %v4315_v0  ;;  %v3949_v2 = vld [vmem:[#allocation6 + $0xc] ss:$16 sps:$4 sm:$0xff]   ;;  %v3951_v3 = vld [vmem:[#allocation6] ss:$16 sps:$4 sm:$0xff]   ;;  %v3952_v4 = vld [vmem:[#allocation6 + $0x8] ss:$16 sps:$4 sm:$0xff]  }
  0x39   :  { %289 = vmatprep.subr.bf16.mxu0 %v3947_v1  ;;  %370 = vmatprep.subr.bf16.mxu1 %v3949_v2  ;;  %v3953_v5 = vld [vmem:[#allocation6 + $0x24] ss:$16 sps:$4 sm:$0xff]   ;;  %v3955_v6 = vld [vmem:[#allocation6 + $0x2c] ss:$16 sps:$4 sm:$0xff]   ;;  %v3957_v7 = vld [vmem:[#allocation6 + $0x20] ss:$16 sps:$4 sm:$0xff]  }
  0x3a   :  { %290 = vmatpush1.bf16.msra.mxu0 %v3951_v3  ;;  %371 = vmatpush1.bf16.msra.mxu1 %v3952_v4  ;;  %v3958_v8 = vld [vmem:[#allocation6 + $0x28] ss:$16 sps:$4 sm:$0xff]   ;;  %v3959_v9 = vld [vmem:[#allocation6 + $0x44] ss:$16 sps:$4 sm:$0xff]   ;;  %v3961_v10 = vld [vmem:[#allocation6 + $0x4c] ss:$16 sps:$4 sm:$0xff]  }
  0x3b   :  { %291 = vmatprep.subr.bf16.mxu0 %v3953_v5  ;;  %372 = vmatprep.subr.bf16.mxu1 %v3955_v6  ;;  %v3963_v11 = vld [vmem:[#allocation6 + $0x40] ss:$16 sps:$4 sm:$0xff]   ;;  %v3964_v12 = vld [vmem:[#allocation6 + $0x48] ss:$16 sps:$4 sm:$0xff]   ;;  %v3965_v13 = vld [vmem:[#allocation6 + $0x64] ss:$16 sps:$4 sm:$0xff]  }
  0x3c   :  { %v3967_v14 = vld [vmem:[#allocation6 + $0x6c] ss:$16 sps:$4 sm:$0xff]   ;;  %v3969_v15 = vld [vmem:[#allocation6 + $0x60] ss:$16 sps:$4 sm:$0xff]   ;;  %v3970_v16 = vld [vmem:[#allocation6 + $0x68] ss:$16 sps:$4 sm:$0xff]  }
  0x3d   :  { %v3971_v17 = vld [vmem:[#allocation6 + $0x84] ss:$16 sps:$4 sm:$0xff]   ;;  %v3973_v18 = vld [vmem:[#allocation6 + $0x8c] ss:$16 sps:$4 sm:$0xff]   ;;  %v3975_v19 = vld [vmem:[#allocation6 + $0x80] ss:$16 sps:$4 sm:$0xff]  }
  0x3e   :  { %292 = vmatpush1.bf16.msra.mxu0 %v3957_v7  ;;  %373 = vmatpush1.bf16.msra.mxu1 %v3958_v8  ;;  %v3976_v20 = vld [vmem:[#allocation6 + $0x88] ss:$16 sps:$4 sm:$0xff]   ;;  %v3977_v21 = vld [vmem:[#allocation6 + $0xa4] ss:$16 sps:$4 sm:$0xff]   ;;  %v3979_v22 = vld [vmem:[#allocation6 + $0xac] ss:$16 sps:$4 sm:$0xff]  }
  0x3f   :  { %293 = vmatprep.subr.bf16.mxu0 %v3959_v9  ;;  %374 = vmatprep.subr.bf16.mxu1 %v3961_v10  ;;  %v3981_v23 = vld [vmem:[#allocation6 + $0xa0] ss:$16 sps:$4 sm:$0xff]   ;;  %v3982_v24 = vld [vmem:[#allocation6 + $0xa8] ss:$16 sps:$4 sm:$0xff]   ;;  %v3983_v25 = vld [vmem:[#allocation6 + $0xc4] ss:$16 sps:$4 sm:$0xff]  }
  0x40   :  { %v3985_v26 = vld [vmem:[#allocation6 + $0xcc] ss:$16 sps:$4 sm:$0xff]   ;;  %v3987_v27 = vld [vmem:[#allocation6 + $0xc0] ss:$16 sps:$4 sm:$0xff]   ;;  %v3988_v28 = vld [vmem:[#allocation6 + $0xc8] ss:$16 sps:$4 sm:$0xff]  }
  0x41   :  { %v3989_v29 = vld [vmem:[#allocation6 + $0xe4] ss:$16 sps:$4 sm:$0xff]   ;;  %v3991_v30 = vld [vmem:[#allocation6 + $0xec] ss:$16 sps:$4 sm:$0xff]   ;;  %v3993_v31 = vld [vmem:[#allocation6 + $0xe0] ss:$16 sps:$4 sm:$0xff]  }
  0x42   :  { %294 = vmatpush1.bf16.msra.mxu0 %v3963_v11  ;;  %375 = vmatpush1.bf16.msra.mxu1 %v3964_v12  ;;  %v3994_v32 = vld [vmem:[#allocation6 + $0xe8] ss:$16 sps:$4 sm:$0xff]   ;;  %v4388_v34 = vld [vmem:[#allocation8] ss:$16 sps:$4 sm:$0xff]   ;;  %v4390_v35 = vld [vmem:[#allocation8 + $0x4] ss:$16 sps:$4 sm:$0xff]  }
  0x43   :  { %295 = vmatprep.subr.bf16.mxu0 %v3965_v13  ;;  %376 = vmatprep.subr.bf16.mxu1 %v3967_v14  ;;  %v5338_v36 = vmov 0.0   ;;  %v4394_v37 = vld [vmem:[#allocation8 + $0x20] ss:$16 sps:$4 sm:$0xff]   ;;  %v4398_v38 = vld [vmem:[#allocation8 + $0x24] ss:$16 sps:$4 sm:$0xff]   ;;  %vm4317_vm0 = vmmov 0  }
  0x44   :  { %v4000_v39 = vld [vmem:[#allocation3 + $0x8] sm:$0xff]   ;;  %v4404_v40 = vld [vmem:[#allocation8 + $0x40] ss:$16 sps:$4 sm:$0xff]   ;;  %v4008_v49 = vld [vmem:[#allocation3 + $0x18] sm:$0xff]  }
  0x45   :  { %v4408_v41 = vld [vmem:[#allocation8 + $0x44] ss:$16 sps:$4 sm:$0xff]   ;;  %v4412_v42 = vld [vmem:[#allocation8 + $0x60] ss:$16 sps:$4 sm:$0xff]   ;;  %v4013_v54 = vld [vmem:[#allocation3 + $0x20] ss:$0 sps:$4 sm:$0xff]  }
  0x46   :  { %296 = vmatpush1.bf16.msra.mxu0 %v3969_v15  ;;  %377 = vmatpush1.bf16.msra.mxu1 %v3970_v16  ;;  %v4416_v43 = vld [vmem:[#allocation8 + $0x64] ss:$16 sps:$4 sm:$0xff]   ;;  %v4003_v44 = vld [vmem:[#allocation3 + $0x10] sm:$0xff]   ;;  %v4466_v55 = vld [vmem:[#allocation8 + $0x8] ss:$16 sps:$4 sm:$0xff]  }
  0x47   :  { %297 = vmatprep.subr.bf16.mxu0 %v3971_v17  ;;  %378 = vmatprep.subr.bf16.mxu1 %v3973_v18  ;;  %v4422_v45 = vld [vmem:[#allocation8 + $0x80] ss:$16 sps:$4 sm:$0xff]   ;;  %v4426_v46 = vld [vmem:[#allocation8 + $0x84] ss:$16 sps:$4 sm:$0xff]   ;;  %v4468_v56 = vld [vmem:[#allocation8 + $0xc] ss:$16 sps:$4 sm:$0xff]  }
  0x48   :  { %v4430_v47 = vld [vmem:[#allocation8 + $0xa0] ss:$16 sps:$4 sm:$0xff]   ;;  %v4434_v48 = vld [vmem:[#allocation8 + $0xa4] ss:$16 sps:$4 sm:$0xff]   ;;  %v4474_v57 = vld [vmem:[#allocation8 + $0x28] ss:$16 sps:$4 sm:$0xff]  }
  0x49   :  { %v4442_v50 = vld [vmem:[#allocation8 + $0xc0] ss:$16 sps:$4 sm:$0xff]   ;;  %v4446_v51 = vld [vmem:[#allocation8 + $0xc4] ss:$16 sps:$4 sm:$0xff]   ;;  %v4476_v58 = vld [vmem:[#allocation8 + $0x2c] ss:$16 sps:$4 sm:$0xff]  }
  0x4a   :  { %298 = vmatpush1.bf16.msra.mxu0 %v3975_v19  ;;  %379 = vmatpush1.bf16.msra.mxu1 %v3976_v20  ;;  %v4452_v52 = vld [vmem:[#allocation8 + $0xe0] ss:$16 sps:$4 sm:$0xff]   ;;  %v4454_v53 = vld [vmem:[#allocation8 + $0xe4] ss:$16 sps:$4 sm:$0xff]   ;;  %v4486_v59 = vld [vmem:[#allocation8 + $0x48] ss:$16 sps:$4 sm:$0xff]  }
  0x4b   :  { %299 = vmatprep.subr.bf16.mxu0 %v3977_v21  ;;  %380 = vmatprep.subr.bf16.mxu1 %v3979_v22  ;;  %v4488_v60 = vld [vmem:[#allocation8 + $0x4c] ss:$16 sps:$4 sm:$0xff]   ;;  %v4494_v61 = vld [vmem:[#allocation8 + $0x68] ss:$16 sps:$4 sm:$0xff]  }
  0x4c   :  { %v4496_v62 = vld [vmem:[#allocation8 + $0x6c] ss:$16 sps:$4 sm:$0xff]   ;;  %v4502_v63 = vld [vmem:[#allocation8 + $0x88] ss:$16 sps:$4 sm:$0xff]  }
  0x4d   :  { %v4504_v1 = vld [vmem:[#allocation8 + $0x8c] ss:$16 sps:$4 sm:$0xff]   ;;  %v4510_v2 = vld [vmem:[#allocation8 + $0xa8] ss:$16 sps:$4 sm:$0xff]  }
  0x4e   :  { %300 = vmatpush1.bf16.msra.mxu0 %v3981_v23  ;;  %381 = vmatpush1.bf16.msra.mxu1 %v3982_v24  ;;  %v4512_v3 = vld [vmem:[#allocation8 + $0xac] ss:$16 sps:$4 sm:$0xff]   ;;  %v4518_v4 = vld [vmem:[#allocation8 + $0xc8] ss:$16 sps:$4 sm:$0xff]  }
  0x4f   :  { %301 = vmatprep.subr.bf16.mxu0 %v3983_v25  ;;  %382 = vmatprep.subr.bf16.mxu1 %v3985_v26  ;;  %v4520_v5 = vld [vmem:[#allocation8 + $0xcc] ss:$16 sps:$4 sm:$0xff]   ;;  %v4526_v6 = vld [vmem:[#allocation8 + $0xe8] ss:$16 sps:$4 sm:$0xff]  }
  0x50   :  { %v4528_v7 = vld [vmem:[#allocation8 + $0xec] ss:$16 sps:$4 sm:$0xff]  }
  0x51   :  { %v451_v11 = vld [vmem:[%s5336_s3] sm:$0xf]  ;;  %s4318_s3 = smov [#allocation9]  }
  0x52   :  { %302 = vmatpush1.bf16.msra.mxu0 %v3987_v27  ;;  %383 = vmatpush1.bf16.msra.mxu1 %v3988_v28  ;;  %s2750_s26 = sshll.u32 %s4318_s3, 4  ;;  %s2751_s26 = int_to_ptr.vmem [resolvable:$true] %s2750_s26 }
  0x53   :  { %303 = vmatprep.subr.bf16.mxu0 %v3989_v29  ;;  %384 = vmatprep.subr.bf16.mxu1 %v3991_v30  ;;  %s4280_s29 = scalar_lea.vmem %s2751_s26, 128  ;;  %p4285_p11 = scmp.lt.s32.totalorder %s2751_s26, %s2751_s26 }
  0x54   :  { %p4281_p10 = scmp.ne.s32.totalorder %s2751_s26, %s4280_s29  ;;  %p4286_p12 = scmp.lt.s32.totalorder %s4280_s29, %s4280_s29 }
  0x56   :  { %304 = vmatpush1.bf16.msra.mxu0 %v3993_v31  ;;  %385 = vmatpush1.bf16.msra.mxu1 %v3994_v32  ;;  %p4287_p13 = por %p4286_p12, %p4285_p11 }
  0x57   :  { %3216 = vmatprep.subr.bf16.mxu0 %v5338_v36  ;;  %3236 = vmatprep.subr.bf16.mxu1 %v5338_v36 }
  0x58   :  { %p4288_p0 = pnand %p4287_p13, %p4281_p10 }
  0x59   :  { %322 = vmatmul.mubr.bf16.vlgmr.msra.gmra.mrb[0].mxu0 %v3995_v33  ;;  %403 = vmatmul.mubr.bf16.vlgmr.msra.gmra.mrb[0].mxu1 %v3995_v33 }
  0x5a   :  { %3217 = vmatpush3.bf16.msra.mxu0 %v4388_v34  ;;  %3237 = vmatpush3.bf16.msra.mxu1 %v4390_v35 }
  0x5b   :  { %3218 = vmatprep.subr.bf16.mxu0 %v5338_v36  ;;  %3238 = vmatprep.subr.bf16.mxu1 %v5338_v36 }
  0x5c   :  { %331 = vmatprep.mubr.bf16.mxu0 %v4315_v0  ;;  %412 = vmatprep.mubr.bf16.mxu1 %v4315_v0 }
  0x5e   :  { %3219 = vmatpush3.bf16.msra.mxu0 %v4394_v37  ;;  %3239 = vmatpush3.bf16.msra.mxu1 %v4398_v38 }
  0x5f   :  { %3220 = vmatprep.subr.bf16.mxu0 %v5338_v36  ;;  %3240 = vmatprep.subr.bf16.mxu1 %v5338_v36 }
  0x61   :  { %332 = vmatmul.mubr.bf16.gmra.mrb[4].mxu0 %v4000_v39  ;;  %413 = vmatmul.mubr.bf16.gmra.mrb[4].mxu1 %v4000_v39 }
  0x62   :  { %3221 = vmatpush3.bf16.msra.mxu0 %v4404_v40  ;;  %3241 = vmatpush3.bf16.msra.mxu1 %v4408_v41 }
  0x63   :  { %341 = vmatprep.mubr.bf16.mxu0 %v4315_v0  ;;  %422 = vmatprep.mubr.bf16.mxu1 %v4315_v0 }
  0x64   :  { %3222 = vmatprep.subr.bf16.mxu0 %v5338_v36  ;;  %3242 = vmatprep.subr.bf16.mxu1 %v5338_v36 }
  0x66   :  { %3223 = vmatpush3.bf16.msra.mxu0 %v4412_v42  ;;  %3243 = vmatpush3.bf16.msra.mxu1 %v4416_v43 }
  0x67   :  { %3224 = vmatprep.subr.bf16.mxu0 %v5338_v36  ;;  %3244 = vmatprep.subr.bf16.mxu1 %v5338_v36 }
  0x69   :  { %342 = vmatmul.mubr.bf16.gmra.mrb[8].mxu0 %v4003_v44  ;;  %423 = vmatmul.mubr.bf16.gmra.mrb[8].mxu1 %v4003_v44 }
  0x6a   :  { %3225 = vmatpush3.bf16.msra.mxu0 %v4422_v45  ;;  %3245 = vmatpush3.bf16.msra.mxu1 %v4426_v46 }
  0x6b   :  { %351 = vmatprep.mubr.bf16.mxu0 %v4315_v0  ;;  %432 = vmatprep.mubr.bf16.mxu1 %v4315_v0 }
  0x6c   :  { %3226 = vmatprep.subr.bf16.mxu0 %v5338_v36  ;;  %3246 = vmatprep.subr.bf16.mxu1 %v5338_v36 }
  0x6e   :  { %3227 = vmatpush3.bf16.msra.mxu0 %v4430_v47  ;;  %3247 = vmatpush3.bf16.msra.mxu1 %v4434_v48 }
  0x6f   :  { %3228 = vmatprep.subr.bf16.mxu0 %v5338_v36  ;;  %3248 = vmatprep.subr.bf16.mxu1 %v5338_v36 }
  0x71   :  { %352 = vmatmul.mubr.bf16.gmra.mrb[12].mxu0 %v4008_v49  ;;  %433 = vmatmul.mubr.bf16.gmra.mrb[12].mxu1 %v4008_v49 }
  0x72   :  { %361 = vmatprep.mubr.bf16.mxu0 %v4315_v0  ;;  %442 = vmatprep.mubr.bf16.mxu1 %v4315_v0 }
  0x73   :  { %3229 = vmatpush3.bf16.msra.mxu0 %v4442_v50  ;;  %3249 = vmatpush3.bf16.msra.mxu1 %v4446_v51 }
  0x74   :  { %3230 = vmatprep.subr.bf16.mxu0 %v5338_v36  ;;  %3250 = vmatprep.subr.bf16.mxu1 %v5338_v36 }
  0x77   :  { %3231 = vmatpush3.bf16.msra.mxu0 %v4452_v52  ;;  %3251 = vmatpush3.bf16.msra.mxu1 %v4454_v53 }
  0x78   :  { %3256 = vmatprep.subr.bf16.mxu0 %v5338_v36  ;;  %3276 = vmatprep.subr.bf16.mxu1 %v5338_v36 }
  0x79   :  { %362 = vmatmul.mubr.bf16.gmra.mrb[16].mxu0 %v4013_v54  ;;  %443 = vmatmul.mubr.bf16.gmra.mrb[16].mxu1 %v4013_v54 }
  0x7a   :  { %3232 = vmatprep.mubr.msk.bf16.mxu0 %vm4317_vm0, %v5338_v36  ;;  %3252 = vmatprep.mubr.msk.bf16.mxu1 %vm4317_vm0, %v5338_v36 }
  0x81   :  { %3233 = vmatmul.mubr.bf16.vlgmr.msra.gmra.mrb[20].mxu0 %v4315_v0  ;;  %3253 = vmatmul.mubr.bf16.vlgmr.msra.gmra.mrb[20].mxu1 %v4315_v0 }
  0x82   :  { %3257 = vmatpush3.bf16.msra.mxu0 %v4466_v55  ;;  %3277 = vmatpush3.bf16.msra.mxu1 %v4468_v56 }
  0x83   :  { %3258 = vmatprep.subr.bf16.mxu0 %v5338_v36  ;;  %3278 = vmatprep.subr.bf16.mxu1 %v5338_v36 }
  0x84   :  { %3272 = vmatprep.mubr.msk.bf16.mxu0 %vm4317_vm0, %v5338_v36  ;;  %3292 = vmatprep.mubr.msk.bf16.mxu1 %vm4317_vm0, %v5338_v36 }
  0x86   :  { %3259 = vmatpush3.bf16.msra.mxu0 %v4474_v57  ;;  %3279 = vmatpush3.bf16.msra.mxu1 %v4476_v58 }
  0x87   :  { %3260 = vmatprep.subr.bf16.mxu0 %v5338_v36  ;;  %3280 = vmatprep.subr.bf16.mxu1 %v5338_v36 }
  0x8a   :  { %3261 = vmatpush3.bf16.msra.mxu0 %v4486_v59  ;;  %3281 = vmatpush3.bf16.msra.mxu1 %v4488_v60 }
  0x8b   :  { %3262 = vmatprep.subr.bf16.mxu0 %v5338_v36  ;;  %3282 = vmatprep.subr.bf16.mxu1 %v5338_v36 }
  0x8e   :  { %3263 = vmatpush3.bf16.msra.mxu0 %v4494_v61  ;;  %3283 = vmatpush3.bf16.msra.mxu1 %v4496_v62 }
  0x8f   :  { %3264 = vmatprep.subr.bf16.mxu0 %v5338_v36  ;;  %3284 = vmatprep.subr.bf16.mxu1 %v5338_v36 }
  0x92   :  { %3265 = vmatpush3.bf16.msra.mxu0 %v4502_v63  ;;  %3285 = vmatpush3.bf16.msra.mxu1 %v4504_v1 }
  0x93   :  { %3266 = vmatprep.subr.bf16.mxu0 %v5338_v36  ;;  %3286 = vmatprep.subr.bf16.mxu1 %v5338_v36 }
  0x96   :  { %3267 = vmatpush3.bf16.msra.mxu0 %v4510_v2  ;;  %3287 = vmatpush3.bf16.msra.mxu1 %v4512_v3 }
  0x97   :  { %3268 = vmatprep.subr.bf16.mxu0 %v5338_v36  ;;  %3288 = vmatprep.subr.bf16.mxu1 %v5338_v36 }
  0x9a   :  { %3269 = vmatpush3.bf16.msra.mxu0 %v4518_v4  ;;  %3289 = vmatpush3.bf16.msra.mxu1 %v4520_v5 }
  0x9b   :  { %3270 = vmatprep.subr.bf16.mxu0 %v5338_v36  ;;  %3290 = vmatprep.subr.bf16.mxu1 %v5338_v36 }
  0x9e   :  { %3271 = vmatpush3.bf16.msra.mxu0 %v4526_v6  ;;  %3291 = vmatpush3.bf16.msra.mxu1 %v4528_v7 }
  0x9f   :  { %3296 = vmatprep.subr.bf16.mxu0 %v5338_v36  ;;  %3316 = vmatprep.subr.bf16.mxu1 %v5338_v36 }
  0xa1   :  { %3273 = vmatmul.mubr.bf16.vlgmr.msra.gmra.mrb[24].mxu0 %v4315_v0  ;;  %3293 = vmatmul.mubr.bf16.vlgmr.msra.gmra.mrb[24].mxu1 %v4315_v0  ;;  %v453_v0 = vlaneseq }
  0xa2   :  { %3297 = vmatpush3.bf16.msra.mxu0 %v4388_v34  ;;  %3317 = vmatpush3.bf16.msra.mxu1 %v4390_v35 }
  0xa3   :  { %3298 = vmatprep.subr.bf16.mxu0 %v5338_v36  ;;  %3318 = vmatprep.subr.bf16.mxu1 %v5338_v36  ;;  %v454_v8 = vshrl.u32 %v453_v0, 7 }
  0xa4   :  { %3312 = vmatprep.mubr.msk.bf16.mxu0 %vm4317_vm0, %v5338_v36  ;;  %3332 = vmatprep.mubr.msk.bf16.mxu1 %vm4317_vm0, %v5338_v36 }
  0xa5   :  { %v455_v9 = vsub.s32 0, %v454_v8  ;;  %v463_v10 = vsub.s32 2, %v454_v8  ;;  %v459_v12 = vsub.s32 1, %v454_v8  ;;  %v467_v13 = vsub.s32 3, %v454_v8 }
  0xa6   :  { %3299 = vmatpush3.bf16.msra.mxu0 %v4394_v37  ;;  %3319 = vmatpush3.bf16.msra.mxu1 %v4398_v38 }
  0xa7   :  { %3300 = vmatprep.subr.bf16.mxu0 %v5338_v36  ;;  %3320 = vmatprep.subr.bf16.mxu1 %v5338_v36  ;;  %v4577_v14 = vrot.slane %v451_v11, %v455_v9  ;;  %v4579_v15 = vrot.slane %v451_v11, %v463_v10  ;;  %v4581_v16 = vrot.slane %v451_v11, %v459_v12 }
  0xa8   :  { %v4583_v17 = vrot.slane %v451_v11, %v467_v13 }
  0xaa   :  { %3301 = vmatpush3.bf16.msra.mxu0 %v4404_v40  ;;  %3321 = vmatpush3.bf16.msra.mxu1 %v4408_v41 }
  0xab   :  { %3302 = vmatprep.subr.bf16.mxu0 %v5338_v36  ;;  %3322 = vmatprep.subr.bf16.mxu1 %v5338_v36 }
  0xae   :  { %3303 = vmatpush3.bf16.msra.mxu0 %v4412_v42  ;;  %3323 = vmatpush3.bf16.msra.mxu1 %v4416_v43 }
  0xaf   :  { %3304 = vmatprep.subr.bf16.mxu0 %v5338_v36  ;;  %3324 = vmatprep.subr.bf16.mxu1 %v5338_v36 }
  0xb2   :  { %3305 = vmatpush3.bf16.msra.mxu0 %v4422_v45  ;;  %3325 = vmatpush3.bf16.msra.mxu1 %v4426_v46 }
  0xb3   :  { %3306 = vmatprep.subr.bf16.mxu0 %v5338_v36  ;;  %3326 = vmatprep.subr.bf16.mxu1 %v5338_v36 }
  0xb6   :  { %3307 = vmatpush3.bf16.msra.mxu0 %v4430_v47  ;;  %3327 = vmatpush3.bf16.msra.mxu1 %v4434_v48 }
  0xb7   :  { %3308 = vmatprep.subr.bf16.mxu0 %v5338_v36  ;;  %3328 = vmatprep.subr.bf16.mxu1 %v5338_v36 }
  0xba   :  { %3309 = vmatpush3.bf16.msra.mxu0 %v4442_v50  ;;  %3329 = vmatpush3.bf16.msra.mxu1 %v4446_v51 }
  0xbb   :  { %3310 = vmatprep.subr.bf16.mxu0 %v5338_v36  ;;  %3330 = vmatprep.subr.bf16.mxu1 %v5338_v36 }
  0xbe   :  { %3311 = vmatpush3.bf16.msra.mxu0 %v4452_v52  ;;  %3331 = vmatpush3.bf16.msra.mxu1 %v4454_v53 }
  0xbf   :  { %3336 = vmatprep.subr.bf16.mxu0 %v5338_v36  ;;  %3356 = vmatprep.subr.bf16.mxu1 %v5338_v36 }
 0x12c   :  { %v323_v18 = vpop.f32.mrb[0].mxu0  ;;  %v404_v19 = vpop.f32.mrb[0].mxu1 }
 0x12d   :  { %v473_v20 = vadd.f32 %v4577_v14, %v323_v18  ;;  %v475_v21 = vadd.f32 %v4579_v15, %v404_v19  ;;  %v325_v22 = vpop.f32.mrb[1].mxu0  ;;  %v406_v23 = vpop.f32.mrb[1].mxu1 }
 0x12e   :  { %v474_v24 = vadd.f32 %v4581_v16, %v325_v22  ;;  %v476_v25 = vadd.f32 %v4583_v17, %v406_v23  ;;  %v327_v26 = vpop.f32.mrb[2].mxu0  ;;  %v408_v27 = vpop.f32.mrb[2].mxu1 }
 0x12f   :  { %v477_v28 = vadd.f32 %v4577_v14, %v327_v26  ;;  %v479_v29 = vadd.f32 %v4579_v15, %v408_v27  ;;  %v329_v30 = vpop.f32.mrb[3].mxu0  ;;  %v410_v31 = vpop.f32.mrb[3].mxu1 }
 0x130   :  { %v4591_v32 = vpack.c.bf16 %v474_v24, %v473_v20  ;;  %v4593_v33 = vpack.c.bf16 %v476_v25, %v475_v21  ;;  %v478_v39 = vadd.f32 %v4581_v16, %v329_v30  ;;  %v480_v44 = vadd.f32 %v4583_v17, %v410_v31 }
 0x132   :  { %v4597_v49 = vpack.c.bf16 %v478_v39, %v477_v28  ;;  %v4599_v54 = vpack.c.bf16 %v480_v44, %v479_v29 }
 0x134   :  { %v333_v0 = vpop.f32.mrb[4].mxu0  ;;  %v414_v8 = vpop.f32.mrb[4].mxu1 }
 0x135   :  { %v481_v9 = vadd.f32 %v4577_v14, %v333_v0  ;;  %v483_v10 = vadd.f32 %v4579_v15, %v414_v8  ;;  %v335_v11 = vpop.f32.mrb[5].mxu0  ;;  %v416_v12 = vpop.f32.mrb[5].mxu1 }
 0x136   :  { %v482_v13 = vadd.f32 %v4581_v16, %v335_v11  ;;  %v484_v18 = vadd.f32 %v4583_v17, %v416_v12  ;;  %v337_v19 = vpop.f32.mrb[6].mxu0  ;;  %v418_v20 = vpop.f32.mrb[6].mxu1 }
 0x137   :  { %v485_v21 = vadd.f32 %v4577_v14, %v337_v19  ;;  %v487_v22 = vadd.f32 %v4579_v15, %v418_v20  ;;  %v339_v23 = vpop.f32.mrb[7].mxu0  ;;  %v420_v24 = vpop.f32.mrb[7].mxu1 }
 0x138   :  { %v4607_v25 = vpack.c.bf16 %v482_v13, %v481_v9  ;;  %v4609_v26 = vpack.c.bf16 %v484_v18, %v483_v10  ;;  %v486_v27 = vadd.f32 %v4581_v16, %v339_v23  ;;  %v488_v28 = vadd.f32 %v4583_v17, %v420_v24 }
 0x13a   :  { %v4613_v29 = vpack.c.bf16 %v486_v27, %v485_v21  ;;  %v4615_v30 = vpack.c.bf16 %v488_v28, %v487_v22 }
 0x13c   :  { %v343_v31 = vpop.f32.mrb[8].mxu0  ;;  %v424_v39 = vpop.f32.mrb[8].mxu1 }
 0x13d   :  { %v489_v44 = vadd.f32 %v4577_v14, %v343_v31  ;;  %v491_v0 = vadd.f32 %v4579_v15, %v424_v39  ;;  %v345_v8 = vpop.f32.mrb[9].mxu0  ;;  %v426_v11 = vpop.f32.mrb[9].mxu1 }
 0x13e   :  { %v490_v9 = vadd.f32 %v4581_v16, %v345_v8  ;;  %v492_v10 = vadd.f32 %v4583_v17, %v426_v11  ;;  %v347_v12 = vpop.f32.mrb[10].mxu0  ;;  %v428_v13 = vpop.f32.mrb[10].mxu1 }
 0x13f   :  { %v493_v18 = vadd.f32 %v4577_v14, %v347_v12  ;;  %v495_v19 = vadd.f32 %v4579_v15, %v428_v13  ;;  %v349_v20 = vpop.f32.mrb[11].mxu0  ;;  %v430_v21 = vpop.f32.mrb[11].mxu1 }
 0x140   :  { %v4623_v22 = vpack.c.bf16 %v490_v9, %v489_v44  ;;  %v4625_v23 = vpack.c.bf16 %v492_v10, %v491_v0  ;;  %v494_v24 = vadd.f32 %v4581_v16, %v349_v20  ;;  %v496_v27 = vadd.f32 %v4583_v17, %v430_v21 }
 0x142   :  { %5346 = vst [vmem:[#allocation13_spill] sm:$0xff] %v4623_v22  ;;  %5347 = vst [vmem:[#allocation14_spill] sm:$0xff] %v4625_v23  ;;  %v4629_v28 = vpack.c.bf16 %v494_v24, %v493_v18  ;;  %v4631_v31 = vpack.c.bf16 %v496_v27, %v495_v19 }
 0x144   :  { %5348 = vst [vmem:[#allocation15_spill] sm:$0xff] %v4629_v28  ;;  %5349 = vst [vmem:[#allocation16_spill] sm:$0xff] %v4631_v31  ;;  %v353_v39 = vpop.f32.mrb[12].mxu0  ;;  %v434_v8 = vpop.f32.mrb[12].mxu1 }
 0x145   :  { %v497_v11 = vadd.f32 %v4577_v14, %v353_v39  ;;  %v499_v12 = vadd.f32 %v4579_v15, %v434_v8  ;;  %v355_v13 = vpop.f32.mrb[13].mxu0  ;;  %v436_v36 = vpop.f32.mrb[13].mxu1 }
 0x146   :  { %v498_v44 = vadd.f32 %v4581_v16, %v355_v13  ;;  %v500_v0 = vadd.f32 %v4583_v17, %v436_v36  ;;  %v357_v9 = vpop.f32.mrb[14].mxu0  ;;  %v438_v10 = vpop.f32.mrb[14].mxu1 }
 0x147   :  { %v501_v20 = vadd.f32 %v4577_v14, %v357_v9  ;;  %v503_v18 = vadd.f32 %v4579_v15, %v438_v10  ;;  %v359_v19 = vpop.f32.mrb[15].mxu0  ;;  %v440_v21 = vpop.f32.mrb[15].mxu1 }
 0x148   :  { %v4639_v24 = vpack.c.bf16 %v498_v44, %v497_v11  ;;  %v4641_v27 = vpack.c.bf16 %v500_v0, %v499_v12  ;;  %v502_v39 = vadd.f32 %v4581_v16, %v359_v19  ;;  %v504_v8 = vadd.f32 %v4583_v17, %v440_v21 }
 0x14a   :  { %v4645_v31 = vpack.c.bf16 %v502_v39, %v501_v20  ;;  %v4647_v13 = vpack.c.bf16 %v504_v8, %v503_v18  ;;  %v834_v20 = vrot.slane %v4591_v32, 4 }
 0x14c   :  { %5350 = vst [vmem:[#allocation17_spill] sm:$0xff] %v4647_v13  ;;  %v363_v36 = vpop.f32.mrb[16].mxu0  ;;  %v444_v28 = vpop.f32.mrb[16].mxu1  ;;  %v836_v8 = vunpack.c.l.bf16 %v834_v20  ;;  %v932_v20 = vunpack.c.l.bf16 %v4593_v33 }
 0x14d   :  { %v505_v9 = vadd.f32 %v4577_v14, %v363_v36  ;;  %v507_v10 = vadd.f32 %v4579_v15, %v444_v28  ;;  %v365_v23 = vpop.f32.mrb[17].mxu0  ;;  %v446_v22 = vpop.f32.mrb[17].mxu1  ;;  %v737_v14 = vunpack.c.l.bf16 %v4591_v32 }
 0x14e   :  { %v506_v11 = vadd.f32 %v4581_v16, %v365_v23  ;;  %v508_v12 = vadd.f32 %v4583_v17, %v446_v22  ;;  %v367_v44 = vpop.f32.mrb[18].mxu0  ;;  %v448_v0 = vpop.f32.mrb[18].mxu1 }
 0x14f   :  { %v368_v19 = vpop.f32.mrb[19].mxu0  ;;  %v449_v21 = vpop.f32.mrb[19].mxu1 }
 0x150   :  { %v4654_v18 = vpack.c.bf16 %v506_v11, %v505_v9  ;;  %v4656_v39 = vpack.c.bf16 %v508_v12, %v507_v10  ;;  %v1024_v11 = vrot.slane %v4593_v33, 4 }
 0x152   :  { %5351 = vst [vmem:[#allocation18_spill] sm:$0xff] %v4656_v39 }
 0x154   :  { %v820_v15 = vpop.f32.mrb[20].mxu0  ;;  %v919_v28 = vpop.f32.mrb[20].mxu1 }
 0x155   :  { %v826_v36 = vadd.f32 %v820_v15, %v737_v14  ;;  %v925_v13 = vadd.f32 %v919_v28, %v836_v8  ;;  %v3234_v16 = vpop.f32.mrb[21].mxu0  ;;  %v3254_v23 = vpop.f32.mrb[21].mxu1  ;;  %v1026_v14 = vunpack.c.l.bf16 %v1024_v11 }
 0x156   :  { %v823_v17 = vpop.f32.mrb[22].mxu0  ;;  %v922_v22 = vpop.f32.mrb[22].mxu1 }
 0x157   :  { %v3235_v44 = vpop.f32.mrb[23].mxu0  ;;  %v3255_v0 = vpop.f32.mrb[23].mxu1  ;;  %v2832_v19 = vmul.f32 -1.442695, %v925_v13  ;;  %v2823_v21 = vmul.f32 -1.442695, %v826_v36 }
 0x159   :  { %4032 = vpow2.f32 %v2832_v19 }
 0x15a   :  { %4034 = vpow2.f32 %v2823_v21 }
 0x163   :  { %v4033_v9 = vpop.eup %4032 }
 0x164   :  { %v4035_v10 = vpop.eup %4034  ;;  %v929_v32 = vadd.f32 1.0, %v4033_v9 }
 0x165   :  { %v830_v12 = vadd.f32 1.0, %v4035_v10 }
 0x166   :  { %4036 = vrcp.f32 %v929_v32 }
 0x167   :  { %4038 = vrcp.f32 %v830_v12 }
 0x170   :  { %v4037_v19 = vpop.eup %4036 }
 0x171   :  { %v4039_v21 = vpop.eup %4038  ;;  %v1122_v33 = vmul.f32 0.0, %v4037_v19 }
 0x174   :  { %v1015_v8 = vpop.f32.mrb[24].mxu0  ;;  %v1109_v15 = vpop.f32.mrb[24].mxu1 }
 0x175   :  { %v1021_v28 = vadd.f32 %v1015_v8, %v932_v20  ;;  %v1115_v16 = vadd.f32 %v1109_v15, %v1026_v14  ;;  %v3274_v23 = vpop.f32.mrb[25].mxu0  ;;  %v3294_v17 = vpop.f32.mrb[25].mxu1  ;;  %v5352_v15 = vmov 0.0  }
 0x176   :  { %v1018_v13 = vpop.f32.mrb[26].mxu0  ;;  %v1112_v36 = vpop.f32.mrb[26].mxu1 }
 0x177   :  { %4040 = vtanh.f32 %v1021_v28  ;;  %v2849_v22 = vmul.f32 -1.442695, %v1115_v16  ;;  %v3275_v44 = vpop.f32.mrb[27].mxu0  ;;  %v3295_v0 = vpop.f32.mrb[27].mxu1 }
 0x179   :  { %4042 = vpow2.f32 %v2849_v22 }
 0x181   :  { %v4041_v9 = vpop.eup %4040 }
 0x182   :  { %v1123_v10 = vmul.f32 %v4041_v9, %v4039_v21  ;;  %v1274_v9 = vrot.slane %v4599_v54, 4 }
 0x183   :  { %v4043_v11 = vpop.eup %4042 }
 0x184   :  { %v4661_v39 = vadd.f32 %v1123_v10, %v1122_v33  ;;  %v1119_v32 = vadd.f32 1.0, %v4043_v11  ;;  %v1230_v10 = vunpack.c.l.bf16 %v4599_v54  ;;  %v1276_v11 = vunpack.c.l.bf16 %v1274_v9  ;;  %v4783_v9 = vld [vmem:[#allocation8 + $0x4] ss:$16 sps:$4 sm:$0xff]  }
 0x186   :  { %4044 = vtanh.f32 %v4661_v39 }
 0x187   :  { %4046 = vrcp.f32 %v1119_v32 }
 0x190   :  { %v4045_v12 = vpop.eup %4044 }
 0x191   :  { %v4047_v20 = vpop.eup %4046 }
 0x192   :  { %v1126_v14 = vmul.f32 %v4047_v20, %v4045_v12 }
 0x194   :  { %v1127_v8 = vpack.c.bf16 %v1126_v14, %v1126_v14 }
 0x196   :  { %3313 = vmatmul.mubr.bf16.vlgmr.msra.gmra.mrb[28].mxu0 %v1127_v8  ;;  %3333 = vmatmul.mubr.bf16.vlgmr.msra.gmra.mrb[28].mxu1 %v1127_v8 }
 0x197   :  { %3337 = vmatpush3.bf16.msra.mxu0 %v4466_v55  ;;  %3357 = vmatpush3.bf16.msra.mxu1 %v4468_v56 }
 0x198   :  { %3338 = vmatprep.subr.bf16.mxu0 %v5352_v15  ;;  %3358 = vmatprep.subr.bf16.mxu1 %v5352_v15 }
 0x199   :  { %3352 = vmatprep.mubr.msk.bf16.mxu0 %vm4317_vm0, %v5352_v15  ;;  %3372 = vmatprep.mubr.msk.bf16.mxu1 %vm4317_vm0, %v5352_v15 }
 0x19b   :  { %3339 = vmatpush3.bf16.msra.mxu0 %v4474_v57  ;;  %3359 = vmatpush3.bf16.msra.mxu1 %v4476_v58 }
 0x19c   :  { %3340 = vmatprep.subr.bf16.mxu0 %v5352_v15  ;;  %3360 = vmatprep.subr.bf16.mxu1 %v5352_v15 }
 0x19f   :  { %3341 = vmatpush3.bf16.msra.mxu0 %v4486_v59  ;;  %3361 = vmatpush3.bf16.msra.mxu1 %v4488_v60 }
 0x1a0   :  { %3342 = vmatprep.subr.bf16.mxu0 %v5352_v15  ;;  %3362 = vmatprep.subr.bf16.mxu1 %v5352_v15 }
 0x1a3   :  { %3343 = vmatpush3.bf16.msra.mxu0 %v4494_v61  ;;  %3363 = vmatpush3.bf16.msra.mxu1 %v4496_v62 }
 0x1a4   :  { %3344 = vmatprep.subr.bf16.mxu0 %v5352_v15  ;;  %3364 = vmatprep.subr.bf16.mxu1 %v5352_v15 }
 0x1a7   :  { %3345 = vmatpush3.bf16.msra.mxu0 %v4502_v63  ;;  %3365 = vmatpush3.bf16.msra.mxu1 %v4504_v1 }
 0x1a8   :  { %3346 = vmatprep.subr.bf16.mxu0 %v5352_v15  ;;  %3366 = vmatprep.subr.bf16.mxu1 %v5352_v15 }
 0x1ab   :  { %3347 = vmatpush3.bf16.msra.mxu0 %v4510_v2  ;;  %3367 = vmatpush3.bf16.msra.mxu1 %v4512_v3 }
 0x1ac   :  { %3348 = vmatprep.subr.bf16.mxu0 %v5352_v15  ;;  %3368 = vmatprep.subr.bf16.mxu1 %v5352_v15 }
 0x1af   :  { %3349 = vmatpush3.bf16.msra.mxu0 %v4518_v4  ;;  %3369 = vmatpush3.bf16.msra.mxu1 %v4520_v5 }
 0x1b0   :  { %3350 = vmatprep.subr.bf16.mxu0 %v5352_v15  ;;  %3370 = vmatprep.subr.bf16.mxu1 %v5352_v15 }
 0x1b3   :  { %3351 = vmatpush3.bf16.msra.mxu0 %v4526_v6  ;;  %3371 = vmatpush3.bf16.msra.mxu1 %v4528_v7 }
 0x1b4   :  { %3376 = vmatprep.subr.bf16.mxu0 %v5352_v15  ;;  %3396 = vmatprep.subr.bf16.mxu1 %v5352_v15 }
 0x1b6   :  { %3353 = vmatmul.mubr.bf16.vlgmr.msra.gmra.mrb[32].mxu0 %v1127_v8  ;;  %3373 = vmatmul.mubr.bf16.vlgmr.msra.gmra.mrb[32].mxu1 %v1127_v8 }
 0x1b7   :  { %3377 = vmatpush3.bf16.msra.mxu0 %v4388_v34  ;;  %3397 = vmatpush3.bf16.msra.mxu1 %v4390_v35  ;;  %v1180_v34 = vrot.slane %v4597_v49, 4  ;;  %v1131_v35 = vunpack.c.l.bf16 %v4597_v49 }
 0x1b8   :  { %3378 = vmatprep.subr.bf16.mxu0 %v5352_v15  ;;  %3398 = vmatprep.subr.bf16.mxu1 %v5352_v15 }
 0x1b9   :  { %3392 = vmatprep.mubr.msk.bf16.mxu0 %vm4317_vm0, %v5352_v15  ;;  %3412 = vmatprep.mubr.msk.bf16.mxu1 %vm4317_vm0, %v5352_v15 }
 0x1bb   :  { %3379 = vmatpush3.bf16.msra.mxu0 %v4394_v37  ;;  %3399 = vmatpush3.bf16.msra.mxu1 %v4398_v38  ;;  %v1182_v37 = vunpack.c.l.bf16 %v1180_v34 }
 0x1bc   :  { %3380 = vmatprep.subr.bf16.mxu0 %v5352_v15  ;;  %3400 = vmatprep.subr.bf16.mxu1 %v5352_v15 }
 0x1bf   :  { %3381 = vmatpush3.bf16.msra.mxu0 %v4404_v40  ;;  %3401 = vmatpush3.bf16.msra.mxu1 %v4408_v41 }
 0x1c0   :  { %3382 = vmatprep.subr.bf16.mxu0 %v5352_v15  ;;  %3402 = vmatprep.subr.bf16.mxu1 %v5352_v15 }
 0x1c3   :  { %3383 = vmatpush3.bf16.msra.mxu0 %v4412_v42  ;;  %3403 = vmatpush3.bf16.msra.mxu1 %v4416_v43 }
 0x1c4   :  { %3384 = vmatprep.subr.bf16.mxu0 %v5352_v15  ;;  %3404 = vmatprep.subr.bf16.mxu1 %v5352_v15 }
 0x1c7   :  { %3385 = vmatpush3.bf16.msra.mxu0 %v4422_v45  ;;  %3405 = vmatpush3.bf16.msra.mxu1 %v4426_v46 }
 0x1c8   :  { %3386 = vmatprep.subr.bf16.mxu0 %v5352_v15  ;;  %3406 = vmatprep.subr.bf16.mxu1 %v5352_v15 }
 0x1cb   :  { %3387 = vmatpush3.bf16.msra.mxu0 %v4430_v47  ;;  %3407 = vmatpush3.bf16.msra.mxu1 %v4434_v48 }
 0x1cc   :  { %3388 = vmatprep.subr.bf16.mxu0 %v5352_v15  ;;  %3408 = vmatprep.subr.bf16.mxu1 %v5352_v15 }
 0x1cf   :  { %3389 = vmatpush3.bf16.msra.mxu0 %v4442_v50  ;;  %3409 = vmatpush3.bf16.msra.mxu1 %v4446_v51 }
 0x1d0   :  { %3390 = vmatprep.subr.bf16.mxu0 %v5352_v15  ;;  %3410 = vmatprep.subr.bf16.mxu1 %v5352_v15 }
 0x1d3   :  { %3391 = vmatpush3.bf16.msra.mxu0 %v4452_v52  ;;  %3411 = vmatpush3.bf16.msra.mxu1 %v4454_v53 }
 0x1d4   :  { %3416 = vmatprep.subr.bf16.mxu0 %v5352_v15  ;;  %3436 = vmatprep.subr.bf16.mxu1 %v5352_v15 }
 0x269   :  { %v1166_v38 = vpop.f32.mrb[28].mxu0  ;;  %v1217_v40 = vpop.f32.mrb[28].mxu1 }
 0x26a   :  { %v1172_v41 = vadd.f32 %v1166_v38, %v1131_v35  ;;  %v1223_v28 = vadd.f32 %v1217_v40, %v1182_v37  ;;  %v3314_v16 = vpop.f32.mrb[29].mxu0  ;;  %v3334_v23 = vpop.f32.mrb[29].mxu1 }
 0x26b   :  { %v1169_v17 = vpop.f32.mrb[30].mxu0  ;;  %v1220_v13 = vpop.f32.mrb[30].mxu1 }
 0x26c   :  { %v3315_v36 = vpop.f32.mrb[31].mxu0  ;;  %v3335_v22 = vpop.f32.mrb[31].mxu1  ;;  %v2851_v44 = vmul.f32 -1.442695, %v1223_v28  ;;  %v2850_v0 = vmul.f32 -1.442695, %v1172_v41 }
 0x26e   :  { %4048 = vpow2.f32 %v2851_v44 }
 0x26f   :  { %4050 = vpow2.f32 %v2850_v0 }
 0x278   :  { %v4049_v19 = vpop.eup %4048 }
 0x279   :  { %v4051_v21 = vpop.eup %4050  ;;  %v1227_v49 = vadd.f32 1.0, %v4049_v19 }
 0x27a   :  { %v1176_v33 = vadd.f32 1.0, %v4051_v21 }
 0x27b   :  { %4052 = vrcp.f32 %v1227_v49  ;;  %v4792_v49 = vld [vmem:[#allocation8 + $0x20] ss:$16 sps:$4 sm:$0xff]  }
 0x27c   :  { %4054 = vrcp.f32 %v1176_v33  ;;  %v4795_v33 = vld [vmem:[#allocation8 + $0x24] ss:$16 sps:$4 sm:$0xff]  }
 0x285   :  { %v4053_v28 = vpop.eup %4052 }
 0x286   :  { %v4055_v16 = vpop.eup %4054  ;;  %v1324_v54 = vmul.f32 %v4053_v28, %v4661_v39  ;;  %v4780_v39 = vld [vmem:[#allocation8] ss:$16 sps:$4 sm:$0xff]  }
 0x289   :  { %v1265_v32 = vpop.f32.mrb[32].mxu0  ;;  %v1311_v12 = vpop.f32.mrb[32].mxu1 }
 0x28a   :  { %v1271_v20 = vadd.f32 %v1265_v32, %v1230_v10  ;;  %v1317_v14 = vadd.f32 %v1311_v12, %v1276_v11  ;;  %v3354_v8 = vpop.f32.mrb[33].mxu0  ;;  %v3374_v34 = vpop.f32.mrb[33].mxu1  ;;  %v4800_v10 = vld [vmem:[#allocation8 + $0x40] ss:$16 sps:$4 sm:$0xff]   ;;  %v4803_v11 = vld [vmem:[#allocation8 + $0x44] ss:$16 sps:$4 sm:$0xff]  }
 0x28b   :  { %v1268_v35 = vpop.f32.mrb[34].mxu0  ;;  %v1314_v37 = vpop.f32.mrb[34].mxu1 }
 0x28c   :  { %4056 = vtanh.f32 %v1271_v20  ;;  %v2852_v38 = vmul.f32 -1.442695, %v1317_v14  ;;  %v3355_v40 = vpop.f32.mrb[35].mxu0  ;;  %v3375_v41 = vpop.f32.mrb[35].mxu1  ;;  %v1476_v37 = vrot.slane %v4609_v26, 4 }
 0x28d   :  { %v1432_v40 = vunpack.c.l.bf16 %v4609_v26 }
 0x28e   :  { %4058 = vpow2.f32 %v2852_v38  ;;  %v1478_v41 = vunpack.c.l.bf16 %v1476_v37 }
 0x296   :  { %v4057_v23 = vpop.eup %4056 }
 0x297   :  { %v1325_v17 = vmul.f32 %v4057_v23, %v4055_v16 }
 0x298   :  { %v4059_v13 = vpop.eup %4058 }
 0x299   :  { %v4741_v36 = vadd.f32 %v1325_v17, %v1324_v54  ;;  %v1321_v22 = vadd.f32 1.0, %v4059_v13 }
 0x29b   :  { %4060 = vtanh.f32 %v4741_v36 }
 0x29c   :  { %4062 = vrcp.f32 %v1321_v22 }
 0x2a5   :  { %v4061_v44 = vpop.eup %4060 }
 0x2a6   :  { %v4063_v0 = vpop.eup %4062 }
 0x2a7   :  { %v1328_v19 = vmul.f32 %v4063_v0, %v4061_v44 }
 0x2a9   :  { %v1329_v21 = vpack.c.bf16 %v1328_v19, %v1328_v19 }
 0x2ab   :  { %3393 = vmatmul.mubr.bf16.vlgmr.msra.gmra.mrb[36].mxu0 %v1329_v21  ;;  %3413 = vmatmul.mubr.bf16.vlgmr.msra.gmra.mrb[36].mxu1 %v1329_v21 }
 0x2ac   :  { %3417 = vmatpush3.bf16.msra.mxu0 %v4466_v55  ;;  %3437 = vmatpush3.bf16.msra.mxu1 %v4468_v56 }
 0x2ad   :  { %3418 = vmatprep.subr.bf16.mxu0 %v5352_v15  ;;  %3438 = vmatprep.subr.bf16.mxu1 %v5352_v15 }
 0x2ae   :  { %3432 = vmatprep.mubr.msk.bf16.mxu0 %vm4317_vm0, %v5352_v15  ;;  %3452 = vmatprep.mubr.msk.bf16.mxu1 %vm4317_vm0, %v5352_v15 }
 0x2b0   :  { %3419 = vmatpush3.bf16.msra.mxu0 %v4474_v57  ;;  %3439 = vmatpush3.bf16.msra.mxu1 %v4476_v58 }
 0x2b1   :  { %3420 = vmatprep.subr.bf16.mxu0 %v5352_v15  ;;  %3440 = vmatprep.subr.bf16.mxu1 %v5352_v15 }
 0x2b4   :  { %3421 = vmatpush3.bf16.msra.mxu0 %v4486_v59  ;;  %3441 = vmatpush3.bf16.msra.mxu1 %v4488_v60 }
 0x2b5   :  { %3422 = vmatprep.subr.bf16.mxu0 %v5352_v15  ;;  %3442 = vmatprep.subr.bf16.mxu1 %v5352_v15 }
 0x2b8   :  { %3423 = vmatpush3.bf16.msra.mxu0 %v4494_v61  ;;  %3443 = vmatpush3.bf16.msra.mxu1 %v4496_v62 }
 0x2b9   :  { %3424 = vmatprep.subr.bf16.mxu0 %v5352_v15  ;;  %3444 = vmatprep.subr.bf16.mxu1 %v5352_v15 }
 0x2bc   :  { %3425 = vmatpush3.bf16.msra.mxu0 %v4502_v63  ;;  %3445 = vmatpush3.bf16.msra.mxu1 %v4504_v1 }
 0x2bd   :  { %3426 = vmatprep.subr.bf16.mxu0 %v5352_v15  ;;  %3446 = vmatprep.subr.bf16.mxu1 %v5352_v15 }
 0x2c0   :  { %3427 = vmatpush3.bf16.msra.mxu0 %v4510_v2  ;;  %3447 = vmatpush3.bf16.msra.mxu1 %v4512_v3 }
 0x2c1   :  { %3428 = vmatprep.subr.bf16.mxu0 %v5352_v15  ;;  %3448 = vmatprep.subr.bf16.mxu1 %v5352_v15 }
 0x2c4   :  { %3429 = vmatpush3.bf16.msra.mxu0 %v4518_v4  ;;  %3449 = vmatpush3.bf16.msra.mxu1 %v4520_v5 }
 0x2c5   :  { %3430 = vmatprep.subr.bf16.mxu0 %v5352_v15  ;;  %3450 = vmatprep.subr.bf16.mxu1 %v5352_v15 }
 0x2c8   :  { %3431 = vmatpush3.bf16.msra.mxu0 %v4526_v6  ;;  %3451 = vmatpush3.bf16.msra.mxu1 %v4528_v7 }
 0x2c9   :  { %3456 = vmatprep.subr.bf16.mxu0 %v5352_v15  ;;  %3476 = vmatprep.subr.bf16.mxu1 %v5352_v15 }
 0x2cb   :  { %3433 = vmatmul.mubr.bf16.vlgmr.msra.gmra.mrb[40].mxu0 %v1329_v21  ;;  %3453 = vmatmul.mubr.bf16.vlgmr.msra.gmra.mrb[40].mxu1 %v1329_v21 }
 0x2cc   :  { %3457 = vmatpush3.bf16.msra.mxu0 %v4780_v39  ;;  %3477 = vmatpush3.bf16.msra.mxu1 %v4783_v9 }
 0x2cd   :  { %3458 = vmatprep.subr.bf16.mxu0 %v5352_v15  ;;  %3478 = vmatprep.subr.bf16.mxu1 %v5352_v15 }
 0x2ce   :  { %3472 = vmatprep.mubr.msk.bf16.mxu0 %vm4317_vm0, %v5352_v15  ;;  %3492 = vmatprep.mubr.msk.bf16.mxu1 %vm4317_vm0, %v5352_v15 }
 0x2d0   :  { %3459 = vmatpush3.bf16.msra.mxu0 %v4792_v49  ;;  %3479 = vmatpush3.bf16.msra.mxu1 %v4795_v33 }
 0x2d1   :  { %3460 = vmatprep.subr.bf16.mxu0 %v5352_v15  ;;  %3480 = vmatprep.subr.bf16.mxu1 %v5352_v15 }
 0x2d4   :  { %3461 = vmatpush3.bf16.msra.mxu0 %v4800_v10  ;;  %3481 = vmatpush3.bf16.msra.mxu1 %v4803_v11 }
 0x2d5   :  { %3462 = vmatprep.subr.bf16.mxu0 %v5352_v15  ;;  %3482 = vmatprep.subr.bf16.mxu1 %v5352_v15 }
 0x2d8   :  { %3463 = vmatpush3.bf16.msra.mxu0 %v4412_v42  ;;  %3483 = vmatpush3.bf16.msra.mxu1 %v4416_v43  ;;  %v1382_v42 = vrot.slane %v4607_v25, 4  ;;  %v1333_v43 = vunpack.c.l.bf16 %v4607_v25 }
 0x2d9   :  { %3464 = vmatprep.subr.bf16.mxu0 %v5352_v15  ;;  %3484 = vmatprep.subr.bf16.mxu1 %v5352_v15 }
 0x2dc   :  { %3465 = vmatpush3.bf16.msra.mxu0 %v4422_v45  ;;  %3485 = vmatpush3.bf16.msra.mxu1 %v4426_v46  ;;  %v1384_v45 = vunpack.c.l.bf16 %v1382_v42 }
 0x2dd   :  { %3466 = vmatprep.subr.bf16.mxu0 %v5352_v15  ;;  %3486 = vmatprep.subr.bf16.mxu1 %v5352_v15 }
 0x2e0   :  { %3467 = vmatpush3.bf16.msra.mxu0 %v4430_v47  ;;  %3487 = vmatpush3.bf16.msra.mxu1 %v4434_v48 }
 0x2e1   :  { %3468 = vmatprep.subr.bf16.mxu0 %v5352_v15  ;;  %3488 = vmatprep.subr.bf16.mxu1 %v5352_v15 }
 0x2e4   :  { %3469 = vmatpush3.bf16.msra.mxu0 %v4442_v50  ;;  %3489 = vmatpush3.bf16.msra.mxu1 %v4446_v51 }
 0x2e5   :  { %3470 = vmatprep.subr.bf16.mxu0 %v5352_v15  ;;  %3490 = vmatprep.subr.bf16.mxu1 %v5352_v15 }
 0x2e8   :  { %3471 = vmatpush3.bf16.msra.mxu0 %v4452_v52  ;;  %3491 = vmatpush3.bf16.msra.mxu1 %v4454_v53 }
 0x2e9   :  { %3496 = vmatprep.subr.bf16.mxu0 %v5352_v15  ;;  %3516 = vmatprep.subr.bf16.mxu1 %v5352_v15 }
 0x37e   :  { %v1368_v46 = vpop.f32.mrb[36].mxu0  ;;  %v1419_v47 = vpop.f32.mrb[36].mxu1 }
 0x37f   :  { %v1374_v48 = vadd.f32 %v1368_v46, %v1333_v43  ;;  %v1425_v50 = vadd.f32 %v1419_v47, %v1384_v45  ;;  %v3394_v51 = vpop.f32.mrb[37].mxu0  ;;  %v3414_v32 = vpop.f32.mrb[37].mxu1 }
 0x380   :  { %v1371_v12 = vpop.f32.mrb[38].mxu0  ;;  %v1422_v20 = vpop.f32.mrb[38].mxu1 }
 0x381   :  { %v3395_v52 = vpop.f32.mrb[39].mxu0  ;;  %v3415_v14 = vpop.f32.mrb[39].mxu1  ;;  %v2854_v53 = vmul.f32 -1.442695, %v1425_v50  ;;  %v2853_v8 = vmul.f32 -1.442695, %v1374_v48 }
 0x383   :  { %4064 = vpow2.f32 %v2854_v53 }
 0x384   :  { %4066 = vpow2.f32 %v2853_v8 }
 0x38d   :  { %v4065_v34 = vpop.eup %4064 }
 0x38e   :  { %v4067_v35 = vpop.eup %4066  ;;  %v1429_v25 = vadd.f32 1.0, %v4065_v34 }
 0x38f   :  { %v1378_v38 = vadd.f32 1.0, %v4067_v35 }
 0x390   :  { %4068 = vrcp.f32 %v1429_v25 }
 0x391   :  { %4070 = vrcp.f32 %v1378_v38 }
 0x39a   :  { %v4069_v42 = vpop.eup %4068 }
 0x39b   :  { %v4071_v43 = vpop.eup %4070  ;;  %v1526_v26 = vmul.f32 %v4069_v42, %v4741_v36 }
 0x39e   :  { %v1467_v28 = vpop.f32.mrb[40].mxu0  ;;  %v1513_v16 = vpop.f32.mrb[40].mxu1 }
 0x39f   :  { %v1473_v23 = vadd.f32 %v1467_v28, %v1432_v40  ;;  %v1519_v54 = vadd.f32 %v1513_v16, %v1478_v41  ;;  %v3434_v17 = vpop.f32.mrb[41].mxu0  ;;  %v3454_v13 = vpop.f32.mrb[41].mxu1  ;;  %v1678_v41 = vrot.slane %v4615_v30, 4  ;;  %v1634_v16 = vunpack.c.l.bf16 %v4615_v30 }
 0x3a0   :  { %v1470_v22 = vpop.f32.mrb[42].mxu0  ;;  %v1516_v44 = vpop.f32.mrb[42].mxu1 }
 0x3a1   :  { %4072 = vtanh.f32 %v1473_v23  ;;  %v2855_v0 = vmul.f32 -1.442695, %v1519_v54  ;;  %v3435_v19 = vpop.f32.mrb[43].mxu0  ;;  %v3455_v21 = vpop.f32.mrb[43].mxu1  ;;  %v1680_v23 = vunpack.c.l.bf16 %v1678_v41  ;;  %v4999_v41 = vld [vmem:[#allocation8 + $0xec] ss:$16 sps:$4 sm:$0xff]  }
 0x3a3   :  { %4074 = vpow2.f32 %v2855_v0 }
 0x3ab   :  { %v4073_v45 = vpop.eup %4072 }
 0x3ac   :  { %v1527_v46 = vmul.f32 %v4073_v45, %v4071_v43 }
 0x3ad   :  { %v4075_v47 = vpop.eup %4074 }
 0x3ae   :  { %v4833_v48 = vadd.f32 %v1527_v46, %v1526_v26  ;;  %v1523_v50 = vadd.f32 1.0, %v4075_v47 }
 0x3b0   :  { %4076 = vtanh.f32 %v4833_v48 }
 0x3b1   :  { %4078 = vrcp.f32 %v1523_v50 }
 0x3ba   :  { %v4077_v51 = vpop.eup %4076 }
 0x3bb   :  { %v4079_v32 = vpop.eup %4078 }
 0x3bc   :  { %v1530_v12 = vmul.f32 %v4079_v32, %v4077_v51 }
 0x3be   :  { %v1531_v20 = vpack.c.bf16 %v1530_v12, %v1530_v12 }
 0x3c0   :  { %3473 = vmatmul.mubr.bf16.vlgmr.msra.gmra.mrb[44].mxu0 %v1531_v20  ;;  %3493 = vmatmul.mubr.bf16.vlgmr.msra.gmra.mrb[44].mxu1 %v1531_v20 }
 0x3c1   :  { %3497 = vmatpush3.bf16.msra.mxu0 %v4466_v55  ;;  %3517 = vmatpush3.bf16.msra.mxu1 %v4468_v56  ;;  %v4888_v55 = vld [vmem:[#allocation8 + $0x60] ss:$16 sps:$4 sm:$0xff]   ;;  %v4891_v56 = vld [vmem:[#allocation8 + $0x64] ss:$16 sps:$4 sm:$0xff]  }
 0x3c2   :  { %3498 = vmatprep.subr.bf16.mxu0 %v5352_v15  ;;  %3518 = vmatprep.subr.bf16.mxu1 %v5352_v15 }
 0x3c3   :  { %3512 = vmatprep.mubr.msk.bf16.mxu0 %vm4317_vm0, %v5352_v15  ;;  %3532 = vmatprep.mubr.msk.bf16.mxu1 %vm4317_vm0, %v5352_v15 }
 0x3c5   :  { %3499 = vmatpush3.bf16.msra.mxu0 %v4474_v57  ;;  %3519 = vmatpush3.bf16.msra.mxu1 %v4476_v58  ;;  %v4896_v57 = vld [vmem:[#allocation8 + $0x80] ss:$16 sps:$4 sm:$0xff]   ;;  %v4899_v58 = vld [vmem:[#allocation8 + $0x84] ss:$16 sps:$4 sm:$0xff]  }
 0x3c6   :  { %3500 = vmatprep.subr.bf16.mxu0 %v5352_v15  ;;  %3520 = vmatprep.subr.bf16.mxu1 %v5352_v15 }
 0x3c9   :  { %3501 = vmatpush3.bf16.msra.mxu0 %v4486_v59  ;;  %3521 = vmatpush3.bf16.msra.mxu1 %v4488_v60  ;;  %v4904_v59 = vld [vmem:[#allocation8 + $0xa0] ss:$16 sps:$4 sm:$0xff]   ;;  %v4907_v60 = vld [vmem:[#allocation8 + $0xa4] ss:$16 sps:$4 sm:$0xff]  }
 0x3ca   :  { %3502 = vmatprep.subr.bf16.mxu0 %v5352_v15  ;;  %3522 = vmatprep.subr.bf16.mxu1 %v5352_v15 }
 0x3cd   :  { %3503 = vmatpush3.bf16.msra.mxu0 %v4494_v61  ;;  %3523 = vmatpush3.bf16.msra.mxu1 %v4496_v62  ;;  %v4912_v61 = vld [vmem:[#allocation8 + $0xc0] ss:$16 sps:$4 sm:$0xff]   ;;  %v4915_v62 = vld [vmem:[#allocation8 + $0xc4] ss:$16 sps:$4 sm:$0xff]  }
 0x3ce   :  { %3504 = vmatprep.subr.bf16.mxu0 %v5352_v15  ;;  %3524 = vmatprep.subr.bf16.mxu1 %v5352_v15 }
 0x3d1   :  { %3505 = vmatpush3.bf16.msra.mxu0 %v4502_v63  ;;  %3525 = vmatpush3.bf16.msra.mxu1 %v4504_v1  ;;  %v4920_v63 = vld [vmem:[#allocation8 + $0xe0] ss:$16 sps:$4 sm:$0xff]   ;;  %v4923_v1 = vld [vmem:[#allocation8 + $0xe4] ss:$16 sps:$4 sm:$0xff]  }
 0x3d2   :  { %3506 = vmatprep.subr.bf16.mxu0 %v5352_v15  ;;  %3526 = vmatprep.subr.bf16.mxu1 %v5352_v15 }
 0x3d5   :  { %3507 = vmatpush3.bf16.msra.mxu0 %v4510_v2  ;;  %3527 = vmatpush3.bf16.msra.mxu1 %v4512_v3  ;;  %v1584_v2 = vrot.slane %v4613_v29, 4  ;;  %v1535_v3 = vunpack.c.l.bf16 %v4613_v29 }
 0x3d6   :  { %3508 = vmatprep.subr.bf16.mxu0 %v5352_v15  ;;  %3528 = vmatprep.subr.bf16.mxu1 %v5352_v15 }
 0x3d9   :  { %3509 = vmatpush3.bf16.msra.mxu0 %v4518_v4  ;;  %3529 = vmatpush3.bf16.msra.mxu1 %v4520_v5  ;;  %v1586_v4 = vunpack.c.l.bf16 %v1584_v2 }
 0x3da   :  { %3510 = vmatprep.subr.bf16.mxu0 %v5352_v15  ;;  %3530 = vmatprep.subr.bf16.mxu1 %v5352_v15 }
 0x3dd   :  { %3511 = vmatpush3.bf16.msra.mxu0 %v4526_v6  ;;  %3531 = vmatpush3.bf16.msra.mxu1 %v4528_v7 }
 0x3de   :  { %3536 = vmatprep.subr.bf16.mxu0 %v5352_v15  ;;  %3556 = vmatprep.subr.bf16.mxu1 %v5352_v15 }
 0x3e0   :  { %3513 = vmatmul.mubr.bf16.vlgmr.msra.gmra.mrb[48].mxu0 %v1531_v20  ;;  %3533 = vmatmul.mubr.bf16.vlgmr.msra.gmra.mrb[48].mxu1 %v1531_v20 }
 0x3e1   :  { %3537 = vmatpush3.bf16.msra.mxu0 %v4780_v39  ;;  %3557 = vmatpush3.bf16.msra.mxu1 %v4783_v9 }
 0x3e2   :  { %3538 = vmatprep.subr.bf16.mxu0 %v5352_v15  ;;  %3558 = vmatprep.subr.bf16.mxu1 %v5352_v15 }
 0x3e3   :  { %3552 = vmatprep.mubr.msk.bf16.mxu0 %vm4317_vm0, %v5352_v15  ;;  %3572 = vmatprep.mubr.msk.bf16.mxu1 %vm4317_vm0, %v5352_v15 }
 0x3e5   :  { %3539 = vmatpush3.bf16.msra.mxu0 %v4792_v49  ;;  %3559 = vmatpush3.bf16.msra.mxu1 %v4795_v33 }
 0x3e6   :  { %3540 = vmatprep.subr.bf16.mxu0 %v5352_v15  ;;  %3560 = vmatprep.subr.bf16.mxu1 %v5352_v15 }
 0x3e9   :  { %3541 = vmatpush3.bf16.msra.mxu0 %v4800_v10  ;;  %3561 = vmatpush3.bf16.msra.mxu1 %v4803_v11 }
 0x3ea   :  { %3542 = vmatprep.subr.bf16.mxu0 %v5352_v15  ;;  %3562 = vmatprep.subr.bf16.mxu1 %v5352_v15 }
 0x3ed   :  { %3543 = vmatpush3.bf16.msra.mxu0 %v4888_v55  ;;  %3563 = vmatpush3.bf16.msra.mxu1 %v4891_v56 }
 0x3ee   :  { %3544 = vmatprep.subr.bf16.mxu0 %v5352_v15  ;;  %3564 = vmatprep.subr.bf16.mxu1 %v5352_v15 }
 0x3f1   :  { %3545 = vmatpush3.bf16.msra.mxu0 %v4896_v57  ;;  %3565 = vmatpush3.bf16.msra.mxu1 %v4899_v58 }
 0x3f2   :  { %3546 = vmatprep.subr.bf16.mxu0 %v5352_v15  ;;  %3566 = vmatprep.subr.bf16.mxu1 %v5352_v15 }
 0x3f5   :  { %3547 = vmatpush3.bf16.msra.mxu0 %v4904_v59  ;;  %3567 = vmatpush3.bf16.msra.mxu1 %v4907_v60 }
 0x3f6   :  { %3548 = vmatprep.subr.bf16.mxu0 %v5352_v15  ;;  %3568 = vmatprep.subr.bf16.mxu1 %v5352_v15 }
 0x3f9   :  { %3549 = vmatpush3.bf16.msra.mxu0 %v4912_v61  ;;  %3569 = vmatpush3.bf16.msra.mxu1 %v4915_v62 }
 0x3fa   :  { %3550 = vmatprep.subr.bf16.mxu0 %v5352_v15  ;;  %3570 = vmatprep.subr.bf16.mxu1 %v5352_v15 }
 0x3fd   :  { %3551 = vmatpush3.bf16.msra.mxu0 %v4920_v63  ;;  %3571 = vmatpush3.bf16.msra.mxu1 %v4923_v1 }
 0x3fe   :  { %3576 = vmatprep.subr.bf16.mxu0 %v5352_v15  ;;  %3596 = vmatprep.subr.bf16.mxu1 %v5352_v15 }
 0x493   :  { %v1570_v5 = vpop.f32.mrb[44].mxu0  ;;  %v1621_v6 = vpop.f32.mrb[44].mxu1 }
 0x494   :  { %v1576_v7 = vadd.f32 %v1570_v5, %v1535_v3  ;;  %v1627_v36 = vadd.f32 %v1621_v6, %v1586_v4  ;;  %v3474_v52 = vpop.f32.mrb[45].mxu0  ;;  %v3494_v14 = vpop.f32.mrb[45].mxu1  ;;  %v4936_v5 = vld [vmem:[#allocation8 + $0x8] ss:$16 sps:$4 sm:$0xff]   ;;  %v4939_v6 = vld [vmem:[#allocation8 + $0xc] ss:$16 sps:$4 sm:$0xff]  }
 0x495   :  { %v1573_v53 = vpop.f32.mrb[46].mxu0  ;;  %v1624_v8 = vpop.f32.mrb[46].mxu1  ;;  %v4959_v52 = vld [vmem:[#allocation8 + $0x4c] ss:$16 sps:$4 sm:$0xff]   ;;  %v4964_v14 = vld [vmem:[#allocation8 + $0x68] ss:$16 sps:$4 sm:$0xff]  }
 0x496   :  { %v3475_v34 = vpop.f32.mrb[47].mxu0  ;;  %v3495_v35 = vpop.f32.mrb[47].mxu1  ;;  %v2857_v37 = vmul.f32 -1.442695, %v1627_v36  ;;  %v2856_v25 = vmul.f32 -1.442695, %v1576_v7 }
 0x497   :  { %v4951_v7 = vld [vmem:[#allocation8 + $0x2c] ss:$16 sps:$4 sm:$0xff]   ;;  %v4956_v36 = vld [vmem:[#allocation8 + $0x48] ss:$16 sps:$4 sm:$0xff]  }
 0x498   :  { %4080 = vpow2.f32 %v2857_v37  ;;  %v4967_v53 = vld [vmem:[#allocation8 + $0x6c] ss:$16 sps:$4 sm:$0xff]   ;;  %v4972_v8 = vld [vmem:[#allocation8 + $0x88] ss:$16 sps:$4 sm:$0xff]  }
 0x499   :  { %4082 = vpow2.f32 %v2856_v25  ;;  %v4975_v34 = vld [vmem:[#allocation8 + $0x8c] ss:$16 sps:$4 sm:$0xff]   ;;  %v4980_v35 = vld [vmem:[#allocation8 + $0xa8] ss:$16 sps:$4 sm:$0xff]  }
 0x49a   :  { %v4983_v37 = vld [vmem:[#allocation8 + $0xac] ss:$16 sps:$4 sm:$0xff]   ;;  %v4988_v25 = vld [vmem:[#allocation8 + $0xc8] ss:$16 sps:$4 sm:$0xff]  }
 0x4a2   :  { %v4081_v38 = vpop.eup %4080 }
 0x4a3   :  { %v4083_v40 = vpop.eup %4082  ;;  %v1631_v29 = vadd.f32 1.0, %v4081_v38  ;;  %v4991_v38 = vld [vmem:[#allocation8 + $0xcc] ss:$16 sps:$4 sm:$0xff]  }
 0x4a4   :  { %v1580_v28 = vadd.f32 1.0, %v4083_v40  ;;  %v4996_v40 = vld [vmem:[#allocation8 + $0xe8] ss:$16 sps:$4 sm:$0xff]  }
 0x4a5   :  { %4084 = vrcp.f32 %v1631_v29  ;;  %v5353_v29 = vld [vmem:[#allocation13_spill] sm:$0xff] }
 0x4a6   :  { %4086 = vrcp.f32 %v1580_v28  ;;  %v1786_v28 = vrot.slane %v5353_v29, 4 }
 0x4af   :  { %v4085_v26 = vpop.eup %4084 }
 0x4b0   :  { %v4087_v46 = vpop.eup %4086  ;;  %v1728_v30 = vmul.f32 %v4085_v26, %v4833_v48  ;;  %v4948_v48 = vld [vmem:[#allocation8 + $0x28] ss:$16 sps:$4 sm:$0xff]  }
 0x4b3   :  { %v1669_v54 = vpop.f32.mrb[48].mxu0  ;;  %v1715_v17 = vpop.f32.mrb[48].mxu1 }
 0x4b4   :  { %v1675_v13 = vadd.f32 %v1669_v54, %v1634_v16  ;;  %v1721_v22 = vadd.f32 %v1715_v17, %v1680_v23  ;;  %v3514_v44 = vpop.f32.mrb[49].mxu0  ;;  %v3534_v0 = vpop.f32.mrb[49].mxu1  ;;  %v1737_v16 = vunpack.c.l.bf16 %v5353_v29  ;;  %v1788_v23 = vunpack.c.l.bf16 %v1786_v28 }
 0x4b5   :  { %v1672_v19 = vpop.f32.mrb[50].mxu0  ;;  %v1718_v21 = vpop.f32.mrb[50].mxu1 }
 0x4b6   :  { %4088 = vtanh.f32 %v1675_v13  ;;  %v2858_v42 = vmul.f32 -1.442695, %v1721_v22  ;;  %v3515_v43 = vpop.f32.mrb[51].mxu0  ;;  %v3535_v45 = vpop.f32.mrb[51].mxu1 }
 0x4b8   :  { %4090 = vpow2.f32 %v2858_v42 }
 0x4c0   :  { %v4089_v47 = vpop.eup %4088 }
 0x4c1   :  { %v1729_v50 = vmul.f32 %v4089_v47, %v4087_v46 }
 0x4c2   :  { %v4091_v51 = vpop.eup %4090 }
 0x4c3   :  { %v4933_v32 = vadd.f32 %v1729_v50, %v1728_v30  ;;  %v1725_v12 = vadd.f32 1.0, %v4091_v51  ;;  %v5354_v30 = vld [vmem:[#allocation14_spill] sm:$0xff] }
 0x4c4   :  { %v1880_v50 = vrot.slane %v5354_v30, 4 }
 0x4c5   :  { %4092 = vtanh.f32 %v4933_v32 }
 0x4c6   :  { %4094 = vrcp.f32 %v1725_v12 }
 0x4cf   :  { %v4093_v20 = vpop.eup %4092 }
 0x4d0   :  { %v4095_v2 = vpop.eup %4094 }
 0x4d1   :  { %v1732_v3 = vmul.f32 %v4095_v2, %v4093_v20  ;;  %v1836_v20 = vunpack.c.l.bf16 %v5354_v30  ;;  %v1882_v2 = vunpack.c.l.bf16 %v1880_v50 }
 0x4d3   :  { %v1733_v4 = vpack.c.bf16 %v1732_v3, %v1732_v3 }
 0x4d5   :  { %3553 = vmatmul.mubr.bf16.vlgmr.msra.gmra.mrb[52].mxu0 %v1733_v4  ;;  %3573 = vmatmul.mubr.bf16.vlgmr.msra.gmra.mrb[52].mxu1 %v1733_v4 }
 0x4d6   :  { %3577 = vmatpush3.bf16.msra.mxu0 %v4936_v5  ;;  %3597 = vmatpush3.bf16.msra.mxu1 %v4939_v6 }
 0x4d7   :  { %3578 = vmatprep.subr.bf16.mxu0 %v5352_v15  ;;  %3598 = vmatprep.subr.bf16.mxu1 %v5352_v15 }
 0x4d8   :  { %3592 = vmatprep.mubr.msk.bf16.mxu0 %vm4317_vm0, %v5352_v15  ;;  %3612 = vmatprep.mubr.msk.bf16.mxu1 %vm4317_vm0, %v5352_v15 }
 0x4da   :  { %3579 = vmatpush3.bf16.msra.mxu0 %v4948_v48  ;;  %3599 = vmatpush3.bf16.msra.mxu1 %v4951_v7 }
 0x4db   :  { %3580 = vmatprep.subr.bf16.mxu0 %v5352_v15  ;;  %3600 = vmatprep.subr.bf16.mxu1 %v5352_v15 }
 0x4de   :  { %3581 = vmatpush3.bf16.msra.mxu0 %v4956_v36  ;;  %3601 = vmatpush3.bf16.msra.mxu1 %v4959_v52 }
 0x4df   :  { %3582 = vmatprep.subr.bf16.mxu0 %v5352_v15  ;;  %3602 = vmatprep.subr.bf16.mxu1 %v5352_v15 }
 0x4e2   :  { %3583 = vmatpush3.bf16.msra.mxu0 %v4964_v14  ;;  %3603 = vmatpush3.bf16.msra.mxu1 %v4967_v53 }
 0x4e3   :  { %3584 = vmatprep.subr.bf16.mxu0 %v5352_v15  ;;  %3604 = vmatprep.subr.bf16.mxu1 %v5352_v15 }
 0x4e6   :  { %3585 = vmatpush3.bf16.msra.mxu0 %v4972_v8  ;;  %3605 = vmatpush3.bf16.msra.mxu1 %v4975_v34 }
 0x4e7   :  { %3586 = vmatprep.subr.bf16.mxu0 %v5352_v15  ;;  %3606 = vmatprep.subr.bf16.mxu1 %v5352_v15 }
 0x4ea   :  { %3587 = vmatpush3.bf16.msra.mxu0 %v4980_v35  ;;  %3607 = vmatpush3.bf16.msra.mxu1 %v4983_v37 }
 0x4eb   :  { %3588 = vmatprep.subr.bf16.mxu0 %v5352_v15  ;;  %3608 = vmatprep.subr.bf16.mxu1 %v5352_v15 }
 0x4ee   :  { %3589 = vmatpush3.bf16.msra.mxu0 %v4988_v25  ;;  %3609 = vmatpush3.bf16.msra.mxu1 %v4991_v38 }
 0x4ef   :  { %3590 = vmatprep.subr.bf16.mxu0 %v5352_v15  ;;  %3610 = vmatprep.subr.bf16.mxu1 %v5352_v15 }
 0x4f2   :  { %3591 = vmatpush3.bf16.msra.mxu0 %v4996_v40  ;;  %3611 = vmatpush3.bf16.msra.mxu1 %v4999_v41 }
 0x4f3   :  { %3616 = vmatprep.subr.bf16.mxu0 %v5352_v15  ;;  %3636 = vmatprep.subr.bf16.mxu1 %v5352_v15 }
 0x4f5   :  { %3593 = vmatmul.mubr.bf16.vlgmr.msra.gmra.mrb[56].mxu0 %v1733_v4  ;;  %3613 = vmatmul.mubr.bf16.vlgmr.msra.gmra.mrb[56].mxu1 %v1733_v4 }
 0x4f6   :  { %3617 = vmatpush3.bf16.msra.mxu0 %v4780_v39  ;;  %3637 = vmatpush3.bf16.msra.mxu1 %v4783_v9 }
 0x4f7   :  { %3618 = vmatprep.subr.bf16.mxu0 %v5352_v15  ;;  %3638 = vmatprep.subr.bf16.mxu1 %v5352_v15 }
 0x4f8   :  { %3632 = vmatprep.mubr.msk.bf16.mxu0 %vm4317_vm0, %v5352_v15  ;;  %3652 = vmatprep.mubr.msk.bf16.mxu1 %vm4317_vm0, %v5352_v15 }
 0x4fa   :  { %3619 = vmatpush3.bf16.msra.mxu0 %v4792_v49  ;;  %3639 = vmatpush3.bf16.msra.mxu1 %v4795_v33 }
 0x4fb   :  { %3620 = vmatprep.subr.bf16.mxu0 %v5352_v15  ;;  %3640 = vmatprep.subr.bf16.mxu1 %v5352_v15 }
 0x4fe   :  { %3621 = vmatpush3.bf16.msra.mxu0 %v4800_v10  ;;  %3641 = vmatpush3.bf16.msra.mxu1 %v4803_v11 }
 0x4ff   :  { %3622 = vmatprep.subr.bf16.mxu0 %v5352_v15  ;;  %3642 = vmatprep.subr.bf16.mxu1 %v5352_v15 }
 0x502   :  { %3623 = vmatpush3.bf16.msra.mxu0 %v4888_v55  ;;  %3643 = vmatpush3.bf16.msra.mxu1 %v4891_v56 }
 0x503   :  { %3624 = vmatprep.subr.bf16.mxu0 %v5352_v15  ;;  %3644 = vmatprep.subr.bf16.mxu1 %v5352_v15 }
 0x506   :  { %3625 = vmatpush3.bf16.msra.mxu0 %v4896_v57  ;;  %3645 = vmatpush3.bf16.msra.mxu1 %v4899_v58 }
 0x507   :  { %3626 = vmatprep.subr.bf16.mxu0 %v5352_v15  ;;  %3646 = vmatprep.subr.bf16.mxu1 %v5352_v15 }
 0x50a   :  { %3627 = vmatpush3.bf16.msra.mxu0 %v4904_v59  ;;  %3647 = vmatpush3.bf16.msra.mxu1 %v4907_v60 }
 0x50b   :  { %3628 = vmatprep.subr.bf16.mxu0 %v5352_v15  ;;  %3648 = vmatprep.subr.bf16.mxu1 %v5352_v15 }
 0x50e   :  { %3629 = vmatpush3.bf16.msra.mxu0 %v4912_v61  ;;  %3649 = vmatpush3.bf16.msra.mxu1 %v4915_v62 }
 0x50f   :  { %3630 = vmatprep.subr.bf16.mxu0 %v5352_v15  ;;  %3650 = vmatprep.subr.bf16.mxu1 %v5352_v15 }
 0x512   :  { %3631 = vmatpush3.bf16.msra.mxu0 %v4920_v63  ;;  %3651 = vmatpush3.bf16.msra.mxu1 %v4923_v1 }
 0x513   :  { %3656 = vmatprep.subr.bf16.mxu0 %v5352_v15  ;;  %3676 = vmatprep.subr.bf16.mxu1 %v5352_v15 }
 0x5a8   :  { %v1772_v54 = vpop.f32.mrb[52].mxu0  ;;  %v1823_v17 = vpop.f32.mrb[52].mxu1 }
 0x5a9   :  { %v1778_v13 = vadd.f32 %v1772_v54, %v1737_v16  ;;  %v1829_v22 = vadd.f32 %v1823_v17, %v1788_v23  ;;  %v3554_v44 = vpop.f32.mrb[53].mxu0  ;;  %v3574_v0 = vpop.f32.mrb[53].mxu1 }
 0x5aa   :  { %v1775_v19 = vpop.f32.mrb[54].mxu0  ;;  %v1826_v21 = vpop.f32.mrb[54].mxu1 }
 0x5ab   :  { %v3555_v42 = vpop.f32.mrb[55].mxu0  ;;  %v3575_v43 = vpop.f32.mrb[55].mxu1  ;;  %v2860_v45 = vmul.f32 -1.442695, %v1829_v22  ;;  %v2859_v26 = vmul.f32 -1.442695, %v1778_v13 }
 0x5ad   :  { %4096 = vpow2.f32 %v2860_v45 }
 0x5ae   :  { %4098 = vpow2.f32 %v2859_v26 }
 0x5b7   :  { %v4097_v46 = vpop.eup %4096 }
 0x5b8   :  { %v4099_v47 = vpop.eup %4098  ;;  %v1833_v51 = vadd.f32 1.0, %v4097_v46 }
 0x5b9   :  { %v1782_v12 = vadd.f32 1.0, %v4099_v47 }
 0x5ba   :  { %4100 = vrcp.f32 %v1833_v51 }
 0x5bb   :  { %4102 = vrcp.f32 %v1782_v12 }
 0x5c4   :  { %v4101_v0 = vpop.eup %4100 }
 0x5c5   :  { %v4103_v19 = vpop.eup %4102  ;;  %v1930_v42 = vmul.f32 %v4101_v0, %v4933_v32  ;;  %v5355_v32 = vld [vmem:[#allocation15_spill] sm:$0xff] }
 0x5c6   :  { %v1988_v12 = vrot.slane %v5355_v32, 4 }
 0x5c8   :  { %v1871_v3 = vpop.f32.mrb[56].mxu0  ;;  %v1917_v4 = vpop.f32.mrb[56].mxu1 }
 0x5c9   :  { %v1877_v29 = vadd.f32 %v1871_v3, %v1836_v20  ;;  %v1923_v28 = vadd.f32 %v1917_v4, %v1882_v2  ;;  %v3594_v16 = vpop.f32.mrb[57].mxu0  ;;  %v3614_v23 = vpop.f32.mrb[57].mxu1  ;;  %v1939_v20 = vunpack.c.l.bf16 %v5355_v32  ;;  %v1990_v2 = vunpack.c.l.bf16 %v1988_v12 }
 0x5ca   :  { %v1874_v54 = vpop.f32.mrb[58].mxu0  ;;  %v1920_v17 = vpop.f32.mrb[58].mxu1 }
 0x5cb   :  { %4104 = vtanh.f32 %v1877_v29  ;;  %v2861_v13 = vmul.f32 -1.442695, %v1923_v28  ;;  %v3595_v22 = vpop.f32.mrb[59].mxu0  ;;  %v3615_v44 = vpop.f32.mrb[59].mxu1 }
 0x5cd   :  { %4106 = vpow2.f32 %v2861_v13 }
 0x5d5   :  { %v4105_v21 = vpop.eup %4104 }
 0x5d6   :  { %v1931_v43 = vmul.f32 %v4105_v21, %v4103_v19 }
 0x5d7   :  { %v4107_v45 = vpop.eup %4106 }
 0x5d8   :  { %v5045_v26 = vadd.f32 %v1931_v43, %v1930_v42  ;;  %v1927_v46 = vadd.f32 1.0, %v4107_v45  ;;  %v5356_v42 = vld [vmem:[#allocation16_spill] sm:$0xff] }
 0x5d9   :  { %v2082_v43 = vrot.slane %v5356_v42, 4 }
 0x5da   :  { %4108 = vtanh.f32 %v5045_v26 }
 0x5db   :  { %4110 = vrcp.f32 %v1927_v46 }
 0x5e4   :  { %v4109_v47 = vpop.eup %4108 }
 0x5e5   :  { %v4111_v30 = vpop.eup %4110 }
 0x5e6   :  { %v1934_v50 = vmul.f32 %v4111_v30, %v4109_v47  ;;  %v2038_v47 = vunpack.c.l.bf16 %v5356_v42  ;;  %v2084_v30 = vunpack.c.l.bf16 %v2082_v43 }
 0x5e8   :  { %v1935_v51 = vpack.c.bf16 %v1934_v50, %v1934_v50 }
 0x5ea   :  { %3633 = vmatmul.mubr.bf16.vlgmr.msra.gmra.mrb[60].mxu0 %v1935_v51  ;;  %3653 = vmatmul.mubr.bf16.vlgmr.msra.gmra.mrb[60].mxu1 %v1935_v51 }
 0x5eb   :  { %3657 = vmatpush3.bf16.msra.mxu0 %v4936_v5  ;;  %3677 = vmatpush3.bf16.msra.mxu1 %v4939_v6 }
 0x5ec   :  { %3658 = vmatprep.subr.bf16.mxu0 %v5352_v15  ;;  %3678 = vmatprep.subr.bf16.mxu1 %v5352_v15 }
 0x5ed   :  { %3672 = vmatprep.mubr.msk.bf16.mxu0 %vm4317_vm0, %v5352_v15  ;;  %3692 = vmatprep.mubr.msk.bf16.mxu1 %vm4317_vm0, %v5352_v15 }
 0x5ef   :  { %3659 = vmatpush3.bf16.msra.mxu0 %v4948_v48  ;;  %3679 = vmatpush3.bf16.msra.mxu1 %v4951_v7 }
 0x5f0   :  { %3660 = vmatprep.subr.bf16.mxu0 %v5352_v15  ;;  %3680 = vmatprep.subr.bf16.mxu1 %v5352_v15 }
 0x5f3   :  { %3661 = vmatpush3.bf16.msra.mxu0 %v4956_v36  ;;  %3681 = vmatpush3.bf16.msra.mxu1 %v4959_v52 }
 0x5f4   :  { %3662 = vmatprep.subr.bf16.mxu0 %v5352_v15  ;;  %3682 = vmatprep.subr.bf16.mxu1 %v5352_v15 }
 0x5f7   :  { %3663 = vmatpush3.bf16.msra.mxu0 %v4964_v14  ;;  %3683 = vmatpush3.bf16.msra.mxu1 %v4967_v53 }
 0x5f8   :  { %3664 = vmatprep.subr.bf16.mxu0 %v5352_v15  ;;  %3684 = vmatprep.subr.bf16.mxu1 %v5352_v15 }
 0x5fb   :  { %3665 = vmatpush3.bf16.msra.mxu0 %v4972_v8  ;;  %3685 = vmatpush3.bf16.msra.mxu1 %v4975_v34 }
 0x5fc   :  { %3666 = vmatprep.subr.bf16.mxu0 %v5352_v15  ;;  %3686 = vmatprep.subr.bf16.mxu1 %v5352_v15 }
 0x5ff   :  { %3667 = vmatpush3.bf16.msra.mxu0 %v4980_v35  ;;  %3687 = vmatpush3.bf16.msra.mxu1 %v4983_v37 }
 0x600   :  { %3668 = vmatprep.subr.bf16.mxu0 %v5352_v15  ;;  %3688 = vmatprep.subr.bf16.mxu1 %v5352_v15 }
 0x603   :  { %3669 = vmatpush3.bf16.msra.mxu0 %v4988_v25  ;;  %3689 = vmatpush3.bf16.msra.mxu1 %v4991_v38 }
 0x604   :  { %3670 = vmatprep.subr.bf16.mxu0 %v5352_v15  ;;  %3690 = vmatprep.subr.bf16.mxu1 %v5352_v15 }
 0x607   :  { %3671 = vmatpush3.bf16.msra.mxu0 %v4996_v40  ;;  %3691 = vmatpush3.bf16.msra.mxu1 %v4999_v41 }
 0x608   :  { %3696 = vmatprep.subr.bf16.mxu0 %v5352_v15  ;;  %3716 = vmatprep.subr.bf16.mxu1 %v5352_v15 }
 0x60a   :  { %3673 = vmatmul.mubr.bf16.vlgmr.msra.gmra.mrb[64].mxu0 %v1935_v51  ;;  %3693 = vmatmul.mubr.bf16.vlgmr.msra.gmra.mrb[64].mxu1 %v1935_v51 }
 0x60b   :  { %3697 = vmatpush3.bf16.msra.mxu0 %v4780_v39  ;;  %3717 = vmatpush3.bf16.msra.mxu1 %v4783_v9 }
 0x60c   :  { %3698 = vmatprep.subr.bf16.mxu0 %v5352_v15  ;;  %3718 = vmatprep.subr.bf16.mxu1 %v5352_v15 }
 0x60d   :  { %3712 = vmatprep.mubr.msk.bf16.mxu0 %vm4317_vm0, %v5352_v15  ;;  %3732 = vmatprep.mubr.msk.bf16.mxu1 %vm4317_vm0, %v5352_v15 }
 0x60f   :  { %3699 = vmatpush3.bf16.msra.mxu0 %v4792_v49  ;;  %3719 = vmatpush3.bf16.msra.mxu1 %v4795_v33 }
 0x610   :  { %3700 = vmatprep.subr.bf16.mxu0 %v5352_v15  ;;  %3720 = vmatprep.subr.bf16.mxu1 %v5352_v15 }
 0x613   :  { %3701 = vmatpush3.bf16.msra.mxu0 %v4800_v10  ;;  %3721 = vmatpush3.bf16.msra.mxu1 %v4803_v11 }
 0x614   :  { %3702 = vmatprep.subr.bf16.mxu0 %v5352_v15  ;;  %3722 = vmatprep.subr.bf16.mxu1 %v5352_v15 }
 0x617   :  { %3703 = vmatpush3.bf16.msra.mxu0 %v4888_v55  ;;  %3723 = vmatpush3.bf16.msra.mxu1 %v4891_v56 }
 0x618   :  { %3704 = vmatprep.subr.bf16.mxu0 %v5352_v15  ;;  %3724 = vmatprep.subr.bf16.mxu1 %v5352_v15 }
 0x61b   :  { %3705 = vmatpush3.bf16.msra.mxu0 %v4896_v57  ;;  %3725 = vmatpush3.bf16.msra.mxu1 %v4899_v58 }
 0x61c   :  { %3706 = vmatprep.subr.bf16.mxu0 %v5352_v15  ;;  %3726 = vmatprep.subr.bf16.mxu1 %v5352_v15 }
 0x61f   :  { %3707 = vmatpush3.bf16.msra.mxu0 %v4904_v59  ;;  %3727 = vmatpush3.bf16.msra.mxu1 %v4907_v60 }
 0x620   :  { %3708 = vmatprep.subr.bf16.mxu0 %v5352_v15  ;;  %3728 = vmatprep.subr.bf16.mxu1 %v5352_v15 }
 0x623   :  { %3709 = vmatpush3.bf16.msra.mxu0 %v4912_v61  ;;  %3729 = vmatpush3.bf16.msra.mxu1 %v4915_v62 }
 0x624   :  { %3710 = vmatprep.subr.bf16.mxu0 %v5352_v15  ;;  %3730 = vmatprep.subr.bf16.mxu1 %v5352_v15 }
 0x627   :  { %3711 = vmatpush3.bf16.msra.mxu0 %v4920_v63  ;;  %3731 = vmatpush3.bf16.msra.mxu1 %v4923_v1 }
 0x628   :  { %3736 = vmatprep.subr.bf16.mxu0 %v5352_v15  ;;  %3756 = vmatprep.subr.bf16.mxu1 %v5352_v15 }
 0x6bd   :  { %v1974_v3 = vpop.f32.mrb[60].mxu0  ;;  %v2025_v4 = vpop.f32.mrb[60].mxu1 }
 0x6be   :  { %v1980_v29 = vadd.f32 %v1974_v3, %v1939_v20  ;;  %v2031_v28 = vadd.f32 %v2025_v4, %v1990_v2  ;;  %v3634_v16 = vpop.f32.mrb[61].mxu0  ;;  %v3654_v23 = vpop.f32.mrb[61].mxu1 }
 0x6bf   :  { %v1977_v54 = vpop.f32.mrb[62].mxu0  ;;  %v2028_v17 = vpop.f32.mrb[62].mxu1 }
 0x6c0   :  { %v3635_v13 = vpop.f32.mrb[63].mxu0  ;;  %v3655_v22 = vpop.f32.mrb[63].mxu1  ;;  %v2863_v44 = vmul.f32 -1.442695, %v2031_v28  ;;  %v2862_v0 = vmul.f32 -1.442695, %v1980_v29 }
 0x6c2   :  { %4112 = vpow2.f32 %v2863_v44 }
 0x6c3   :  { %4114 = vpow2.f32 %v2862_v0 }
 0x6cc   :  { %v4113_v19 = vpop.eup %4112 }
 0x6cd   :  { %v4115_v21 = vpop.eup %4114  ;;  %v2035_v45 = vadd.f32 1.0, %v4113_v19 }
 0x6ce   :  { %v1984_v46 = vadd.f32 1.0, %v4115_v21 }
 0x6cf   :  { %4116 = vrcp.f32 %v2035_v45 }
 0x6d0   :  { %4118 = vrcp.f32 %v1984_v46 }
 0x6d9   :  { %v4117_v23 = vpop.eup %4116 }
 0x6da   :  { %v4119_v54 = vpop.eup %4118  ;;  %v2132_v13 = vmul.f32 %v4117_v23, %v5045_v26 }
 0x6dd   :  { %v2073_v50 = vpop.f32.mrb[64].mxu0  ;;  %v2119_v51 = vpop.f32.mrb[64].mxu1 }
 0x6de   :  { %v2079_v32 = vadd.f32 %v2073_v50, %v2038_v47  ;;  %v2125_v12 = vadd.f32 %v2119_v51, %v2084_v30  ;;  %v3674_v20 = vpop.f32.mrb[65].mxu0  ;;  %v3694_v2 = vpop.f32.mrb[65].mxu1 }
 0x6df   :  { %v2076_v3 = vpop.f32.mrb[66].mxu0  ;;  %v2122_v4 = vpop.f32.mrb[66].mxu1 }
 0x6e0   :  { %4120 = vtanh.f32 %v2079_v32  ;;  %v2864_v29 = vmul.f32 -1.442695, %v2125_v12  ;;  %v3675_v28 = vpop.f32.mrb[67].mxu0  ;;  %v3695_v16 = vpop.f32.mrb[67].mxu1  ;;  %v2284_v4 = vrot.slane %v4641_v27, 4 }
 0x6e1   :  { %v2240_v28 = vunpack.c.l.bf16 %v4641_v27 }
 0x6e2   :  { %4122 = vpow2.f32 %v2864_v29  ;;  %v2286_v16 = vunpack.c.l.bf16 %v2284_v4 }
 0x6ea   :  { %v4121_v17 = vpop.eup %4120 }
 0x6eb   :  { %v2133_v22 = vmul.f32 %v4121_v17, %v4119_v54 }
 0x6ec   :  { %v4123_v44 = vpop.eup %4122 }
 0x6ed   :  { %v5125_v0 = vadd.f32 %v2133_v22, %v2132_v13  ;;  %v2129_v19 = vadd.f32 1.0, %v4123_v44 }
 0x6ef   :  { %4124 = vtanh.f32 %v5125_v0 }
 0x6f0   :  { %4126 = vrcp.f32 %v2129_v19 }
 0x6f9   :  { %v4125_v21 = vpop.eup %4124 }
 0x6fa   :  { %v4127_v42 = vpop.eup %4126 }
 0x6fb   :  { %v2136_v43 = vmul.f32 %v4127_v42, %v4125_v21 }
 0x6fd   :  { %v2137_v45 = vpack.c.bf16 %v2136_v43, %v2136_v43 }
 0x6ff   :  { %3713 = vmatmul.mubr.bf16.vlgmr.msra.gmra.mrb[68].mxu0 %v2137_v45  ;;  %3733 = vmatmul.mubr.bf16.vlgmr.msra.gmra.mrb[68].mxu1 %v2137_v45 }
 0x700   :  { %3737 = vmatpush3.bf16.msra.mxu0 %v4936_v5  ;;  %3757 = vmatpush3.bf16.msra.mxu1 %v4939_v6 }
 0x701   :  { %3738 = vmatprep.subr.bf16.mxu0 %v5352_v15  ;;  %3758 = vmatprep.subr.bf16.mxu1 %v5352_v15 }
 0x702   :  { %3752 = vmatprep.mubr.msk.bf16.mxu0 %vm4317_vm0, %v5352_v15  ;;  %3772 = vmatprep.mubr.msk.bf16.mxu1 %vm4317_vm0, %v5352_v15 }
 0x704   :  { %3739 = vmatpush3.bf16.msra.mxu0 %v4948_v48  ;;  %3759 = vmatpush3.bf16.msra.mxu1 %v4951_v7 }
 0x705   :  { %3740 = vmatprep.subr.bf16.mxu0 %v5352_v15  ;;  %3760 = vmatprep.subr.bf16.mxu1 %v5352_v15 }
 0x708   :  { %3741 = vmatpush3.bf16.msra.mxu0 %v4956_v36  ;;  %3761 = vmatpush3.bf16.msra.mxu1 %v4959_v52 }
 0x709   :  { %3742 = vmatprep.subr.bf16.mxu0 %v5352_v15  ;;  %3762 = vmatprep.subr.bf16.mxu1 %v5352_v15 }
 0x70c   :  { %3743 = vmatpush3.bf16.msra.mxu0 %v4964_v14  ;;  %3763 = vmatpush3.bf16.msra.mxu1 %v4967_v53 }
 0x70d   :  { %3744 = vmatprep.subr.bf16.mxu0 %v5352_v15  ;;  %3764 = vmatprep.subr.bf16.mxu1 %v5352_v15 }
 0x710   :  { %3745 = vmatpush3.bf16.msra.mxu0 %v4972_v8  ;;  %3765 = vmatpush3.bf16.msra.mxu1 %v4975_v34 }
 0x711   :  { %3746 = vmatprep.subr.bf16.mxu0 %v5352_v15  ;;  %3766 = vmatprep.subr.bf16.mxu1 %v5352_v15 }
 0x714   :  { %3747 = vmatpush3.bf16.msra.mxu0 %v4980_v35  ;;  %3767 = vmatpush3.bf16.msra.mxu1 %v4983_v37 }
 0x715   :  { %3748 = vmatprep.subr.bf16.mxu0 %v5352_v15  ;;  %3768 = vmatprep.subr.bf16.mxu1 %v5352_v15 }
 0x718   :  { %3749 = vmatpush3.bf16.msra.mxu0 %v4988_v25  ;;  %3769 = vmatpush3.bf16.msra.mxu1 %v4991_v38 }
 0x719   :  { %3750 = vmatprep.subr.bf16.mxu0 %v5352_v15  ;;  %3770 = vmatprep.subr.bf16.mxu1 %v5352_v15 }
 0x71c   :  { %3751 = vmatpush3.bf16.msra.mxu0 %v4996_v40  ;;  %3771 = vmatpush3.bf16.msra.mxu1 %v4999_v41 }
 0x71d   :  { %3776 = vmatprep.subr.bf16.mxu0 %v5352_v15  ;;  %3796 = vmatprep.subr.bf16.mxu1 %v5352_v15 }
 0x71f   :  { %3753 = vmatmul.mubr.bf16.vlgmr.msra.gmra.mrb[72].mxu0 %v2137_v45  ;;  %3773 = vmatmul.mubr.bf16.vlgmr.msra.gmra.mrb[72].mxu1 %v2137_v45 }
 0x720   :  { %3777 = vmatpush3.bf16.msra.mxu0 %v4780_v39  ;;  %3797 = vmatpush3.bf16.msra.mxu1 %v4783_v9  ;;  %v2190_v39 = vrot.slane %v4639_v24, 4  ;;  %v2141_v9 = vunpack.c.l.bf16 %v4639_v24 }
 0x721   :  { %3778 = vmatprep.subr.bf16.mxu0 %v5352_v15  ;;  %3798 = vmatprep.subr.bf16.mxu1 %v5352_v15 }
 0x722   :  { %3792 = vmatprep.mubr.msk.bf16.mxu0 %vm4317_vm0, %v5352_v15  ;;  %3812 = vmatprep.mubr.msk.bf16.mxu1 %vm4317_vm0, %v5352_v15 }
 0x724   :  { %3779 = vmatpush3.bf16.msra.mxu0 %v4792_v49  ;;  %3799 = vmatpush3.bf16.msra.mxu1 %v4795_v33  ;;  %v2192_v49 = vunpack.c.l.bf16 %v2190_v39 }
 0x725   :  { %3780 = vmatprep.subr.bf16.mxu0 %v5352_v15  ;;  %3800 = vmatprep.subr.bf16.mxu1 %v5352_v15 }
 0x728   :  { %3781 = vmatpush3.bf16.msra.mxu0 %v4800_v10  ;;  %3801 = vmatpush3.bf16.msra.mxu1 %v4803_v11 }
 0x729   :  { %3782 = vmatprep.subr.bf16.mxu0 %v5352_v15  ;;  %3802 = vmatprep.subr.bf16.mxu1 %v5352_v15 }
 0x72c   :  { %3783 = vmatpush3.bf16.msra.mxu0 %v4888_v55  ;;  %3803 = vmatpush3.bf16.msra.mxu1 %v4891_v56 }
 0x72d   :  { %3784 = vmatprep.subr.bf16.mxu0 %v5352_v15  ;;  %3804 = vmatprep.subr.bf16.mxu1 %v5352_v15 }
 0x730   :  { %3785 = vmatpush3.bf16.msra.mxu0 %v4896_v57  ;;  %3805 = vmatpush3.bf16.msra.mxu1 %v4899_v58 }
 0x731   :  { %3786 = vmatprep.subr.bf16.mxu0 %v5352_v15  ;;  %3806 = vmatprep.subr.bf16.mxu1 %v5352_v15 }
 0x734   :  { %3787 = vmatpush3.bf16.msra.mxu0 %v4904_v59  ;;  %3807 = vmatpush3.bf16.msra.mxu1 %v4907_v60 }
 0x735   :  { %3788 = vmatprep.subr.bf16.mxu0 %v5352_v15  ;;  %3808 = vmatprep.subr.bf16.mxu1 %v5352_v15 }
 0x738   :  { %3789 = vmatpush3.bf16.msra.mxu0 %v4912_v61  ;;  %3809 = vmatpush3.bf16.msra.mxu1 %v4915_v62 }
 0x739   :  { %3790 = vmatprep.subr.bf16.mxu0 %v5352_v15  ;;  %3810 = vmatprep.subr.bf16.mxu1 %v5352_v15 }
 0x73c   :  { %3791 = vmatpush3.bf16.msra.mxu0 %v4920_v63  ;;  %3811 = vmatpush3.bf16.msra.mxu1 %v4923_v1 }
 0x73d   :  { %3816 = vmatprep.subr.bf16.mxu0 %v5352_v15  ;;  %3836 = vmatprep.subr.bf16.mxu1 %v5352_v15 }
 0x7d2   :  { %v2176_v33 = vpop.f32.mrb[68].mxu0  ;;  %v2227_v10 = vpop.f32.mrb[68].mxu1 }
 0x7d3   :  { %v2182_v11 = vadd.f32 %v2176_v33, %v2141_v9  ;;  %v2233_v26 = vadd.f32 %v2227_v10, %v2192_v49  ;;  %v3714_v46 = vpop.f32.mrb[69].mxu0  ;;  %v3734_v47 = vpop.f32.mrb[69].mxu1 }
 0x7d4   :  { %v2179_v30 = vpop.f32.mrb[70].mxu0  ;;  %v2230_v50 = vpop.f32.mrb[70].mxu1 }
 0x7d5   :  { %v3715_v51 = vpop.f32.mrb[71].mxu0  ;;  %v3735_v32 = vpop.f32.mrb[71].mxu1  ;;  %v2866_v12 = vmul.f32 -1.442695, %v2233_v26  ;;  %v2865_v20 = vmul.f32 -1.442695, %v2182_v11 }
 0x7d6   :  { %v4209_v51 = vld [vmem:[#allocation8 + $0x4] ss:$16 sps:$4 sm:$0xff]   ;;  %v4210_v32 = vld [vmem:[#allocation8 + $0x20] ss:$16 sps:$4 sm:$0xff]  }
 0x7d7   :  { %4128 = vpow2.f32 %v2866_v12  ;;  %v4211_v12 = vld [vmem:[#allocation8 + $0x24] ss:$16 sps:$4 sm:$0xff]  }
 0x7d8   :  { %4130 = vpow2.f32 %v2865_v20  ;;  %v4212_v20 = vld [vmem:[#allocation8 + $0x40] ss:$16 sps:$4 sm:$0xff]  }
 0x7e1   :  { %v4129_v2 = vpop.eup %4128 }
 0x7e2   :  { %v4131_v3 = vpop.eup %4130  ;;  %v2237_v24 = vadd.f32 1.0, %v4129_v2  ;;  %v4213_v2 = vld [vmem:[#allocation8 + $0x44] ss:$16 sps:$4 sm:$0xff]  }
 0x7e3   :  { %v2186_v29 = vadd.f32 1.0, %v4131_v3 }
 0x7e4   :  { %4132 = vrcp.f32 %v2237_v24 }
 0x7e5   :  { %4134 = vrcp.f32 %v2186_v29 }
 0x7ee   :  { %v4133_v39 = vpop.eup %4132 }
 0x7ef   :  { %v4135_v9 = vpop.eup %4134  ;;  %v2334_v27 = vmul.f32 %v4133_v39, %v5125_v0  ;;  %v4208_v0 = vld [vmem:[#allocation8] ss:$16 sps:$4 sm:$0xff]  }
 0x7f2   :  { %v2275_v23 = vpop.f32.mrb[72].mxu0  ;;  %v2321_v54 = vpop.f32.mrb[72].mxu1 }
 0x7f3   :  { %v2281_v17 = vadd.f32 %v2275_v23, %v2240_v28  ;;  %v2327_v13 = vadd.f32 %v2321_v54, %v2286_v16  ;;  %v3754_v22 = vpop.f32.mrb[73].mxu0  ;;  %v3774_v44 = vpop.f32.mrb[73].mxu1  ;;  %v5357_v54 = vld [vmem:[#allocation17_spill] sm:$0xff] }
 0x7f4   :  { %v2278_v19 = vpop.f32.mrb[74].mxu0  ;;  %v2324_v21 = vpop.f32.mrb[74].mxu1  ;;  %v2442_v22 = vunpack.c.l.bf16 %v5357_v54 }
 0x7f5   :  { %4136 = vtanh.f32 %v2281_v17  ;;  %v2867_v42 = vmul.f32 -1.442695, %v2327_v13  ;;  %v3755_v43 = vpop.f32.mrb[75].mxu0  ;;  %v3775_v45 = vpop.f32.mrb[75].mxu1  ;;  %v2486_v17 = vrot.slane %v5357_v54, 4 }
 0x7f7   :  { %4138 = vpow2.f32 %v2867_v42  ;;  %v2488_v44 = vunpack.c.l.bf16 %v2486_v17 }
 0x7ff   :  { %v4137_v49 = vpop.eup %4136 }
 0x800   :  { %v2335_v33 = vmul.f32 %v4137_v49, %v4135_v9 }
 0x801   :  { %v4139_v10 = vpop.eup %4138 }
 0x802   :  { %v5205_v11 = vadd.f32 %v2335_v33, %v2334_v27  ;;  %v2331_v26 = vadd.f32 1.0, %v4139_v10 }
 0x804   :  { %4140 = vtanh.f32 %v5205_v11 }
 0x805   :  { %4142 = vrcp.f32 %v2331_v26 }
 0x80e   :  { %v4141_v46 = vpop.eup %4140 }
 0x80f   :  { %v4143_v47 = vpop.eup %4142 }
 0x810   :  { %v2338_v30 = vmul.f32 %v4143_v47, %v4141_v46 }
 0x812   :  { %v2339_v50 = vpack.c.bf16 %v2338_v30, %v2338_v30 }
 0x814   :  { %3793 = vmatmul.mubr.bf16.vlgmr.msra.gmra.mrb[76].mxu0 %v2339_v50  ;;  %3813 = vmatmul.mubr.bf16.vlgmr.msra.gmra.mrb[76].mxu1 %v2339_v50 }
 0x815   :  { %3817 = vmatpush3.bf16.msra.mxu0 %v4936_v5  ;;  %3837 = vmatpush3.bf16.msra.mxu1 %v4939_v6 }
 0x816   :  { %3818 = vmatprep.subr.bf16.mxu0 %v5352_v15  ;;  %3838 = vmatprep.subr.bf16.mxu1 %v5352_v15 }
 0x817   :  { %3832 = vmatprep.mubr.msk.bf16.mxu0 %vm4317_vm0, %v5352_v15  ;;  %3852 = vmatprep.mubr.msk.bf16.mxu1 %vm4317_vm0, %v5352_v15 }
 0x819   :  { %3819 = vmatpush3.bf16.msra.mxu0 %v4948_v48  ;;  %3839 = vmatpush3.bf16.msra.mxu1 %v4951_v7 }
 0x81a   :  { %3820 = vmatprep.subr.bf16.mxu0 %v5352_v15  ;;  %3840 = vmatprep.subr.bf16.mxu1 %v5352_v15 }
 0x81d   :  { %3821 = vmatpush3.bf16.msra.mxu0 %v4956_v36  ;;  %3841 = vmatpush3.bf16.msra.mxu1 %v4959_v52 }
 0x81e   :  { %3822 = vmatprep.subr.bf16.mxu0 %v5352_v15  ;;  %3842 = vmatprep.subr.bf16.mxu1 %v5352_v15 }
 0x821   :  { %3823 = vmatpush3.bf16.msra.mxu0 %v4964_v14  ;;  %3843 = vmatpush3.bf16.msra.mxu1 %v4967_v53 }
 0x822   :  { %3824 = vmatprep.subr.bf16.mxu0 %v5352_v15  ;;  %3844 = vmatprep.subr.bf16.mxu1 %v5352_v15 }
 0x825   :  { %3825 = vmatpush3.bf16.msra.mxu0 %v4972_v8  ;;  %3845 = vmatpush3.bf16.msra.mxu1 %v4975_v34 }
 0x826   :  { %3826 = vmatprep.subr.bf16.mxu0 %v5352_v15  ;;  %3846 = vmatprep.subr.bf16.mxu1 %v5352_v15 }
 0x829   :  { %3827 = vmatpush3.bf16.msra.mxu0 %v4980_v35  ;;  %3847 = vmatpush3.bf16.msra.mxu1 %v4983_v37 }
 0x82a   :  { %3828 = vmatprep.subr.bf16.mxu0 %v5352_v15  ;;  %3848 = vmatprep.subr.bf16.mxu1 %v5352_v15 }
 0x82d   :  { %3829 = vmatpush3.bf16.msra.mxu0 %v4988_v25  ;;  %3849 = vmatpush3.bf16.msra.mxu1 %v4991_v38 }
 0x82e   :  { %3830 = vmatprep.subr.bf16.mxu0 %v5352_v15  ;;  %3850 = vmatprep.subr.bf16.mxu1 %v5352_v15 }
 0x831   :  { %3831 = vmatpush3.bf16.msra.mxu0 %v4996_v40  ;;  %3851 = vmatpush3.bf16.msra.mxu1 %v4999_v41 }
 0x832   :  { %3856 = vmatprep.subr.bf16.mxu0 %v5352_v15  ;;  %3876 = vmatprep.subr.bf16.mxu1 %v5352_v15 }
 0x834   :  { %3833 = vmatmul.mubr.bf16.vlgmr.msra.gmra.mrb[80].mxu0 %v2339_v50  ;;  %3853 = vmatmul.mubr.bf16.vlgmr.msra.gmra.mrb[80].mxu1 %v2339_v50 }
 0x835   :  { %3857 = vmatpush3.bf16.msra.mxu0 %v4208_v0  ;;  %3877 = vmatpush3.bf16.msra.mxu1 %v4209_v51 }
 0x836   :  { %3858 = vmatprep.subr.bf16.mxu0 %v5352_v15  ;;  %3878 = vmatprep.subr.bf16.mxu1 %v5352_v15 }
 0x837   :  { %3872 = vmatprep.mubr.msk.bf16.mxu0 %vm4317_vm0, %v5352_v15  ;;  %3892 = vmatprep.mubr.msk.bf16.mxu1 %vm4317_vm0, %v5352_v15 }
 0x839   :  { %3859 = vmatpush3.bf16.msra.mxu0 %v4210_v32  ;;  %3879 = vmatpush3.bf16.msra.mxu1 %v4211_v12 }
 0x83a   :  { %3860 = vmatprep.subr.bf16.mxu0 %v5352_v15  ;;  %3880 = vmatprep.subr.bf16.mxu1 %v5352_v15 }
 0x83d   :  { %3861 = vmatpush3.bf16.msra.mxu0 %v4212_v20  ;;  %3881 = vmatpush3.bf16.msra.mxu1 %v4213_v2 }
 0x83e   :  { %3862 = vmatprep.subr.bf16.mxu0 %v5352_v15  ;;  %3882 = vmatprep.subr.bf16.mxu1 %v5352_v15 }
 0x841   :  { %3863 = vmatpush3.bf16.msra.mxu0 %v4888_v55  ;;  %3883 = vmatpush3.bf16.msra.mxu1 %v4891_v56  ;;  %v2392_v55 = vrot.slane %v4645_v31, 4  ;;  %v2343_v56 = vunpack.c.l.bf16 %v4645_v31 }
 0x842   :  { %3864 = vmatprep.subr.bf16.mxu0 %v5352_v15  ;;  %3884 = vmatprep.subr.bf16.mxu1 %v5352_v15 }
 0x845   :  { %3865 = vmatpush3.bf16.msra.mxu0 %v4896_v57  ;;  %3885 = vmatpush3.bf16.msra.mxu1 %v4899_v58  ;;  %v2394_v57 = vunpack.c.l.bf16 %v2392_v55 }
 0x846   :  { %3866 = vmatprep.subr.bf16.mxu0 %v5352_v15  ;;  %3886 = vmatprep.subr.bf16.mxu1 %v5352_v15 }
 0x849   :  { %3867 = vmatpush3.bf16.msra.mxu0 %v4904_v59  ;;  %3887 = vmatpush3.bf16.msra.mxu1 %v4907_v60 }
 0x84a   :  { %3868 = vmatprep.subr.bf16.mxu0 %v5352_v15  ;;  %3888 = vmatprep.subr.bf16.mxu1 %v5352_v15 }
 0x84d   :  { %3869 = vmatpush3.bf16.msra.mxu0 %v4912_v61  ;;  %3889 = vmatpush3.bf16.msra.mxu1 %v4915_v62 }
 0x84e   :  { %3870 = vmatprep.subr.bf16.mxu0 %v5352_v15  ;;  %3890 = vmatprep.subr.bf16.mxu1 %v5352_v15 }
 0x851   :  { %3871 = vmatpush3.bf16.msra.mxu0 %v4920_v63  ;;  %3891 = vmatpush3.bf16.msra.mxu1 %v4923_v1 }
 0x852   :  { %3896 = vmatprep.subr.bf16.mxu0 %v5352_v15  ;;  %3916 = vmatprep.subr.bf16.mxu1 %v5352_v15 }
 0x8e7   :  { %v2378_v58 = vpop.f32.mrb[76].mxu0  ;;  %v2429_v59 = vpop.f32.mrb[76].mxu1 }
 0x8e8   :  { %v2384_v60 = vadd.f32 %v2378_v58, %v2343_v56  ;;  %v2435_v61 = vadd.f32 %v2429_v59, %v2394_v57  ;;  %v3794_v62 = vpop.f32.mrb[77].mxu0  ;;  %v3814_v3 = vpop.f32.mrb[77].mxu1 }
 0x8e9   :  { %v2381_v4 = vpop.f32.mrb[78].mxu0  ;;  %v2432_v24 = vpop.f32.mrb[78].mxu1 }
 0x8ea   :  { %v3795_v63 = vpop.f32.mrb[79].mxu0  ;;  %v3815_v29 = vpop.f32.mrb[79].mxu1  ;;  %v2869_v1 = vmul.f32 -1.442695, %v2435_v61  ;;  %v2868_v28 = vmul.f32 -1.442695, %v2384_v60 }
 0x8ec   :  { %4144 = vpow2.f32 %v2869_v1 }
 0x8ed   :  { %4146 = vpow2.f32 %v2868_v28 }
 0x8f6   :  { %v4145_v16 = vpop.eup %4144 }
 0x8f7   :  { %v4147_v23 = vpop.eup %4146  ;;  %v2439_v31 = vadd.f32 1.0, %v4145_v16 }
 0x8f8   :  { %v2388_v13 = vadd.f32 1.0, %v4147_v23 }
 0x8f9   :  { %4148 = vrcp.f32 %v2439_v31 }
 0x8fa   :  { %4150 = vrcp.f32 %v2388_v13 }
 0x903   :  { %v4149_v26 = vpop.eup %4148 }
 0x904   :  { %v4151_v46 = vpop.eup %4150  ;;  %v2536_v30 = vmul.f32 %v4149_v26, %v5205_v11  ;;  %v5358_v11 = vld [vmem:[#allocation18_spill] sm:$0xff] }
 0x905   :  { %v2688_v56 = vrot.slane %v5358_v11, 4  ;;  %v2644_v58 = vunpack.c.l.bf16 %v5358_v11 }
 0x907   :  { %v2477_v19 = vpop.f32.mrb[80].mxu0  ;;  %v2523_v21 = vpop.f32.mrb[80].mxu1  ;;  %v2690_v59 = vunpack.c.l.bf16 %v2688_v56 }
 0x908   :  { %v2483_v42 = vadd.f32 %v2477_v19, %v2442_v22  ;;  %v2529_v43 = vadd.f32 %v2523_v21, %v2488_v44  ;;  %v3834_v45 = vpop.f32.mrb[81].mxu0  ;;  %v3854_v39 = vpop.f32.mrb[81].mxu1 }
 0x909   :  { %v2480_v9 = vpop.f32.mrb[82].mxu0  ;;  %v2526_v49 = vpop.f32.mrb[82].mxu1 }
 0x90a   :  { %4152 = vtanh.f32 %v2483_v42  ;;  %v2870_v27 = vmul.f32 -1.442695, %v2529_v43  ;;  %v3835_v33 = vpop.f32.mrb[83].mxu0  ;;  %v3855_v10 = vpop.f32.mrb[83].mxu1 }
 0x90c   :  { %4154 = vpow2.f32 %v2870_v27 }
 0x914   :  { %v4153_v47 = vpop.eup %4152 }
 0x915   :  { %v2537_v50 = vmul.f32 %v4153_v47, %v4151_v46 }
 0x916   :  { %v4155_v0 = vpop.eup %4154 }
 0x917   :  { %v5279_v51 = vadd.f32 %v2537_v50, %v2536_v30  ;;  %v2533_v32 = vadd.f32 1.0, %v4155_v0 }
 0x919   :  { %4156 = vtanh.f32 %v5279_v51 }
 0x91a   :  { %4158 = vrcp.f32 %v2533_v32 }
 0x923   :  { %v4157_v12 = vpop.eup %4156 }
 0x924   :  { %v4159_v20 = vpop.eup %4158 }
 0x925   :  { %v2540_v2 = vmul.f32 %v4159_v20, %v4157_v12 }
 0x927   :  { %v2541_v55 = vpack.c.bf16 %v2540_v2, %v2540_v2 }
 0x929   :  { %3873 = vmatmul.mubr.bf16.vlgmr.msra.gmra.mrb[84].mxu0 %v2541_v55  ;;  %3893 = vmatmul.mubr.bf16.vlgmr.msra.gmra.mrb[84].mxu1 %v2541_v55 }
 0x92a   :  { %3897 = vmatpush3.bf16.msra.mxu0 %v4936_v5  ;;  %3917 = vmatpush3.bf16.msra.mxu1 %v4939_v6  ;;  %v2594_v5 = vrot.slane %v4654_v18, 4  ;;  %v2545_v6 = vunpack.c.l.bf16 %v4654_v18 }
 0x92b   :  { %3898 = vmatprep.subr.bf16.mxu0 %v5352_v15  ;;  %3918 = vmatprep.subr.bf16.mxu1 %v5352_v15 }
 0x92c   :  { %3912 = vmatprep.mubr.msk.bf16.mxu0 %vm4317_vm0, %v5352_v15  ;;  %3932 = vmatprep.mubr.msk.bf16.mxu1 %vm4317_vm0, %v5352_v15 }
 0x92e   :  { %3899 = vmatpush3.bf16.msra.mxu0 %v4948_v48  ;;  %3919 = vmatpush3.bf16.msra.mxu1 %v4951_v7  ;;  %v2596_v48 = vunpack.c.l.bf16 %v2594_v5 }
 0x92f   :  { %3900 = vmatprep.subr.bf16.mxu0 %v5352_v15  ;;  %3920 = vmatprep.subr.bf16.mxu1 %v5352_v15 }
 0x932   :  { %3901 = vmatpush3.bf16.msra.mxu0 %v4956_v36  ;;  %3921 = vmatpush3.bf16.msra.mxu1 %v4959_v52 }
 0x933   :  { %3902 = vmatprep.subr.bf16.mxu0 %v5352_v15  ;;  %3922 = vmatprep.subr.bf16.mxu1 %v5352_v15 }
 0x936   :  { %3903 = vmatpush3.bf16.msra.mxu0 %v4964_v14  ;;  %3923 = vmatpush3.bf16.msra.mxu1 %v4967_v53 }
 0x937   :  { %3904 = vmatprep.subr.bf16.mxu0 %v5352_v15  ;;  %3924 = vmatprep.subr.bf16.mxu1 %v5352_v15 }
 0x93a   :  { %3905 = vmatpush3.bf16.msra.mxu0 %v4972_v8  ;;  %3925 = vmatpush3.bf16.msra.mxu1 %v4975_v34 }
 0x93b   :  { %3906 = vmatprep.subr.bf16.mxu0 %v5352_v15  ;;  %3926 = vmatprep.subr.bf16.mxu1 %v5352_v15 }
 0x93e   :  { %3907 = vmatpush3.bf16.msra.mxu0 %v4980_v35  ;;  %3927 = vmatpush3.bf16.msra.mxu1 %v4983_v37 }
 0x93f   :  { %3908 = vmatprep.subr.bf16.mxu0 %v5352_v15  ;;  %3928 = vmatprep.subr.bf16.mxu1 %v5352_v15 }
 0x942   :  { %3909 = vmatpush3.bf16.msra.mxu0 %v4988_v25  ;;  %3929 = vmatpush3.bf16.msra.mxu1 %v4991_v38 }
 0x943   :  { %3910 = vmatprep.subr.bf16.mxu0 %v5352_v15  ;;  %3930 = vmatprep.subr.bf16.mxu1 %v5352_v15 }
 0x946   :  { %3911 = vmatpush3.bf16.msra.mxu0 %v4996_v40  ;;  %3931 = vmatpush3.bf16.msra.mxu1 %v4999_v41 }
 0x949   :  { %3913 = vmatmul.mubr.bf16.vlgmr.msra.gmra.mrb[88].mxu0 %v2541_v55  ;;  %3933 = vmatmul.mubr.bf16.vlgmr.msra.gmra.mrb[88].mxu1 %v2541_v55 }
 0x9fc   :  { %v2580_v7 = vpop.f32.mrb[84].mxu0  ;;  %v2631_v36 = vpop.f32.mrb[84].mxu1 }
 0x9fd   :  { %v2586_v52 = vadd.f32 %v2580_v7, %v2545_v6  ;;  %v2637_v14 = vadd.f32 %v2631_v36, %v2596_v48  ;;  %v3874_v53 = vpop.f32.mrb[85].mxu0  ;;  %v3894_v8 = vpop.f32.mrb[85].mxu1 }
 0x9fe   :  { %v2583_v34 = vpop.f32.mrb[86].mxu0  ;;  %v2634_v35 = vpop.f32.mrb[86].mxu1 }
 0x9ff   :  { %v3875_v15 = vpop.f32.mrb[87].mxu0  ;;  %v3895_v37 = vpop.f32.mrb[87].mxu1  ;;  %v2872_v25 = vmul.f32 -1.442695, %v2637_v14  ;;  %v2871_v38 = vmul.f32 -1.442695, %v2586_v52 }
 0xa01   :  { %4160 = vpow2.f32 %v2872_v25 }
 0xa02   :  { %4162 = vpow2.f32 %v2871_v38 }
 0xa0b   :  { %v4161_v40 = vpop.eup %4160 }
 0xa0c   :  { %v4163_v41 = vpop.eup %4162  ;;  %v2641_v18 = vadd.f32 1.0, %v4161_v40 }
 0xa0d   :  { %v2590_v57 = vadd.f32 1.0, %v4163_v41 }
 0xa0e   :  { %4164 = vrcp.f32 %v2641_v18 }
 0xa0f   :  { %4166 = vrcp.f32 %v2590_v57 }
 0xa18   :  { %v4165_v23 = vpop.eup %4164 }
 0xa19   :  { %v4167_v54 = vpop.eup %4166  ;;  %v2738_v31 = vmul.f32 %v4165_v23, %v5279_v51 }
 0xa1c   :  { %v2679_v60 = vpop.f32.mrb[88].mxu0  ;;  %v2725_v61 = vpop.f32.mrb[88].mxu1 }
 0xa1d   :  { %v2685_v62 = vadd.f32 %v2679_v60, %v2644_v58  ;;  %v2731_v3 = vadd.f32 %v2725_v61, %v2690_v59  ;;  %v3914_v4 = vpop.f32.mrb[89].mxu0  ;;  %v3934_v24 = vpop.f32.mrb[89].mxu1 }
 0xa1e   :  { %v2682_v63 = vpop.f32.mrb[90].mxu0  ;;  %v2728_v29 = vpop.f32.mrb[90].mxu1 }
 0xa1f   :  { %4168 = vtanh.f32 %v2685_v62  ;;  %v2873_v1 = vmul.f32 -1.442695, %v2731_v3  ;;  %v3915_v28 = vpop.f32.mrb[91].mxu0  ;;  %v3935_v16 = vpop.f32.mrb[91].mxu1 }
 0xa21   :  { %4170 = vpow2.f32 %v2873_v1 }
 0xa29   :  { %v4169_v17 = vpop.eup %4168 }
 0xa2a   :  { %v2739_v13 = vmul.f32 %v4169_v17, %v4167_v54 }
 0xa2b   :  { %v4171_v22 = vpop.eup %4170 }
 0xa2c   :  { %v2740_v44 = vadd.f32 %v2739_v13, %v2738_v31  ;;  %v2735_v19 = vadd.f32 1.0, %v4171_v22 }
 0xa2e   :  { %4172 = vtanh.f32 %v2740_v44 }
 0xa2f   :  { %4174 = vrcp.f32 %v2735_v19 }
 0xa38   :  { %v4173_v21 = vpop.eup %4172 }
 0xa39   :  { %v4175_v42 = vpop.eup %4174 }
 0xa3a   :  { %v2742_v43 = vmul.f32 %v4175_v42, %v4173_v21 }
 0xa3c   :  { %2743 = vst [vmem:[#allocation9] sm:$0xff] %v2742_v43 }
 0xa3d   :  { %4291 = shalt.err (!%p4288_p0)
}
 0xa3e   :  { %s4292_s6 = scalar_lea.hbm %s5337_s4, 128 }
 0xa3f   :  { %p4293_p1 = scmp.ne.s32.totalorder %s5337_s4, %s4292_s6  ;;  %p4296_p2 = scmp.lt.u32.totalorder %s4292_s6, %s5337_s4 }
 0xa41   :  { %p4298_p3 = pnand %p4296_p2, %p4293_p1 }
 0xa43   :  { %4301 = shalt.err (!%p4298_p3)
}
 0xa44   :  { %2753 = dma.vmem_to_hbm [thread:$0]  %s2751_s26, 128, %s5337_s4, [#allocation5]  }
 0xa45   :  { %4306 = dma.done.wait [#allocation5], 128  }
 0xa46   :  { %4307 = vsyncadd [#allocation5], 4294967168 }
 0xa47   :  { %2757 = vsyncpa [#allocation4], 1 }
 0xa48   :  { %2758 = vsyncpa [#allocation7], 1 }
 0xa49   :  { %2759 = vsyncpa [#allocation5], 1 }

</bundles_post_ra>
